<compile_context>
chip_gen: v5e
topology: v5e:2x2
jax: 0.10.0
libtpu: 0.0.40
codegen_flags: <defaults>
</compile_context>

<pallas_src>
import functools

import jax
import jax.numpy as jnp
from jax.experimental import pallas as pl
from jax.experimental.pallas import tpu as pltpu

EPS = 1e-8
_LANE = 128
_VMEM_LIMIT = 32 * 1024 * 1024      # explicit scoped-VMEM cap (safe on v5e/v6e/v7x)
MXU_DTYPE = jnp.bfloat16            # matmul operand dtype (f32 accumulation)


def _pick_act_dtype():
    # bf16 activations on v6e/v7x (native bf16 VPU/EUP, halves HBM traffic on
    # the memory-bound path); keep f32 on v5e and older chips (no bf16 VALU).
    try:
        kind = jax.devices()[0].device_kind.lower()
    except Exception:
        return jnp.float32
    if any(t in kind for t in ("v6", "v7", "tpu7")):
        return jnp.bfloat16
    return jnp.float32


ACT_DTYPE = _pick_act_dtype()
_SUBLANE = 16 if ACT_DTYPE == jnp.bfloat16 else 8
_ROW_TILE_CAP = 2048 if ACT_DTYPE == jnp.bfloat16 else 1024


# ----------------------------- small helpers -------------------------------

def _ceil_to(x, m):
    return ((x + m - 1) // m) * m


def _lane_pad(c):
    return _ceil_to(max(c, 1), _LANE)


def _row_plan(rows):
    """Dtype-aware fixed row tile (multiple of the sublane pack) + padded rows."""
    tr = _ROW_TILE_CAP if rows >= _ROW_TILE_CAP else _ceil_to(rows, _SUBLANE)
    return tr, _ceil_to(rows, tr)


def _pad_rows(x, rp):
    if x.shape[1] == rp:
        return x
    return jnp.pad(x, ((0, 0), (0, rp - x.shape[1]), (0, 0)))


def _pad_lanes(x, cp):
    if x.shape[-1] == cp:
        return x
    return jnp.pad(x, ((0, 0), (0, 0), (0, cp - x.shape[-1])))


def _cparams(*sem):
    return pltpu.CompilerParams(dimension_semantics=sem,
                                vmem_limit_bytes=_VMEM_LIMIT)


# ----------------------------- Pallas kernels ------------------------------

def _stats_kernel(x_ref, sum_ref, sq_ref):
    # Per-batch per-lane sum / sum-of-squares accumulated over row tiles
    # (GroupNorm pass 1). Row/lane padding of the entry input is exactly zero
    # so it adds nothing; the true element count is divided out in the
    # consuming kernel.
    @pl.when(pl.program_id(1) == 0)
    def _():
        sum_ref[...] = jnp.zeros_like(sum_ref)
        sq_ref[...] = jnp.zeros_like(sq_ref)

    x = x_ref[0].astype(jnp.float32)
    sum_ref[...] += jnp.sum(x, axis=0, keepdims=True)[None]
    sq_ref[...] += jnp.sum(x * x, axis=0, keepdims=True)[None]


def _finalize(sum_ref, sq_ref, count):
    # In-kernel GroupNorm statistic finalization (EUP rsqrt).
    # NOTE: E[x^2] - E[x]^2 in f32 (single pass); assumes near-zero-mean data.
    mean = jnp.sum(sum_ref[...]) / count
    msq = jnp.sum(sq_ref[...]) / count
    inv = jax.lax.rsqrt(jnp.maximum(msq - mean * mean, 0.0) + EPS)
    return mean, inv


def _accum_stats(y, r, sum_ref, sq_ref, valid_rows, tile_rows, num_tiles):
    # Per-lane partial accumulation of GroupNorm stats; the row-padding mask
    # is only applied on the final row tile (lane padding is exactly zero by
    # construction, so no lane mask is ever needed).
    def add(v):
        sum_ref[...] += jnp.sum(v, axis=0, keepdims=True)[None]
        sq_ref[...] += jnp.sum(v * v, axis=0, keepdims=True)[None]

    if valid_rows == tile_rows * num_tiles:        # static: no padded rows
        add(y)
    else:
        last = num_tiles - 1

        @pl.when(r != last)
        def _():
            add(y)

        @pl.when(r == last)
        def _():
            rid = jax.lax.broadcasted_iota(jnp.int32, y.shape, 0) + last * tile_rows
            add(jnp.where(rid < valid_rows, y, 0.0))


def _make_norm_conv_kernel(count):
    def kernel(sum_ref, sq_ref, x_ref, g_ref, b_ref, w_ref, o_ref):
        # GroupNorm(1, Cin) apply (stats finalized in-kernel, per-channel
        # affine folded to x*(inv*g) + (beta - mean*inv*g)) fused with the
        # 1x1 Conv1d (bias=False) as a lane-dense MXU matmul.
        mean, inv = _finalize(sum_ref, sq_ref, count)
        s_row = inv * g_ref[...]
        c_row = b_ref[...] - mean * s_row
        xn = x_ref[0].astype(jnp.float32) * s_row + c_row
        y = jnp.dot(xn.astype(MXU_DTYPE), w_ref[...],
                    preferred_element_type=jnp.float32)
        o_ref[0] = y.astype(o_ref.dtype)

    return kernel


def _make_seg_ff_kernel(valid_rows, tile_rows, num_tiles):
    def kernel(x_ref, w1_ref, b1_ref, w2_ref, b2_ref, y_ref, sum_ref, sq_ref):
        r = pl.program_id(1)

        @pl.when(r == 0)
        def _():
            sum_ref[...] = jnp.zeros_like(sum_ref)
            sq_ref[...] = jnp.zeros_like(sq_ref)

        # Per-timestep sub-model (Linear+ReLU) fused with the following
        # intra Linear layer: two bf16 MXU matmuls, f32 accumulation.
        x = x_ref[0].astype(MXU_DTYPE)
        h = jnp.maximum(jnp.dot(x, w1_ref[...],
                                preferred_element_type=jnp.float32) + b1_ref[...], 0.0)
        y = jnp.dot(h.astype(MXU_DTYPE), w2_ref[...],
                    preferred_element_type=jnp.float32) + b2_ref[...]
        y_ref[0] = y.astype(y_ref.dtype)
        _accum_stats(y, r, sum_ref, sq_ref, valid_rows, tile_rows, num_tiles)

    return kernel


def _make_norm_ff_kernel(valid_rows, tile_rows, num_tiles, count):
    def kernel(psum_ref, psq_ref, yp_ref, skip_ref, g_ref, beta_ref,
               w1_ref, b1_ref, w2_ref, b2_ref,
               z_ref, y_ref, sum_ref, sq_ref):
        # Fused: GroupNorm-apply(prev FF output) + residual/skip add
        #        -> per-timestep FF (Linear+ReLU+Linear)
        #        -> GroupNorm statistics of the new output.
        r = pl.program_id(1)

        @pl.when(r == 0)
        def _():
            sum_ref[...] = jnp.zeros_like(sum_ref)
            sq_ref[...] = jnp.zeros_like(sq_ref)

        mean, inv = _finalize(psum_ref, psq_ref, count)
        s_row = inv * g_ref[...]
        c_row = beta_ref[...] - mean * s_row
        z = (yp_ref[0].astype(jnp.float32) * s_row + c_row
             + skip_ref[0].astype(jnp.float32))
        z_ref[0] = z.astype(z_ref.dtype)

        h = jnp.maximum(jnp.dot(z.astype(MXU_DTYPE), w1_ref[...],
                                preferred_element_type=jnp.float32) + b1_ref[...], 0.0)
        y = jnp.dot(h.astype(MXU_DTYPE), w2_ref[...],
                    preferred_element_type=jnp.float32) + b2_ref[...]
        y_ref[0] = y.astype(y_ref.dtype)
        _accum_stats(y, r, sum_ref, sq_ref, valid_rows, tile_rows, num_tiles)

    return kernel


def _make_norm_prelu_conv_kernel(count, num_spks, cpad):
    def kernel(psum_ref, psq_ref, yp_ref, skip_ref, g_ref, beta_ref,
               a_ref, w_ref, b_ref, o_ref):
        # Final half-layer GroupNorm-apply + residual, fused with PReLU
        # (shared alpha) and the 1x1 Conv2d (C -> C*num_spks); the result is
        # written speaker-major so no host transpose is needed.
        mean, inv = _finalize(psum_ref, psq_ref, count)
        s_row = inv * g_ref[...]
        c_row = beta_ref[...] - mean * s_row
        z = (yp_ref[0].astype(jnp.float32) * s_row + c_row
             + skip_ref[0].astype(jnp.float32))
        u = jnp.where(z >= 0.0, z, z * a_ref[...])
        v = jnp.dot(u.astype(MXU_DTYPE), w_ref[...],
                    preferred_element_type=jnp.float32) + b_ref[...]
        for s in range(num_spks):
            o_ref[0, s] = v[:, s * cpad:(s + 1) * cpad].astype(o_ref.dtype)

    return kernel


def _make_gated_kernel(cpad):
    def kernel(x_ref, wog_ref, bog_ref, we_ref, o_ref):
        # tanh(conv1x1) * sigmoid(conv1x1) with the two weights merged into a
        # single (C, 2C) MXU pass, then end 1x1 conv (no bias) + final ReLU.
        x = x_ref[0].astype(MXU_DTYPE)
        og = jnp.dot(x, wog_ref[...], preferred_element_type=jnp.float32) + bog_ref[...]
        t = jnp.tanh(og[:, :cpad])
        g = jax.nn.sigmoid(og[:, cpad:])
        y = (t * g).astype(MXU_DTYPE)
        z = jnp.dot(y, we_ref[...], preferred_element_type=jnp.float32)
        o_ref[0] = jnp.maximum(z, 0.0).astype(o_ref.dtype)

    return kernel


# ----------------------------- kernel wrappers -----------------------------

def pallas_entry_stats(x, tr):
    B, Rp, C = x.shape
    return pl.pallas_call(
        _stats_kernel,
        out_shape=(jax.ShapeDtypeStruct((B, 1, C), jnp.float32),
                   jax.ShapeDtypeStruct((B, 1, C), jnp.float32)),
        grid=(B, Rp // tr),
        in_specs=[pl.BlockSpec((1, tr, C), lambda b, r: (b, r, 0))],
        out_specs=(pl.BlockSpec((1, 1, C), lambda b, r: (b, 0, 0)),
                   pl.BlockSpec((1, 1, C), lambda b, r: (b, 0, 0))),
        compiler_params=_cparams("parallel", "arbitrary"),
    )(x)


def pallas_norm_conv(ssum, ssq, x, g_row, b_row, w, count, tr):
    B, Rp, Cinp = x.shape
    Coutp = w.shape[1]
    kern = _make_norm_conv_kernel(float(count))
    return pl.pallas_call(
        kern,
        out_shape=jax.ShapeDtypeStruct((B, Rp, Coutp), ACT_DTYPE),
        grid=(B, Rp // tr),
        in_specs=[pl.BlockSpec((1, 1, Cinp), lambda b, r: (b, 0, 0)),
                  pl.BlockSpec((1, 1, Cinp), lambda b, r: (b, 0, 0)),
                  pl.BlockSpec((1, tr, Cinp), lambda b, r: (b, r, 0)),
                  pl.BlockSpec((1, Cinp), lambda b, r: (0, 0)),
                  pl.BlockSpec((1, Cinp), lambda b, r: (0, 0)),
                  pl.BlockSpec((Cinp, Coutp), lambda b, r: (0, 0))],
        out_specs=pl.BlockSpec((1, tr, Coutp), lambda b, r: (b, r, 0)),
        compiler_params=_cparams("parallel", "parallel"),
    )(ssum, ssq, x, g_row, b_row, w)


def pallas_seg_ff(x, w1, b1, w2, b2, valid_rows, tr):
    B, Rp, C = x.shape
    H = w1.shape[1]
    nt = Rp // tr
    kern = _make_seg_ff_kernel(valid_rows, tr, nt)
    return pl.pallas_call(
        kern,
        out_shape=(jax.ShapeDtypeStruct((B, Rp, C), ACT_DTYPE),
                   jax.ShapeDtypeStruct((B, 1, C), jnp.float32),
                   jax.ShapeDtypeStruct((B, 1, C), jnp.float32)),
        grid=(B, nt),
        in_specs=[pl.BlockSpec((1, tr, C), lambda b, r: (b, r, 0)),
                  pl.BlockSpec((C, H), lambda b, r: (0, 0)),
                  pl.BlockSpec((1, H), lambda b, r: (0, 0)),
                  pl.BlockSpec((H, C), lambda b, r: (0, 0)),
                  pl.BlockSpec((1, C), lambda b, r: (0, 0))],
        out_specs=(pl.BlockSpec((1, tr, C), lambda b, r: (b, r, 0)),
                   pl.BlockSpec((1, 1, C), lambda b, r: (b, 0, 0)),
                   pl.BlockSpec((1, 1, C), lambda b, r: (b, 0, 0))),
        compiler_params=_cparams("parallel", "arbitrary"),
    )(x, w1, b1, w2, b2)


def pallas_norm_ff(psum, psq, y_prev, skip, g, beta, w1, b1, w2, b2,
                   valid_rows, count, tr):
    B, Rp, C = y_prev.shape
    H = w1.shape[1]
    nt = Rp // tr
    kern = _make_norm_ff_kernel(valid_rows, tr, nt, float(count))
    return pl.pallas_call(
        kern,
        out_shape=(jax.ShapeDtypeStruct((B, Rp, C), ACT_DTYPE),     # z (norm + skip)
                   jax.ShapeDtypeStruct((B, Rp, C), ACT_DTYPE),     # y (new FF out)
                   jax.ShapeDtypeStruct((B, 1, C), jnp.float32),
                   jax.ShapeDtypeStruct((B, 1, C), jnp.float32)),
        grid=(B, nt),
        in_specs=[pl.BlockSpec((1, 1, C), lambda b, r: (b, 0, 0)),
                  pl.BlockSpec((1, 1, C), lambda b, r: (b, 0, 0)),
                  pl.BlockSpec((1, tr, C), lambda b, r: (b, r, 0)),
                  pl.BlockSpec((1, tr, C), lambda b, r: (b, r, 0)),
                  pl.BlockSpec((1, C), lambda b, r: (0, 0)),
                  pl.BlockSpec((1, C), lambda b, r: (0, 0)),
                  pl.BlockSpec((C, H), lambda b, r: (0, 0)),
                  pl.BlockSpec((1, H), lambda b, r: (0, 0)),
                  pl.BlockSpec((H, C), lambda b, r: (0, 0)),
                  pl.BlockSpec((1, C), lambda b, r: (0, 0))],
        out_specs=(pl.BlockSpec((1, tr, C), lambda b, r: (b, r, 0)),
                   pl.BlockSpec((1, tr, C), lambda b, r: (b, r, 0)),
                   pl.BlockSpec((1, 1, C), lambda b, r: (b, 0, 0)),
                   pl.BlockSpec((1, 1, C), lambda b, r: (b, 0, 0))),
        compiler_params=_cparams("parallel", "arbitrary"),
    )(psum, psq, y_prev, skip, g, beta, w1, b1, w2, b2)


def pallas_norm_prelu_conv(psum, psq, y_prev, skip, g, beta, alpha_row,
                           w, bias, count, num_spks, tr):
    B, Rp, C = y_prev.shape
    kern = _make_norm_prelu_conv_kernel(float(count), num_spks, C)
    return pl.pallas_call(
        kern,
        out_shape=jax.ShapeDtypeStruct((B, num_spks, Rp, C), ACT_DTYPE),
        grid=(B, Rp // tr),
        in_specs=[pl.BlockSpec((1, 1, C), lambda b, r: (b, 0, 0)),
                  pl.BlockSpec((1, 1, C), lambda b, r: (b, 0, 0)),
                  pl.BlockSpec((1, tr, C), lambda b, r: (b, r, 0)),
                  pl.BlockSpec((1, tr, C), lambda b, r: (b, r, 0)),
                  pl.BlockSpec((1, C), lambda b, r: (0, 0)),
                  pl.BlockSpec((1, C), lambda b, r: (0, 0)),
                  pl.BlockSpec((1, C), lambda b, r: (0, 0)),
                  pl.BlockSpec((C, num_spks * C), lambda b, r: (0, 0)),
                  pl.BlockSpec((1, num_spks * C), lambda b, r: (0, 0))],
        out_specs=pl.BlockSpec((1, num_spks, tr, C), lambda b, r: (b, 0, r, 0)),
        compiler_params=_cparams("parallel", "parallel"),
    )(psum, psq, y_prev, skip, g, beta, alpha_row, w, bias)


def pallas_gated_output(x, wog, bog, we, tr):
    BS, Rp, C = x.shape
    Cend = we.shape[1]
    kern = _make_gated_kernel(C)
    return pl.pallas_call(
        kern,
        out_shape=jax.ShapeDtypeStruct((BS, Rp, Cend), ACT_DTYPE),
        grid=(BS, Rp // tr),
        in_specs=[pl.BlockSpec((1, tr, C), lambda b, r: (b, r, 0)),
                  pl.BlockSpec((C, 2 * C), lambda b, r: (0, 0)),
                  pl.BlockSpec((1, 2 * C), lambda b, r: (0, 0)),
                  pl.BlockSpec((C, Cend), lambda b, r: (0, 0))],
        out_specs=pl.BlockSpec((1, tr, Cend), lambda b, r: (b, r, 0)),
        compiler_params=_cparams("parallel", "parallel"),
    )(x, wog, bog, we)


# ----------------------------- model forward -------------------------------

def dual_path_model_forward(x, params, K, num_spks, out_channels):
    """x: [B, N_in, L] -> [num_spks, B, N_in, L]."""
    B, Cin, L = x.shape
    cinp = params['conv1d_w'].shape[0]
    coutp = params['conv1d_w'].shape[1]

    # --- single entry layout change: channels-last + lane padding to 128 ---
    x_cl = _pad_lanes(jnp.transpose(x, (0, 2, 1)).astype(ACT_DTYPE), cinp)
    tl, Lp0 = _row_plan(L)
    x_cl = _pad_rows(x_cl, Lp0)                                  # (B, Lp0, cinp)

    # --- GroupNorm('ln') over (Cin, L): tiled stats + fused apply + conv1d ---
    ssum, ssq = pallas_entry_stats(x_cl, tl)
    x_cl = pallas_norm_conv(ssum, ssq, x_cl, params['norm_g'], params['norm_b'],
                            params['conv1d_w'], Cin * L, tl)[:, :L, :]

    # use_global_pos_enc defaults to False -> no positional encoding branch.

    # --- segmentation (channels-last; rows = the two 50%-overlap streams) ---
    P = K // 2
    gap = K - (P + L % K) % K
    xp = jnp.pad(x_cl, ((0, 0), (P, P + gap), (0, 0)))
    Lp = L + gap + 2 * P
    Rh = Lp - P
    R = 2 * Rh                                                   # == K * S
    seg = jnp.concatenate([xp[:, :Rh, :], xp[:, P:, :]], axis=1)
    tr, Rp = _row_plan(R)
    seg = _pad_rows(seg, Rp)

    # --- dual computation blocks as a fused half-layer chain ----------------
    # hl[k]: FF weights of half-layer k plus the norm affine that follows it.
    hl = []
    for lp in params['layers']:
        hl.append(dict(w1=lp['intra_w1'], b1=lp['intra_b1'],
                       w2=lp['intra_w2'], b2=lp['intra_b2'],
                       g=lp['intra_g'], beta=lp['intra_beta']))
        hl.append(dict(w1=lp['inter_w1'], b1=lp['inter_b1'],
                       w2=lp['inter_w2'], b2=lp['inter_b2'],
                       g=lp['inter_g'], beta=lp['inter_beta']))

    count = R * out_channels
    y, s1, s2 = pallas_seg_ff(seg, hl[0]['w1'], hl[0]['b1'],
                              hl[0]['w2'], hl[0]['b2'], R, tr)
    skip = seg
    for k in range(1, len(hl)):
        z, y, s1, s2 = pallas_norm_ff(s1, s2, y, skip,
                                      hl[k - 1]['g'], hl[k - 1]['beta'],
                                      hl[k]['w1'], hl[k]['b1'],
                                      hl[k]['w2'], hl[k]['b2'],
                                      R, count, tr)
        skip = z

    # --- final norm + residual fused with PReLU + 1x1 Conv2d (C->C*spks) ----
    zspk = pallas_norm_prelu_conv(s1, s2, y, skip,
                                  hl[-1]['g'], hl[-1]['beta'],
                                  params['prelu_alpha'], params['conv2d_w'],
                                  params['conv2d_b'], count, num_spks, tr)
    z = zspk.reshape(B * num_spks, Rp, coutp)[:, :R, :]

    # --- overlap-add ---
    y1, y2 = z[:, :Rh, :], z[:, Rh:, :]
    xo = (y1[:, P:, :] + y2[:, :Rh - P, :])[:, :L, :]            # (B*spks, L, coutp)

    # --- tanh(conv) * sigmoid(conv) (merged weights), end conv, ReLU ---
    tg, Lg = _row_plan(L)
    out = pallas_gated_output(_pad_rows(xo, Lg), params['wog'], params['bog'],
                              params['end_w'], tg)
    out = out[:, :L, :Cin].reshape(B, num_spks, L, Cin)
    return jnp.transpose(out, (1, 0, 3, 2)).astype(jnp.float32)  # [spks, B, Cin, L]


# ----------------------------- parameter init ------------------------------

def init_params(key, Cin, Cout, num_layers, num_spks):
    cinp, coutp = _lane_pad(Cin), _lane_pad(Cout)
    keys = iter(jax.random.split(key, 64 + 16 * num_layers))

    def wmat(rr, cc, rp, cp, scale=0.1):
        w = scale * jax.random.normal(next(keys), (rr, cc), dtype=jnp.float32)
        return jnp.pad(w, ((0, rp - rr), (0, cp - cc))).astype(MXU_DTYPE)

    def brow(cc, cp, scale=0.05):
        b = scale * jax.random.normal(next(keys), (cc,), dtype=jnp.float32)
        return jnp.pad(b, (0, cp - cc)).reshape(1, cp)

    def affine_rows(cc, cp):
        g = jnp.pad(jnp.ones((cc,), jnp.float32), (0, cp - cc)).reshape(1, cp)
        return g, jnp.zeros((1, cp), jnp.float32)

    norm_g, norm_b = affine_rows(Cin, cinp)
    conv2d_w = jnp.concatenate([wmat(Cout, Cout, coutp, coutp)
                                for _ in range(num_spks)], axis=1)
    conv2d_b = jnp.concatenate([brow(Cout, coutp) for _ in range(num_spks)], axis=1)
    wog = jnp.concatenate([wmat(Cout, Cout, coutp, coutp),      # output Conv1d
                           wmat(Cout, Cout, coutp, coutp)], axis=1)  # gate Conv1d
    bog = jnp.concatenate([brow(Cout, coutp), brow(Cout, coutp)], axis=1)

    params = {
        'norm_g': norm_g, 'norm_b': norm_b,
        'conv1d_w': wmat(Cin, Cout, cinp, coutp),   # Conv1d(Cin, Cout, 1, bias=False)
        'prelu_alpha': jnp.full((1, coutp), 0.25, jnp.float32),  # nn.PReLU() default
        'conv2d_w': conv2d_w, 'conv2d_b': conv2d_b,  # Conv2d(Cout, Cout*spks, 1)
        'wog': wog, 'bog': bog,                      # output / output_gate merged
        'end_w': wmat(Cout, Cin, coutp, cinp),       # end_conv1x1 (bias=False)
        'layers': [],
    }
    for _ in range(num_layers):
        ig, ib = affine_rows(Cout, coutp)
        eg, eb = affine_rows(Cout, coutp)
        params['layers'].append({
            'intra_w1': wmat(Cout, Cout, coutp, coutp), 'intra_b1': brow(Cout, coutp),
            'intra_w2': wmat(Cout, Cout, coutp, coutp), 'intra_b2': brow(Cout, coutp),
            'intra_g': ig, 'intra_beta': ib,
            'inter_w1': wmat(Cout, Cout, coutp, coutp), 'inter_b1': brow(Cout, coutp),
            'inter_w2': wmat(Cout, Cout, coutp, coutp), 'inter_b2': brow(Cout, coutp),
            'inter_g': eg, 'inter_beta': eb,
        })
    return params


# --------------------------------- main -------------------------------------

if __name__ == "__main__":
    B, Cin, Cout, L = 2, 8, 16, 32
    K, num_spks, num_layers = 8, 2, 2

    key = jax.random.PRNGKey(0)
    kx, kp = jax.random.split(key)
    x = jax.random.normal(kx, (B, Cin, L), dtype=jnp.float32)
    params = init_params(kp, Cin, Cout, num_layers, num_spks)

    fwd = jax.jit(functools.partial(dual_path_model_forward,
                                    K=K, num_spks=num_spks, out_channels=Cout))
    out = jax.block_until_ready(fwd(x, params))

    assert out.shape == (num_spks, B, Cin, L), out.shape
    assert bool(jnp.all(jnp.isfinite(out)))
    assert bool(jnp.all(out >= 0.0))   # final ReLU
    print("KERNEL_OK")
</pallas_src>

<mosaic_0001>
module attributes {stable_mosaic.version = 11 : i64} {
  func.func @_stats_kernel(%arg0: i32, %arg1: i32, %arg2: memref<1x32x128xf32, #tpu.memory_space<vmem>>, %arg3: memref<1x1x128xf32, #tpu.memory_space<vmem>>, %arg4: memref<1x1x128xf32, #tpu.memory_space<vmem>>) attributes {dimension_semantics = [#tpu.dimension_semantics<parallel>, #tpu.dimension_semantics<arbitrary>], iteration_bounds = array<i64: 2, 1>, scalar_prefetch = 0 : i64, scratch_operands = 0 : i64, tpu.core_type = #tpu.core_type<tc>, window_params = [{transform_indices = @transform_0, window_bounds = array<i64: 1, 32, 128>}, {transform_indices = @transform_1, window_bounds = array<i64: 1, 1, 128>}, {transform_indices = @transform_2, window_bounds = array<i64: 1, 1, 128>}]} {
    %c0_i32 = arith.constant 0 : i32
    %0 = arith.cmpi eq, %arg1, %c0_i32 : i32
    %1 = arith.extui %0 : i1 to i32
    %c0_i32_0 = arith.constant 0 : i32
    %2 = arith.cmpi ne, %1, %c0_i32_0 : i32
    scf.if %2 {
      %cst_16 = arith.constant 0.000000e+00 : f32
      %18 = vector.broadcast %cst_16 : f32 to vector<1x1x128xf32>
      %c0_17 = arith.constant 0 : index
      %c0_18 = arith.constant 0 : index
      %c0_19 = arith.constant 0 : index
      %19 = vector.load %arg3[%c0_17, %c0_18, %c0_19] : memref<1x1x128xf32, #tpu.memory_space<vmem>>, vector<1x1x128xf32>
      tpu.vector_store %arg3[%c0_17, %c0_18, %c0_19], %18 {strides = array<i32>} : memref<1x1x128xf32, #tpu.memory_space<vmem>>, vector<1x1x128xf32>,
      %cst_20 = arith.constant 0.000000e+00 : f32
      %20 = vector.broadcast %cst_20 : f32 to vector<1x1x128xf32>
      %c0_21 = arith.constant 0 : index
      %c0_22 = arith.constant 0 : index
      %c0_23 = arith.constant 0 : index
      %21 = vector.load %arg4[%c0_21, %c0_22, %c0_23] : memref<1x1x128xf32, #tpu.memory_space<vmem>>, vector<1x1x128xf32>
      tpu.vector_store %arg4[%c0_21, %c0_22, %c0_23], %20 {strides = array<i32>} : memref<1x1x128xf32, #tpu.memory_space<vmem>>, vector<1x1x128xf32>,
    } else {
    }
    %c0 = arith.constant 0 : index
    %c0_1 = arith.constant 0 : index
    %c0_2 = arith.constant 0 : index
    %3 = vector.load %arg2[%c0, %c0_1, %c0_2] : memref<1x32x128xf32, #tpu.memory_space<vmem>>, vector<1x32x128xf32>
    %4 = vector.shape_cast %3 : vector<1x32x128xf32> to vector<32x128xf32>
    %c0_3 = arith.constant 0 : index
    %c0_4 = arith.constant 0 : index
    %c0_5 = arith.constant 0 : index
    %5 = vector.load %arg3[%c0_3, %c0_4, %c0_5] : memref<1x1x128xf32, #tpu.memory_space<vmem>>, vector<1x1x128xf32>
    %cst = arith.constant dense<0.000000e+00> : vector<128xf32>
    %6 = vector.multi_reduction <add>, %4, %cst [0] : vector<32x128xf32> to vector<128xf32>
    %7 = vector.shape_cast %6 : vector<128xf32> to vector<1x128xf32>
    %8 = vector.shape_cast %7 : vector<1x128xf32> to vector<1x1x128xf32>
    %9 = arith.addf %5, %8 : vector<1x1x128xf32>
    %c0_6 = arith.constant 0 : index
    %c0_7 = arith.constant 0 : index
    %c0_8 = arith.constant 0 : index
    %10 = vector.load %arg3[%c0_6, %c0_7, %c0_8] : memref<1x1x128xf32, #tpu.memory_space<vmem>>, vector<1x1x128xf32>
    tpu.vector_store %arg3[%c0_6, %c0_7, %c0_8], %9 {strides = array<i32>} : memref<1x1x128xf32, #tpu.memory_space<vmem>>, vector<1x1x128xf32>,
    %c0_9 = arith.constant 0 : index
    %c0_10 = arith.constant 0 : index
    %c0_11 = arith.constant 0 : index
    %11 = vector.load %arg4[%c0_9, %c0_10, %c0_11] : memref<1x1x128xf32, #tpu.memory_space<vmem>>, vector<1x1x128xf32>
    %12 = arith.mulf %4, %4 : vector<32x128xf32>
    %cst_12 = arith.constant dense<0.000000e+00> : vector<128xf32>
    %13 = vector.multi_reduction <add>, %12, %cst_12 [0] : vector<32x128xf32> to vector<128xf32>
    %14 = vector.shape_cast %13 : vector<128xf32> to vector<1x128xf32>
    %15 = vector.shape_cast %14 : vector<1x128xf32> to vector<1x1x128xf32>
    %16 = arith.addf %11, %15 : vector<1x1x128xf32>
    %c0_13 = arith.constant 0 : index
    %c0_14 = arith.constant 0 : index
    %c0_15 = arith.constant 0 : index
    %17 = vector.load %arg4[%c0_13, %c0_14, %c0_15] : memref<1x1x128xf32, #tpu.memory_space<vmem>>, vector<1x1x128xf32>
    tpu.vector_store %arg4[%c0_13, %c0_14, %c0_15], %16 {strides = array<i32>} : memref<1x1x128xf32, #tpu.memory_space<vmem>>, vector<1x1x128xf32>,
    return
  }
  func.func @transform_0(%arg0: i32, %arg1: i32) -> (i32, i32, i32) {
    %c0_i32 = arith.constant 0 : i32
    %c0_i32_0 = arith.constant 0 : i32
    return %arg0, %arg1, %c0_i32 : i32, i32, i32
  }
  func.func @transform_1(%arg0: i32, %arg1: i32) -> (i32, i32, i32) {
    %c0_i32 = arith.constant 0 : i32
    %c0_i32_0 = arith.constant 0 : i32
    %c0_i32_1 = arith.constant 0 : i32
    return %arg0, %c0_i32, %c0_i32_0 : i32, i32, i32
  }
  func.func @transform_2(%arg0: i32, %arg1: i32) -> (i32, i32, i32) {
    %c0_i32 = arith.constant 0 : i32
    %c0_i32_0 = arith.constant 0 : i32
    %c0_i32_1 = arith.constant 0 : i32
    return %arg0, %c0_i32, %c0_i32_0 : i32, i32, i32
  }
}

module attributes {stable_mosaic.version = 11 : i64} {
  func.func @kernel(%arg0: i32, %arg1: i32, %arg2: memref<1x1x128xf32, #tpu.memory_space<vmem>>, %arg3: memref<1x1x128xf32, #tpu.memory_space<vmem>>, %arg4: memref<1x32x128xf32, #tpu.memory_space<vmem>>, %arg5: memref<1x128xf32, #tpu.memory_space<vmem>>, %arg6: memref<1x128xf32, #tpu.memory_space<vmem>>, %arg7: memref<128x128xbf16, #tpu.memory_space<vmem>>, %arg8: memref<1x32x128xf32, #tpu.memory_space<vmem>>) attributes {dimension_semantics = [#tpu.dimension_semantics<parallel>, #tpu.dimension_semantics<parallel>], iteration_bounds = array<i64: 2, 1>, scalar_prefetch = 0 : i64, scratch_operands = 0 : i64, tpu.core_type = #tpu.core_type<tc>, window_params = [{transform_indices = @transform_0, window_bounds = array<i64: 1, 1, 128>}, {transform_indices = @transform_1, window_bounds = array<i64: 1, 1, 128>}, {transform_indices = @transform_2, window_bounds = array<i64: 1, 32, 128>}, {pipeline_mode = #tpu.pipeline_mode<synchronous>, transform_indices = @transform_3, window_bounds = array<i64: 1, 128>}, {pipeline_mode = #tpu.pipeline_mode<synchronous>, transform_indices = @transform_4, window_bounds = array<i64: 1, 128>}, {pipeline_mode = #tpu.pipeline_mode<synchronous>, transform_indices = @transform_5, window_bounds = array<i64: 128, 128>}, {transform_indices = @transform_6, window_bounds = array<i64: 1, 32, 128>}]} {
    %c0 = arith.constant 0 : index
    %c0_0 = arith.constant 0 : index
    %c0_1 = arith.constant 0 : index
    %0 = vector.load %arg2[%c0, %c0_0, %c0_1] : memref<1x1x128xf32, #tpu.memory_space<vmem>>, vector<1x1x128xf32>
    %1 = vector.shape_cast %0 : vector<1x1x128xf32> to vector<1x1x1x128xf32>
    %cst = arith.constant dense<0.000000e+00> : vector<1xf32>
    %2 = vector.multi_reduction <add>, %1, %cst [1, 2, 3] : vector<1x1x1x128xf32> to vector<1xf32>
    %3 = vector.shape_cast %2 : vector<1xf32> to vector<1x1x1x1xf32>
    %4 = vector.extract %3[0, 0, 0, 0] : f32 from vector<1x1x1x1xf32>
    %cst_2 = arith.constant 2.560000e+02 : f32
    %5 = arith.divf %4, %cst_2 : f32
    %c0_3 = arith.constant 0 : index
    %c0_4 = arith.constant 0 : index
    %c0_5 = arith.constant 0 : index
    %6 = vector.load %arg3[%c0_3, %c0_4, %c0_5] : memref<1x1x128xf32, #tpu.memory_space<vmem>>, vector<1x1x128xf32>
    %7 = vector.shape_cast %6 : vector<1x1x128xf32> to vector<1x1x1x128xf32>
    %cst_6 = arith.constant dense<0.000000e+00> : vector<1xf32>
    %8 = vector.multi_reduction <add>, %7, %cst_6 [1, 2, 3] : vector<1x1x1x128xf32> to vector<1xf32>
    %9 = vector.shape_cast %8 : vector<1xf32> to vector<1x1x1x1xf32>
    %10 = vector.extract %9[0, 0, 0, 0] : f32 from vector<1x1x1x1xf32>
    %cst_7 = arith.constant 2.560000e+02 : f32
    %11 = arith.divf %10, %cst_7 : f32
    %12 = arith.mulf %5, %5 : f32
    %13 = arith.subf %11, %12 : f32
    %cst_8 = arith.constant 0.000000e+00 : f32
    %14 = arith.maximumf %13, %cst_8 : f32
    %cst_9 = arith.constant 9.99999993E-9 : f32
    %15 = arith.addf %14, %cst_9 : f32
    %16 = math.rsqrt %15 : f32
    %c0_10 = arith.constant 0 : index
    %c0_11 = arith.constant 0 : index
    %17 = vector.load %arg5[%c0_10, %c0_11] : memref<1x128xf32, #tpu.memory_space<vmem>>, vector<1x128xf32>
    %18 = vector.broadcast %16 : f32 to vector<1x128xf32>
    %19 = arith.mulf %18, %17 : vector<1x128xf32>
    %c0_12 = arith.constant 0 : index
    %c0_13 = arith.constant 0 : index
    %20 = vector.load %arg6[%c0_12, %c0_13] : memref<1x128xf32, #tpu.memory_space<vmem>>, vector<1x128xf32>
    %21 = vector.broadcast %5 : f32 to vector<1x128xf32>
    %22 = arith.mulf %21, %19 : vector<1x128xf32>
    %23 = arith.subf %20, %22 : vector<1x128xf32>
    %c0_14 = arith.constant 0 : index
    %c0_15 = arith.constant 0 : index
    %c0_16 = arith.constant 0 : index
    %24 = vector.load %arg4[%c0_14, %c0_15, %c0_16] : memref<1x32x128xf32, #tpu.memory_space<vmem>>, vector<1x32x128xf32>
    %25 = vector.shape_cast %24 : vector<1x32x128xf32> to vector<32x128xf32>
    %26 = vector.broadcast %19 : vector<1x128xf32> to vector<32x128xf32>
    %27 = arith.mulf %25, %26 : vector<32x128xf32>
    %28 = vector.broadcast %23 : vector<1x128xf32> to vector<32x128xf32>
    %29 = arith.addf %27, %28 : vector<32x128xf32>
    %30 = arith.truncf %29 : vector<32x128xf32> to vector<32x128xbf16>
    %c0_17 = arith.constant 0 : index
    %c0_18 = arith.constant 0 : index
    %31 = vector.load %arg7[%c0_17, %c0_18] : memref<128x128xbf16, #tpu.memory_space<vmem>>, vector<128x128xbf16>
    %cst_19 = arith.constant dense<0.000000e+00> : vector<32x128xf32>
    %32 = tpu.matmul %30, %31, %cst_19 {dimension_numbers = #tpu.dot_dimension_numbers<[1], [0], [0], [1], [0, 0, 1, 1], [], []>} : vector<32x128xbf16>, vector<128x128xbf16>, vector<32x128xf32> -> vector<32x128xf32>
    %c0_20 = arith.constant 0 : index
    %c0_21 = arith.constant 0 : index
    %c0_22 = arith.constant 0 : index
    %33 = vector.load %arg8[%c0_20, %c0_21, %c0_22] : memref<1x32x128xf32, #tpu.memory_space<vmem>>, vector<1x32x128xf32>
    %34 = vector.shape_cast %33 : vector<1x32x128xf32> to vector<32x128xf32>
    %35 = vector.shape_cast %32 : vector<32x128xf32> to vector<1x32x128xf32>
    tpu.vector_store %arg8[%c0_20, %c0_21, %c0_22], %35 {strides = array<i32>} : memref<1x32x128xf32, #tpu.memory_space<vmem>>, vector<1x32x128xf32>,
    return
  }
  func.func @transform_0(%arg0: i32, %arg1: i32) -> (i32, i32, i32) {
    %c0_i32 = arith.constant 0 : i32
    %c0_i32_0 = arith.constant 0 : i32
    %c0_i32_1 = arith.constant 0 : i32
    return %arg0, %c0_i32, %c0_i32_0 : i32, i32, i32
  }
  func.func @transform_1(%arg0: i32, %arg1: i32) -> (i32, i32, i32) {
    %c0_i32 = arith.constant 0 : i32
    %c0_i32_0 = arith.constant 0 : i32
    %c0_i32_1 = arith.constant 0 : i32
    return %arg0, %c0_i32, %c0_i32_0 : i32, i32, i32
  }
  func.func @transform_2(%arg0: i32, %arg1: i32) -> (i32, i32, i32) {
    %c0_i32 = arith.constant 0 : i32
    %c0_i32_0 = arith.constant 0 : i32
    return %arg0, %arg1, %c0_i32 : i32, i32, i32
  }
  func.func @transform_3(%arg0: i32, %arg1: i32) -> (i32, i32) {
    %c0_i32 = arith.constant 0 : i32
    %c0_i32_0 = arith.constant 0 : i32
    %c0_i32_1 = arith.constant 0 : i32
    return %c0_i32, %c0_i32_0 : i32, i32
  }
  func.func @transform_4(%arg0: i32, %arg1: i32) -> (i32, i32) {
    %c0_i32 = arith.constant 0 : i32
    %c0_i32_0 = arith.constant 0 : i32
    %c0_i32_1 = arith.constant 0 : i32
    return %c0_i32, %c0_i32_0 : i32, i32
  }
  func.func @transform_5(%arg0: i32, %arg1: i32) -> (i32, i32) {
    %c0_i32 = arith.constant 0 : i32
    %c0_i32_0 = arith.constant 0 : i32
    %c0_i32_1 = arith.constant 0 : i32
    return %c0_i32, %c0_i32_0 : i32, i32
  }
  func.func @transform_6(%arg0: i32, %arg1: i32) -> (i32, i32, i32) {
    %c0_i32 = arith.constant 0 : i32
    %c0_i32_0 = arith.constant 0 : i32
    return %arg0, %arg1, %c0_i32 : i32, i32, i32
  }
}

module attributes {stable_mosaic.version = 11 : i64} {
  func.func @kernel(%arg0: i32, %arg1: i32, %arg2: memref<1x80x128xf32, #tpu.memory_space<vmem>>, %arg3: memref<128x128xbf16, #tpu.memory_space<vmem>>, %arg4: memref<1x128xf32, #tpu.memory_space<vmem>>, %arg5: memref<128x128xbf16, #tpu.memory_space<vmem>>, %arg6: memref<1x128xf32, #tpu.memory_space<vmem>>, %arg7: memref<1x80x128xf32, #tpu.memory_space<vmem>>, %arg8: memref<1x1x128xf32, #tpu.memory_space<vmem>>, %arg9: memref<1x1x128xf32, #tpu.memory_space<vmem>>) attributes {dimension_semantics = [#tpu.dimension_semantics<parallel>, #tpu.dimension_semantics<arbitrary>], iteration_bounds = array<i64: 2, 1>, scalar_prefetch = 0 : i64, scratch_operands = 0 : i64, tpu.core_type = #tpu.core_type<tc>, window_params = [{transform_indices = @transform_0, window_bounds = array<i64: 1, 80, 128>}, {pipeline_mode = #tpu.pipeline_mode<synchronous>, transform_indices = @transform_1, window_bounds = array<i64: 128, 128>}, {pipeline_mode = #tpu.pipeline_mode<synchronous>, transform_indices = @transform_2, window_bounds = array<i64: 1, 128>}, {pipeline_mode = #tpu.pipeline_mode<synchronous>, transform_indices = @transform_3, window_bounds = array<i64: 128, 128>}, {pipeline_mode = #tpu.pipeline_mode<synchronous>, transform_indices = @transform_4, window_bounds = array<i64: 1, 128>}, {transform_indices = @transform_5, window_bounds = array<i64: 1, 80, 128>}, {transform_indices = @transform_6, window_bounds = array<i64: 1, 1, 128>}, {transform_indices = @transform_7, window_bounds = array<i64: 1, 1, 128>}]} {
    %c0_i32 = arith.constant 0 : i32
    %0 = arith.cmpi eq, %arg1, %c0_i32 : i32
    %1 = arith.extui %0 : i1 to i32
    %c0_i32_0 = arith.constant 0 : i32
    %2 = arith.cmpi ne, %1, %c0_i32_0 : i32
    scf.if %2 {
      %cst_30 = arith.constant 0.000000e+00 : f32
      %35 = vector.broadcast %cst_30 : f32 to vector<1x1x128xf32>
      %c0_31 = arith.constant 0 : index
      %c0_32 = arith.constant 0 : index
      %c0_33 = arith.constant 0 : index
      %36 = vector.load %arg8[%c0_31, %c0_32, %c0_33] : memref<1x1x128xf32, #tpu.memory_space<vmem>>, vector<1x1x128xf32>
      tpu.vector_store %arg8[%c0_31, %c0_32, %c0_33], %35 {strides = array<i32>} : memref<1x1x128xf32, #tpu.memory_space<vmem>>, vector<1x1x128xf32>,
      %cst_34 = arith.constant 0.000000e+00 : f32
      %37 = vector.broadcast %cst_34 : f32 to vector<1x1x128xf32>
      %c0_35 = arith.constant 0 : index
      %c0_36 = arith.constant 0 : index
      %c0_37 = arith.constant 0 : index
      %38 = vector.load %arg9[%c0_35, %c0_36, %c0_37] : memref<1x1x128xf32, #tpu.memory_space<vmem>>, vector<1x1x128xf32>
      tpu.vector_store %arg9[%c0_35, %c0_36, %c0_37], %37 {strides = array<i32>} : memref<1x1x128xf32, #tpu.memory_space<vmem>>, vector<1x1x128xf32>,
    } else {
    }
    %c0 = arith.constant 0 : index
    %c0_1 = arith.constant 0 : index
    %c0_2 = arith.constant 0 : index
    %3 = vector.load %arg2[%c0, %c0_1, %c0_2] : memref<1x80x128xf32, #tpu.memory_space<vmem>>, vector<1x80x128xf32>
    %4 = vector.shape_cast %3 : vector<1x80x128xf32> to vector<80x128xf32>
    %5 = arith.truncf %4 : vector<80x128xf32> to vector<80x128xbf16>
    %c0_3 = arith.constant 0 : index
    %c0_4 = arith.constant 0 : index
    %6 = vector.load %arg3[%c0_3, %c0_4] : memref<128x128xbf16, #tpu.memory_space<vmem>>, vector<128x128xbf16>
    %cst = arith.constant dense<0.000000e+00> : vector<80x128xf32>
    %7 = tpu.matmul %5, %6, %cst {dimension_numbers = #tpu.dot_dimension_numbers<[1], [0], [0], [1], [0, 0, 1, 1], [], []>} : vector<80x128xbf16>, vector<128x128xbf16>, vector<80x128xf32> -> vector<80x128xf32>
    %c0_5 = arith.constant 0 : index
    %c0_6 = arith.constant 0 : index
    %8 = vector.load %arg4[%c0_5, %c0_6] : memref<1x128xf32, #tpu.memory_space<vmem>>, vector<1x128xf32>
    %9 = vector.broadcast %8 : vector<1x128xf32> to vector<80x128xf32>
    %10 = arith.addf %7, %9 : vector<80x128xf32>
    %cst_7 = arith.constant 0.000000e+00 : f32
    %11 = vector.broadcast %cst_7 : f32 to vector<80x128xf32>
    %12 = arith.maximumf %10, %11 : vector<80x128xf32>
    %13 = arith.truncf %12 : vector<80x128xf32> to vector<80x128xbf16>
    %c0_8 = arith.constant 0 : index
    %c0_9 = arith.constant 0 : index
    %14 = vector.load %arg5[%c0_8, %c0_9] : memref<128x128xbf16, #tpu.memory_space<vmem>>, vector<128x128xbf16>
    %cst_10 = arith.constant dense<0.000000e+00> : vector<80x128xf32>
    %15 = tpu.matmul %13, %14, %cst_10 {dimension_numbers = #tpu.dot_dimension_numbers<[1], [0], [0], [1], [0, 0, 1, 1], [], []>} : vector<80x128xbf16>, vector<128x128xbf16>, vector<80x128xf32> -> vector<80x128xf32>
    %c0_11 = arith.constant 0 : index
    %c0_12 = arith.constant 0 : index
    %16 = vector.load %arg6[%c0_11, %c0_12] : memref<1x128xf32, #tpu.memory_space<vmem>>, vector<1x128xf32>
    %17 = vector.broadcast %16 : vector<1x128xf32> to vector<80x128xf32>
    %18 = arith.addf %15, %17 : vector<80x128xf32>
    %c0_13 = arith.constant 0 : index
    %c0_14 = arith.constant 0 : index
    %c0_15 = arith.constant 0 : index
    %19 = vector.load %arg7[%c0_13, %c0_14, %c0_15] : memref<1x80x128xf32, #tpu.memory_space<vmem>>, vector<1x80x128xf32>
    %20 = vector.shape_cast %19 : vector<1x80x128xf32> to vector<80x128xf32>
    %21 = vector.shape_cast %18 : vector<80x128xf32> to vector<1x80x128xf32>
    tpu.vector_store %arg7[%c0_13, %c0_14, %c0_15], %21 {strides = array<i32>} : memref<1x80x128xf32, #tpu.memory_space<vmem>>, vector<1x80x128xf32>,
    %c0_16 = arith.constant 0 : index
    %c0_17 = arith.constant 0 : index
    %c0_18 = arith.constant 0 : index
    %22 = vector.load %arg8[%c0_16, %c0_17, %c0_18] : memref<1x1x128xf32, #tpu.memory_space<vmem>>, vector<1x1x128xf32>
    %cst_19 = arith.constant dense<0.000000e+00> : vector<128xf32>
    %23 = vector.multi_reduction <add>, %18, %cst_19 [0] : vector<80x128xf32> to vector<128xf32>
    %24 = vector.shape_cast %23 : vector<128xf32> to vector<1x128xf32>
    %25 = vector.shape_cast %24 : vector<1x128xf32> to vector<1x1x128xf32>
    %26 = arith.addf %22, %25 : vector<1x1x128xf32>
    %c0_20 = arith.constant 0 : index
    %c0_21 = arith.constant 0 : index
    %c0_22 = arith.constant 0 : index
    %27 = vector.load %arg8[%c0_20, %c0_21, %c0_22] : memref<1x1x128xf32, #tpu.memory_space<vmem>>, vector<1x1x128xf32>
    tpu.vector_store %arg8[%c0_20, %c0_21, %c0_22], %26 {strides = array<i32>} : memref<1x1x128xf32, #tpu.memory_space<vmem>>, vector<1x1x128xf32>,
    %c0_23 = arith.constant 0 : index
    %c0_24 = arith.constant 0 : index
    %c0_25 = arith.constant 0 : index
    %28 = vector.load %arg9[%c0_23, %c0_24, %c0_25] : memref<1x1x128xf32, #tpu.memory_space<vmem>>, vector<1x1x128xf32>
    %29 = arith.mulf %18, %18 : vector<80x128xf32>
    %cst_26 = arith.constant dense<0.000000e+00> : vector<128xf32>
    %30 = vector.multi_reduction <add>, %29, %cst_26 [0] : vector<80x128xf32> to vector<128xf32>
    %31 = vector.shape_cast %30 : vector<128xf32> to vector<1x128xf32>
    %32 = vector.shape_cast %31 : vector<1x128xf32> to vector<1x1x128xf32>
    %33 = arith.addf %28, %32 : vector<1x1x128xf32>
    %c0_27 = arith.constant 0 : index
    %c0_28 = arith.constant 0 : index
    %c0_29 = arith.constant 0 : index
    %34 = vector.load %arg9[%c0_27, %c0_28, %c0_29] : memref<1x1x128xf32, #tpu.memory_space<vmem>>, vector<1x1x128xf32>
    tpu.vector_store %arg9[%c0_27, %c0_28, %c0_29], %33 {strides = array<i32>} : memref<1x1x128xf32, #tpu.memory_space<vmem>>, vector<1x1x128xf32>,
    return
  }
  func.func @transform_0(%arg0: i32, %arg1: i32) -> (i32, i32, i32) {
    %c0_i32 = arith.constant 0 : i32
    %c0_i32_0 = arith.constant 0 : i32
    return %arg0, %arg1, %c0_i32 : i32, i32, i32
  }
  func.func @transform_1(%arg0: i32, %arg1: i32) -> (i32, i32) {
    %c0_i32 = arith.constant 0 : i32
    %c0_i32_0 = arith.constant 0 : i32
    %c0_i32_1 = arith.constant 0 : i32
    return %c0_i32, %c0_i32_0 : i32, i32
  }
  func.func @transform_2(%arg0: i32, %arg1: i32) -> (i32, i32) {
    %c0_i32 = arith.constant 0 : i32
    %c0_i32_0 = arith.constant 0 : i32
    %c0_i32_1 = arith.constant 0 : i32
    return %c0_i32, %c0_i32_0 : i32, i32
  }
  func.func @transform_3(%arg0: i32, %arg1: i32) -> (i32, i32) {
    %c0_i32 = arith.constant 0 : i32
    %c0_i32_0 = arith.constant 0 : i32
    %c0_i32_1 = arith.constant 0 : i32
    return %c0_i32, %c0_i32_0 : i32, i32
  }
  func.func @transform_4(%arg0: i32, %arg1: i32) -> (i32, i32) {
    %c0_i32 = arith.constant 0 : i32
    %c0_i32_0 = arith.constant 0 : i32
    %c0_i32_1 = arith.constant 0 : i32
    return %c0_i32, %c0_i32_0 : i32, i32
  }
  func.func @transform_5(%arg0: i32, %arg1: i32) -> (i32, i32, i32) {
    %c0_i32 = arith.constant 0 : i32
    %c0_i32_0 = arith.constant 0 : i32
    return %arg0, %arg1, %c0_i32 : i32, i32, i32
  }
  func.func @transform_6(%arg0: i32, %arg1: i32) -> (i32, i32, i32) {
    %c0_i32 = arith.constant 0 : i32
    %c0_i32_0 = arith.constant 0 : i32
    %c0_i32_1 = arith.constant 0 : i32
    return %arg0, %c0_i32, %c0_i32_0 : i32, i32, i32
  }
  func.func @transform_7(%arg0: i32, %arg1: i32) -> (i32, i32, i32) {
    %c0_i32 = arith.constant 0 : i32
    %c0_i32_0 = arith.constant 0 : i32
    %c0_i32_1 = arith.constant 0 : i32
    return %arg0, %c0_i32, %c0_i32_0 : i32, i32, i32
  }
}

module attributes {stable_mosaic.version = 11 : i64} {
  func.func @kernel(%arg0: i32, %arg1: i32, %arg2: memref<1x1x128xf32, #tpu.memory_space<vmem>>, %arg3: memref<1x1x128xf32, #tpu.memory_space<vmem>>, %arg4: memref<1x80x128xf32, #tpu.memory_space<vmem>>, %arg5: memref<1x80x128xf32, #tpu.memory_space<vmem>>, %arg6: memref<1x128xf32, #tpu.memory_space<vmem>>, %arg7: memref<1x128xf32, #tpu.memory_space<vmem>>, %arg8: memref<1x128xf32, #tpu.memory_space<vmem>>, %arg9: memref<128x256xbf16, #tpu.memory_space<vmem>>, %arg10: memref<1x256xf32, #tpu.memory_space<vmem>>, %arg11: memref<1x2x80x128xf32, #tpu.memory_space<vmem>>) attributes {dimension_semantics = [#tpu.dimension_semantics<parallel>, #tpu.dimension_semantics<parallel>], iteration_bounds = array<i64: 2, 1>, scalar_prefetch = 0 : i64, scratch_operands = 0 : i64, tpu.core_type = #tpu.core_type<tc>, window_params = [{transform_indices = @transform_0, window_bounds = array<i64: 1, 1, 128>}, {transform_indices = @transform_1, window_bounds = array<i64: 1, 1, 128>}, {transform_indices = @transform_2, window_bounds = array<i64: 1, 80, 128>}, {transform_indices = @transform_3, window_bounds = array<i64: 1, 80, 128>}, {pipeline_mode = #tpu.pipeline_mode<synchronous>, transform_indices = @transform_4, window_bounds = array<i64: 1, 128>}, {pipeline_mode = #tpu.pipeline_mode<synchronous>, transform_indices = @transform_5, window_bounds = array<i64: 1, 128>}, {pipeline_mode = #tpu.pipeline_mode<synchronous>, transform_indices = @transform_6, window_bounds = array<i64: 1, 128>}, {pipeline_mode = #tpu.pipeline_mode<synchronous>, transform_indices = @transform_7, window_bounds = array<i64: 128, 256>}, {pipeline_mode = #tpu.pipeline_mode<synchronous>, transform_indices = @transform_8, window_bounds = array<i64: 1, 256>}, {transform_indices = @transform_9, window_bounds = array<i64: 1, 2, 80, 128>}]} {
    %c0 = arith.constant 0 : index
    %c0_0 = arith.constant 0 : index
    %c0_1 = arith.constant 0 : index
    %0 = vector.load %arg2[%c0, %c0_0, %c0_1] : memref<1x1x128xf32, #tpu.memory_space<vmem>>, vector<1x1x128xf32>
    %1 = vector.shape_cast %0 : vector<1x1x128xf32> to vector<1x1x1x128xf32>
    %cst = arith.constant dense<0.000000e+00> : vector<1xf32>
    %2 = vector.multi_reduction <add>, %1, %cst [1, 2, 3] : vector<1x1x1x128xf32> to vector<1xf32>
    %3 = vector.shape_cast %2 : vector<1xf32> to vector<1x1x1x1xf32>
    %4 = vector.extract %3[0, 0, 0, 0] : f32 from vector<1x1x1x1xf32>
    %cst_2 = arith.constant 1.280000e+03 : f32
    %5 = arith.divf %4, %cst_2 : f32
    %c0_3 = arith.constant 0 : index
    %c0_4 = arith.constant 0 : index
    %c0_5 = arith.constant 0 : index
    %6 = vector.load %arg3[%c0_3, %c0_4, %c0_5] : memref<1x1x128xf32, #tpu.memory_space<vmem>>, vector<1x1x128xf32>
    %7 = vector.shape_cast %6 : vector<1x1x128xf32> to vector<1x1x1x128xf32>
    %cst_6 = arith.constant dense<0.000000e+00> : vector<1xf32>
    %8 = vector.multi_reduction <add>, %7, %cst_6 [1, 2, 3] : vector<1x1x1x128xf32> to vector<1xf32>
    %9 = vector.shape_cast %8 : vector<1xf32> to vector<1x1x1x1xf32>
    %10 = vector.extract %9[0, 0, 0, 0] : f32 from vector<1x1x1x1xf32>
    %cst_7 = arith.constant 1.280000e+03 : f32
    %11 = arith.divf %10, %cst_7 : f32
    %12 = arith.mulf %5, %5 : f32
    %13 = arith.subf %11, %12 : f32
    %cst_8 = arith.constant 0.000000e+00 : f32
    %14 = arith.maximumf %13, %cst_8 : f32
    %cst_9 = arith.constant 9.99999993E-9 : f32
    %15 = arith.addf %14, %cst_9 : f32
    %16 = math.rsqrt %15 : f32
    %c0_10 = arith.constant 0 : index
    %c0_11 = arith.constant 0 : index
    %17 = vector.load %arg6[%c0_10, %c0_11] : memref<1x128xf32, #tpu.memory_space<vmem>>, vector<1x128xf32>
    %18 = vector.broadcast %16 : f32 to vector<1x128xf32>
    %19 = arith.mulf %18, %17 : vector<1x128xf32>
    %c0_12 = arith.constant 0 : index
    %c0_13 = arith.constant 0 : index
    %20 = vector.load %arg7[%c0_12, %c0_13] : memref<1x128xf32, #tpu.memory_space<vmem>>, vector<1x128xf32>
    %21 = vector.broadcast %5 : f32 to vector<1x128xf32>
    %22 = arith.mulf %21, %19 : vector<1x128xf32>
    %23 = arith.subf %20, %22 : vector<1x128xf32>
    %c0_14 = arith.constant 0 : index
    %c0_15 = arith.constant 0 : index
    %c0_16 = arith.constant 0 : index
    %24 = vector.load %arg4[%c0_14, %c0_15, %c0_16] : memref<1x80x128xf32, #tpu.memory_space<vmem>>, vector<1x80x128xf32>
    %25 = vector.shape_cast %24 : vector<1x80x128xf32> to vector<80x128xf32>
    %26 = vector.broadcast %19 : vector<1x128xf32> to vector<80x128xf32>
    %27 = arith.mulf %25, %26 : vector<80x128xf32>
    %28 = vector.broadcast %23 : vector<1x128xf32> to vector<80x128xf32>
    %29 = arith.addf %27, %28 : vector<80x128xf32>
    %c0_17 = arith.constant 0 : index
    %c0_18 = arith.constant 0 : index
    %c0_19 = arith.constant 0 : index
    %30 = vector.load %arg5[%c0_17, %c0_18, %c0_19] : memref<1x80x128xf32, #tpu.memory_space<vmem>>, vector<1x80x128xf32>
    %31 = vector.shape_cast %30 : vector<1x80x128xf32> to vector<80x128xf32>
    %32 = arith.addf %29, %31 : vector<80x128xf32>
    %cst_20 = arith.constant 0.000000e+00 : f32
    %33 = vector.broadcast %cst_20 : f32 to vector<80x128xf32>
    %34 = arith.cmpf oge, %32, %33 : vector<80x128xf32>
    %c0_21 = arith.constant 0 : index
    %c0_22 = arith.constant 0 : index
    %35 = vector.load %arg8[%c0_21, %c0_22] : memref<1x128xf32, #tpu.memory_space<vmem>>, vector<1x128xf32>
    %36 = vector.broadcast %35 : vector<1x128xf32> to vector<80x128xf32>
    %37 = arith.mulf %32, %36 : vector<80x128xf32>
    %38 = arith.select %34, %32, %37 : vector<80x128xi1>, vector<80x128xf32>
    %39 = arith.truncf %38 : vector<80x128xf32> to vector<80x128xbf16>
    %c0_23 = arith.constant 0 : index
    %c0_24 = arith.constant 0 : index
    %40 = vector.load %arg9[%c0_23, %c0_24] : memref<128x256xbf16, #tpu.memory_space<vmem>>, vector<128x256xbf16>
    %cst_25 = arith.constant dense<0.000000e+00> : vector<80x256xf32>
    %41 = tpu.matmul %39, %40, %cst_25 {dimension_numbers = #tpu.dot_dimension_numbers<[1], [0], [0], [1], [0, 0, 1, 1], [], []>} : vector<80x128xbf16>, vector<128x256xbf16>, vector<80x256xf32> -> vector<80x256xf32>
    %c0_26 = arith.constant 0 : index
    %c0_27 = arith.constant 0 : index
    %42 = vector.load %arg10[%c0_26, %c0_27] : memref<1x256xf32, #tpu.memory_space<vmem>>, vector<1x256xf32>
    %43 = vector.broadcast %42 : vector<1x256xf32> to vector<80x256xf32>
    %44 = arith.addf %41, %43 : vector<80x256xf32>
    %45 = vector.extract_strided_slice %44 {offsets = [0, 0], sizes = [80, 128], strides = [1, 1]} : vector<80x256xf32> to vector<80x128xf32>
    %c0_28 = arith.constant 0 : index
    %c0_29 = arith.constant 0 : index
    %c0_30 = arith.constant 0 : index
    %c0_31 = arith.constant 0 : index
    %46 = vector.load %arg11[%c0_28, %c0_29, %c0_30, %c0_31] : memref<1x2x80x128xf32, #tpu.memory_space<vmem>>, vector<1x1x80x128xf32>
    %47 = vector.shape_cast %46 : vector<1x1x80x128xf32> to vector<80x128xf32>
    %48 = vector.shape_cast %45 : vector<80x128xf32> to vector<1x1x80x128xf32>
    tpu.vector_store %arg11[%c0_28, %c0_29, %c0_30, %c0_31], %48 {strides = array<i32>} : memref<1x2x80x128xf32, #tpu.memory_space<vmem>>, vector<1x1x80x128xf32>,
    %49 = vector.extract_strided_slice %44 {offsets = [0, 128], sizes = [80, 128], strides = [1, 1]} : vector<80x256xf32> to vector<80x128xf32>
    %c0_32 = arith.constant 0 : index
    %c1 = arith.constant 1 : index
    %c0_33 = arith.constant 0 : index
    %c0_34 = arith.constant 0 : index
    %50 = vector.load %arg11[%c0_32, %c1, %c0_33, %c0_34] : memref<1x2x80x128xf32, #tpu.memory_space<vmem>>, vector<1x1x80x128xf32>
    %51 = vector.shape_cast %50 : vector<1x1x80x128xf32> to vector<80x128xf32>
    %52 = vector.shape_cast %49 : vector<80x128xf32> to vector<1x1x80x128xf32>
    tpu.vector_store %arg11[%c0_32, %c1, %c0_33, %c0_34], %52 {strides = array<i32>} : memref<1x2x80x128xf32, #tpu.memory_space<vmem>>, vector<1x1x80x128xf32>,
    return
  }
  func.func @transform_0(%arg0: i32, %arg1: i32) -> (i32, i32, i32) {
    %c0_i32 = arith.constant 0 : i32
    %c0_i32_0 = arith.constant 0 : i32
    %c0_i32_1 = arith.constant 0 : i32
    return %arg0, %c0_i32, %c0_i32_0 : i32, i32, i32
  }
  func.func @transform_1(%arg0: i32, %arg1: i32) -> (i32, i32, i32) {
    %c0_i32 = arith.constant 0 : i32
    %c0_i32_0 = arith.constant 0 : i32
    %c0_i32_1 = arith.constant 0 : i32
    return %arg0, %c0_i32, %c0_i32_0 : i32, i32, i32
  }
  func.func @transform_2(%arg0: i32, %arg1: i32) -> (i32, i32, i32) {
    %c0_i32 = arith.constant 0 : i32
    %c0_i32_0 = arith.constant 0 : i32
    return %arg0, %arg1, %c0_i32 : i32, i32, i32
  }
  func.func @transform_3(%arg0: i32, %arg1: i32) -> (i32, i32, i32) {
    %c0_i32 = arith.constant 0 : i32
    %c0_i32_0 = arith.constant 0 : i32
    return %arg0, %arg1, %c0_i32 : i32, i32, i32
  }
  func.func @transform_4(%arg0: i32, %arg1: i32) -> (i32, i32) {
    %c0_i32 = arith.constant 0 : i32
    %c0_i32_0 = arith.constant 0 : i32
    %c0_i32_1 = arith.constant 0 : i32
    return %c0_i32, %c0_i32_0 : i32, i32
  }
  func.func @transform_5(%arg0: i32, %arg1: i32) -> (i32, i32) {
    %c0_i32 = arith.constant 0 : i32
    %c0_i32_0 = arith.constant 0 : i32
    %c0_i32_1 = arith.constant 0 : i32
    return %c0_i32, %c0_i32_0 : i32, i32
  }
  func.func @transform_6(%arg0: i32, %arg1: i32) -> (i32, i32) {
    %c0_i32 = arith.constant 0 : i32
    %c0_i32_0 = arith.constant 0 : i32
    %c0_i32_1 = arith.constant 0 : i32
    return %c0_i32, %c0_i32_0 : i32, i32
  }
  func.func @transform_7(%arg0: i32, %arg1: i32) -> (i32, i32) {
    %c0_i32 = arith.constant 0 : i32
    %c0_i32_0 = arith.constant 0 : i32
    %c0_i32_1 = arith.constant 0 : i32
    return %c0_i32, %c0_i32_0 : i32, i32
  }
  func.func @transform_8(%arg0: i32, %arg1: i32) -> (i32, i32) {
    %c0_i32 = arith.constant 0 : i32
    %c0_i32_0 = arith.constant 0 : i32
    %c0_i32_1 = arith.constant 0 : i32
    return %c0_i32, %c0_i32_0 : i32, i32
  }
  func.func @transform_9(%arg0: i32, %arg1: i32) -> (i32, i32, i32, i32) {
    %c0_i32 = arith.constant 0 : i32
    %c0_i32_0 = arith.constant 0 : i32
    %c0_i32_1 = arith.constant 0 : i32
    return %arg0, %c0_i32, %arg1, %c0_i32_0 : i32, i32, i32, i32
  }
}

module attributes {stable_mosaic.version = 11 : i64} {
  func.func @kernel(%arg0: i32, %arg1: i32, %arg2: memref<1x1x128xf32, #tpu.memory_space<vmem>>, %arg3: memref<1x1x128xf32, #tpu.memory_space<vmem>>, %arg4: memref<1x80x128xf32, #tpu.memory_space<vmem>>, %arg5: memref<1x80x128xf32, #tpu.memory_space<vmem>>, %arg6: memref<1x128xf32, #tpu.memory_space<vmem>>, %arg7: memref<1x128xf32, #tpu.memory_space<vmem>>, %arg8: memref<128x128xbf16, #tpu.memory_space<vmem>>, %arg9: memref<1x128xf32, #tpu.memory_space<vmem>>, %arg10: memref<128x128xbf16, #tpu.memory_space<vmem>>, %arg11: memref<1x128xf32, #tpu.memory_space<vmem>>, %arg12: memref<1x80x128xf32, #tpu.memory_space<vmem>>, %arg13: memref<1x80x128xf32, #tpu.memory_space<vmem>>, %arg14: memref<1x1x128xf32, #tpu.memory_space<vmem>>, %arg15: memref<1x1x128xf32, #tpu.memory_space<vmem>>) attributes {dimension_semantics = [#tpu.dimension_semantics<parallel>, #tpu.dimension_semantics<arbitrary>], iteration_bounds = array<i64: 2, 1>, scalar_prefetch = 0 : i64, scratch_operands = 0 : i64, tpu.core_type = #tpu.core_type<tc>, window_params = [{transform_indices = @transform_0, window_bounds = array<i64: 1, 1, 128>}, {transform_indices = @transform_1, window_bounds = array<i64: 1, 1, 128>}, {transform_indices = @transform_2, window_bounds = array<i64: 1, 80, 128>}, {transform_indices = @transform_3, window_bounds = array<i64: 1, 80, 128>}, {pipeline_mode = #tpu.pipeline_mode<synchronous>, transform_indices = @transform_4, window_bounds = array<i64: 1, 128>}, {pipeline_mode = #tpu.pipeline_mode<synchronous>, transform_indices = @transform_5, window_bounds = array<i64: 1, 128>}, {pipeline_mode = #tpu.pipeline_mode<synchronous>, transform_indices = @transform_6, window_bounds = array<i64: 128, 128>}, {pipeline_mode = #tpu.pipeline_mode<synchronous>, transform_indices = @transform_7, window_bounds = array<i64: 1, 128>}, {pipeline_mode = #tpu.pipeline_mode<synchronous>, transform_indices = @transform_8, window_bounds = array<i64: 128, 128>}, {pipeline_mode = #tpu.pipeline_mode<synchronous>, transform_indices = @transform_9, window_bounds = array<i64: 1, 128>}, {transform_indices = @transform_10, window_bounds = array<i64: 1, 80, 128>}, {transform_indices = @transform_11, window_bounds = array<i64: 1, 80, 128>}, {transform_indices = @transform_12, window_bounds = array<i64: 1, 1, 128>}, {transform_indices = @transform_13, window_bounds = array<i64: 1, 1, 128>}]} {
    %c0_i32 = arith.constant 0 : i32
    %0 = arith.cmpi eq, %arg1, %c0_i32 : i32
    %1 = arith.extui %0 : i1 to i32
    %c0_i32_0 = arith.constant 0 : i32
    %2 = arith.cmpi ne, %1, %c0_i32_0 : i32
    scf.if %2 {
      %cst_52 = arith.constant 0.000000e+00 : f32
      %69 = vector.broadcast %cst_52 : f32 to vector<1x1x128xf32>
      %c0_53 = arith.constant 0 : index
      %c0_54 = arith.constant 0 : index
      %c0_55 = arith.constant 0 : index
      %70 = vector.load %arg14[%c0_53, %c0_54, %c0_55] : memref<1x1x128xf32, #tpu.memory_space<vmem>>, vector<1x1x128xf32>
      tpu.vector_store %arg14[%c0_53, %c0_54, %c0_55], %69 {strides = array<i32>} : memref<1x1x128xf32, #tpu.memory_space<vmem>>, vector<1x1x128xf32>,
      %cst_56 = arith.constant 0.000000e+00 : f32
      %71 = vector.broadcast %cst_56 : f32 to vector<1x1x128xf32>
      %c0_57 = arith.constant 0 : index
      %c0_58 = arith.constant 0 : index
      %c0_59 = arith.constant 0 : index
      %72 = vector.load %arg15[%c0_57, %c0_58, %c0_59] : memref<1x1x128xf32, #tpu.memory_space<vmem>>, vector<1x1x128xf32>
      tpu.vector_store %arg15[%c0_57, %c0_58, %c0_59], %71 {strides = array<i32>} : memref<1x1x128xf32, #tpu.memory_space<vmem>>, vector<1x1x128xf32>,
    } else {
    }
    %c0 = arith.constant 0 : index
    %c0_1 = arith.constant 0 : index
    %c0_2 = arith.constant 0 : index
    %3 = vector.load %arg2[%c0, %c0_1, %c0_2] : memref<1x1x128xf32, #tpu.memory_space<vmem>>, vector<1x1x128xf32>
    %4 = vector.shape_cast %3 : vector<1x1x128xf32> to vector<1x1x1x128xf32>
    %cst = arith.constant dense<0.000000e+00> : vector<1xf32>
    %5 = vector.multi_reduction <add>, %4, %cst [1, 2, 3] : vector<1x1x1x128xf32> to vector<1xf32>
    %6 = vector.shape_cast %5 : vector<1xf32> to vector<1x1x1x1xf32>
    %7 = vector.extract %6[0, 0, 0, 0] : f32 from vector<1x1x1x1xf32>
    %cst_3 = arith.constant 1.280000e+03 : f32
    %8 = arith.divf %7, %cst_3 : f32
    %c0_4 = arith.constant 0 : index
    %c0_5 = arith.constant 0 : index
    %c0_6 = arith.constant 0 : index
    %9 = vector.load %arg3[%c0_4, %c0_5, %c0_6] : memref<1x1x128xf32, #tpu.memory_space<vmem>>, vector<1x1x128xf32>
    %10 = vector.shape_cast %9 : vector<1x1x128xf32> to vector<1x1x1x128xf32>
    %cst_7 = arith.constant dense<0.000000e+00> : vector<1xf32>
    %11 = vector.multi_reduction <add>, %10, %cst_7 [1, 2, 3] : vector<1x1x1x128xf32> to vector<1xf32>
    %12 = vector.shape_cast %11 : vector<1xf32> to vector<1x1x1x1xf32>
    %13 = vector.extract %12[0, 0, 0, 0] : f32 from vector<1x1x1x1xf32>
    %cst_8 = arith.constant 1.280000e+03 : f32
    %14 = arith.divf %13, %cst_8 : f32
    %15 = arith.mulf %8, %8 : f32
    %16 = arith.subf %14, %15 : f32
    %cst_9 = arith.constant 0.000000e+00 : f32
    %17 = arith.maximumf %16, %cst_9 : f32
    %cst_10 = arith.constant 9.99999993E-9 : f32
    %18 = arith.addf %17, %cst_10 : f32
    %19 = math.rsqrt %18 : f32
    %c0_11 = arith.constant 0 : index
    %c0_12 = arith.constant 0 : index
    %20 = vector.load %arg6[%c0_11, %c0_12] : memref<1x128xf32, #tpu.memory_space<vmem>>, vector<1x128xf32>
    %21 = vector.broadcast %19 : f32 to vector<1x128xf32>
    %22 = arith.mulf %21, %20 : vector<1x128xf32>
    %c0_13 = arith.constant 0 : index
    %c0_14 = arith.constant 0 : index
    %23 = vector.load %arg7[%c0_13, %c0_14] : memref<1x128xf32, #tpu.memory_space<vmem>>, vector<1x128xf32>
    %24 = vector.broadcast %8 : f32 to vector<1x128xf32>
    %25 = arith.mulf %24, %22 : vector<1x128xf32>
    %26 = arith.subf %23, %25 : vector<1x128xf32>
    %c0_15 = arith.constant 0 : index
    %c0_16 = arith.constant 0 : index
    %c0_17 = arith.constant 0 : index
    %27 = vector.load %arg4[%c0_15, %c0_16, %c0_17] : memref<1x80x128xf32, #tpu.memory_space<vmem>>, vector<1x80x128xf32>
    %28 = vector.shape_cast %27 : vector<1x80x128xf32> to vector<80x128xf32>
    %29 = vector.broadcast %22 : vector<1x128xf32> to vector<80x128xf32>
    %30 = arith.mulf %28, %29 : vector<80x128xf32>
    %31 = vector.broadcast %26 : vector<1x128xf32> to vector<80x128xf32>
    %32 = arith.addf %30, %31 : vector<80x128xf32>
    %c0_18 = arith.constant 0 : index
    %c0_19 = arith.constant 0 : index
    %c0_20 = arith.constant 0 : index
    %33 = vector.load %arg5[%c0_18, %c0_19, %c0_20] : memref<1x80x128xf32, #tpu.memory_space<vmem>>, vector<1x80x128xf32>
    %34 = vector.shape_cast %33 : vector<1x80x128xf32> to vector<80x128xf32>
    %35 = arith.addf %32, %34 : vector<80x128xf32>
    %c0_21 = arith.constant 0 : index
    %c0_22 = arith.constant 0 : index
    %c0_23 = arith.constant 0 : index
    %36 = vector.load %arg12[%c0_21, %c0_22, %c0_23] : memref<1x80x128xf32, #tpu.memory_space<vmem>>, vector<1x80x128xf32>
    %37 = vector.shape_cast %36 : vector<1x80x128xf32> to vector<80x128xf32>
    %38 = vector.shape_cast %35 : vector<80x128xf32> to vector<1x80x128xf32>
    tpu.vector_store %arg12[%c0_21, %c0_22, %c0_23], %38 {strides = array<i32>} : memref<1x80x128xf32, #tpu.memory_space<vmem>>, vector<1x80x128xf32>,
    %39 = arith.truncf %35 : vector<80x128xf32> to vector<80x128xbf16>
    %c0_24 = arith.constant 0 : index
    %c0_25 = arith.constant 0 : index
    %40 = vector.load %arg8[%c0_24, %c0_25] : memref<128x128xbf16, #tpu.memory_space<vmem>>, vector<128x128xbf16>
    %cst_26 = arith.constant dense<0.000000e+00> : vector<80x128xf32>
    %41 = tpu.matmul %39, %40, %cst_26 {dimension_numbers = #tpu.dot_dimension_numbers<[1], [0], [0], [1], [0, 0, 1, 1], [], []>} : vector<80x128xbf16>, vector<128x128xbf16>, vector<80x128xf32> -> vector<80x128xf32>
    %c0_27 = arith.constant 0 : index
    %c0_28 = arith.constant 0 : index
    %42 = vector.load %arg9[%c0_27, %c0_28] : memref<1x128xf32, #tpu.memory_space<vmem>>, vector<1x128xf32>
    %43 = vector.broadcast %42 : vector<1x128xf32> to vector<80x128xf32>
    %44 = arith.addf %41, %43 : vector<80x128xf32>
    %cst_29 = arith.constant 0.000000e+00 : f32
    %45 = vector.broadcast %cst_29 : f32 to vector<80x128xf32>
    %46 = arith.maximumf %44, %45 : vector<80x128xf32>
    %47 = arith.truncf %46 : vector<80x128xf32> to vector<80x128xbf16>
    %c0_30 = arith.constant 0 : index
    %c0_31 = arith.constant 0 : index
    %48 = vector.load %arg10[%c0_30, %c0_31] : memref<128x128xbf16, #tpu.memory_space<vmem>>, vector<128x128xbf16>
    %cst_32 = arith.constant dense<0.000000e+00> : vector<80x128xf32>
    %49 = tpu.matmul %47, %48, %cst_32 {dimension_numbers = #tpu.dot_dimension_numbers<[1], [0], [0], [1], [0, 0, 1, 1], [], []>} : vector<80x128xbf16>, vector<128x128xbf16>, vector<80x128xf32> -> vector<80x128xf32>
    %c0_33 = arith.constant 0 : index
    %c0_34 = arith.constant 0 : index
    %50 = vector.load %arg11[%c0_33, %c0_34] : memref<1x128xf32, #tpu.memory_space<vmem>>, vector<1x128xf32>
    %51 = vector.broadcast %50 : vector<1x128xf32> to vector<80x128xf32>
    %52 = arith.addf %49, %51 : vector<80x128xf32>
    %c0_35 = arith.constant 0 : index
    %c0_36 = arith.constant 0 : index
    %c0_37 = arith.constant 0 : index
    %53 = vector.load %arg13[%c0_35, %c0_36, %c0_37] : memref<1x80x128xf32, #tpu.memory_space<vmem>>, vector<1x80x128xf32>
    %54 = vector.shape_cast %53 : vector<1x80x128xf32> to vector<80x128xf32>
    %55 = vector.shape_cast %52 : vector<80x128xf32> to vector<1x80x128xf32>
    tpu.vector_store %arg13[%c0_35, %c0_36, %c0_37], %55 {strides = array<i32>} : memref<1x80x128xf32, #tpu.memory_space<vmem>>, vector<1x80x128xf32>,
    %c0_38 = arith.constant 0 : index
    %c0_39 = arith.constant 0 : index
    %c0_40 = arith.constant 0 : index
    %56 = vector.load %arg14[%c0_38, %c0_39, %c0_40] : memref<1x1x128xf32, #tpu.memory_space<vmem>>, vector<1x1x128xf32>
    %cst_41 = arith.constant dense<0.000000e+00> : vector<128xf32>
    %57 = vector.multi_reduction <add>, %52, %cst_41 [0] : vector<80x128xf32> to vector<128xf32>
    %58 = vector.shape_cast %57 : vector<128xf32> to vector<1x128xf32>
    %59 = vector.shape_cast %58 : vector<1x128xf32> to vector<1x1x128xf32>
    %60 = arith.addf %56, %59 : vector<1x1x128xf32>
    %c0_42 = arith.constant 0 : index
    %c0_43 = arith.constant 0 : index
    %c0_44 = arith.constant 0 : index
    %61 = vector.load %arg14[%c0_42, %c0_43, %c0_44] : memref<1x1x128xf32, #tpu.memory_space<vmem>>, vector<1x1x128xf32>
    tpu.vector_store %arg14[%c0_42, %c0_43, %c0_44], %60 {strides = array<i32>} : memref<1x1x128xf32, #tpu.memory_space<vmem>>, vector<1x1x128xf32>,
    %c0_45 = arith.constant 0 : index
    %c0_46 = arith.constant 0 : index
    %c0_47 = arith.constant 0 : index
    %62 = vector.load %arg15[%c0_45, %c0_46, %c0_47] : memref<1x1x128xf32, #tpu.memory_space<vmem>>, vector<1x1x128xf32>
    %63 = arith.mulf %52, %52 : vector<80x128xf32>
    %cst_48 = arith.constant dense<0.000000e+00> : vector<128xf32>
    %64 = vector.multi_reduction <add>, %63, %cst_48 [0] : vector<80x128xf32> to vector<128xf32>
    %65 = vector.shape_cast %64 : vector<128xf32> to vector<1x128xf32>
    %66 = vector.shape_cast %65 : vector<1x128xf32> to vector<1x1x128xf32>
    %67 = arith.addf %62, %66 : vector<1x1x128xf32>
    %c0_49 = arith.constant 0 : index
    %c0_50 = arith.constant 0 : index
    %c0_51 = arith.constant 0 : index
    %68 = vector.load %arg15[%c0_49, %c0_50, %c0_51] : memref<1x1x128xf32, #tpu.memory_space<vmem>>, vector<1x1x128xf32>
    tpu.vector_store %arg15[%c0_49, %c0_50, %c0_51], %67 {strides = array<i32>} : memref<1x1x128xf32, #tpu.memory_space<vmem>>, vector<1x1x128xf32>,
    return
  }
  func.func @transform_0(%arg0: i32, %arg1: i32) -> (i32, i32, i32) {
    %c0_i32 = arith.constant 0 : i32
    %c0_i32_0 = arith.constant 0 : i32
    %c0_i32_1 = arith.constant 0 : i32
    return %arg0, %c0_i32, %c0_i32_0 : i32, i32, i32
  }
  func.func @transform_1(%arg0: i32, %arg1: i32) -> (i32, i32, i32) {
    %c0_i32 = arith.constant 0 : i32
    %c0_i32_0 = arith.constant 0 : i32
    %c0_i32_1 = arith.constant 0 : i32
    return %arg0, %c0_i32, %c0_i32_0 : i32, i32, i32
  }
  func.func @transform_2(%arg0: i32, %arg1: i32) -> (i32, i32, i32) {
    %c0_i32 = arith.constant 0 : i32
    %c0_i32_0 = arith.constant 0 : i32
    return %arg0, %arg1, %c0_i32 : i32, i32, i32
  }
  func.func @transform_3(%arg0: i32, %arg1: i32) -> (i32, i32, i32) {
    %c0_i32 = arith.constant 0 : i32
    %c0_i32_0 = arith.constant 0 : i32
    return %arg0, %arg1, %c0_i32 : i32, i32, i32
  }
  func.func @transform_4(%arg0: i32, %arg1: i32) -> (i32, i32) {
    %c0_i32 = arith.constant 0 : i32
    %c0_i32_0 = arith.constant 0 : i32
    %c0_i32_1 = arith.constant 0 : i32
    return %c0_i32, %c0_i32_0 : i32, i32
  }
  func.func @transform_5(%arg0: i32, %arg1: i32) -> (i32, i32) {
    %c0_i32 = arith.constant 0 : i32
    %c0_i32_0 = arith.constant 0 : i32
    %c0_i32_1 = arith.constant 0 : i32
    return %c0_i32, %c0_i32_0 : i32, i32
  }
  func.func @transform_6(%arg0: i32, %arg1: i32) -> (i32, i32) {
    %c0_i32 = arith.constant 0 : i32
    %c0_i32_0 = arith.constant 0 : i32
    %c0_i32_1 = arith.constant 0 : i32
    return %c0_i32, %c0_i32_0 : i32, i32
  }
  func.func @transform_7(%arg0: i32, %arg1: i32) -> (i32, i32) {
    %c0_i32 = arith.constant 0 : i32
    %c0_i32_0 = arith.constant 0 : i32
    %c0_i32_1 = arith.constant 0 : i32
    return %c0_i32, %c0_i32_0 : i32, i32
  }
  func.func @transform_8(%arg0: i32, %arg1: i32) -> (i32, i32) {
    %c0_i32 = arith.constant 0 : i32
    %c0_i32_0 = arith.constant 0 : i32
    %c0_i32_1 = arith.constant 0 : i32
    return %c0_i32, %c0_i32_0 : i32, i32
  }
  func.func @transform_9(%arg0: i32, %arg1: i32) -> (i32, i32) {
    %c0_i32 = arith.constant 0 : i32
    %c0_i32_0 = arith.constant 0 : i32
    %c0_i32_1 = arith.constant 0 : i32
    return %c0_i32, %c0_i32_0 : i32, i32
  }
  func.func @transform_10(%arg0: i32, %arg1: i32) -> (i32, i32, i32) {
    %c0_i32 = arith.constant 0 : i32
    %c0_i32_0 = arith.constant 0 : i32
    return %arg0, %arg1, %c0_i32 : i32, i32, i32
  }
  func.func @transform_11(%arg0: i32, %arg1: i32) -> (i32, i32, i32) {
    %c0_i32 = arith.constant 0 : i32
    %c0_i32_0 = arith.constant 0 : i32
    return %arg0, %arg1, %c0_i32 : i32, i32, i32
  }
  func.func @transform_12(%arg0: i32, %arg1: i32) -> (i32, i32, i32) {
    %c0_i32 = arith.constant 0 : i32
    %c0_i32_0 = arith.constant 0 : i32
    %c0_i32_1 = arith.constant 0 : i32
    return %arg0, %c0_i32, %c0_i32_0 : i32, i32, i32
  }
  func.func @transform_13(%arg0: i32, %arg1: i32) -> (i32, i32, i32) {
    %c0_i32 = arith.constant 0 : i32
    %c0_i32_0 = arith.constant 0 : i32
    %c0_i32_1 = arith.constant 0 : i32
    return %arg0, %c0_i32, %c0_i32_0 : i32, i32, i32
  }
}

module attributes {stable_mosaic.version = 11 : i64} {
  func.func @kernel(%arg0: i32, %arg1: i32, %arg2: memref<1x32x128xf32, #tpu.memory_space<vmem>>, %arg3: memref<128x256xbf16, #tpu.memory_space<vmem>>, %arg4: memref<1x256xf32, #tpu.memory_space<vmem>>, %arg5: memref<128x128xbf16, #tpu.memory_space<vmem>>, %arg6: memref<1x32x128xf32, #tpu.memory_space<vmem>>) attributes {dimension_semantics = [#tpu.dimension_semantics<parallel>, #tpu.dimension_semantics<parallel>], iteration_bounds = array<i64: 4, 1>, scalar_prefetch = 0 : i64, scratch_operands = 0 : i64, tpu.core_type = #tpu.core_type<tc>, window_params = [{transform_indices = @transform_0, window_bounds = array<i64: 1, 32, 128>}, {pipeline_mode = #tpu.pipeline_mode<synchronous>, transform_indices = @transform_1, window_bounds = array<i64: 128, 256>}, {pipeline_mode = #tpu.pipeline_mode<synchronous>, transform_indices = @transform_2, window_bounds = array<i64: 1, 256>}, {pipeline_mode = #tpu.pipeline_mode<synchronous>, transform_indices = @transform_3, window_bounds = array<i64: 128, 128>}, {transform_indices = @transform_4, window_bounds = array<i64: 1, 32, 128>}]} {
    %c0 = arith.constant 0 : index
    %c0_0 = arith.constant 0 : index
    %c0_1 = arith.constant 0 : index
    %0 = vector.load %arg2[%c0, %c0_0, %c0_1] : memref<1x32x128xf32, #tpu.memory_space<vmem>>, vector<1x32x128xf32>
    %1 = vector.shape_cast %0 : vector<1x32x128xf32> to vector<32x128xf32>
    %2 = arith.truncf %1 : vector<32x128xf32> to vector<32x128xbf16>
    %c0_2 = arith.constant 0 : index
    %c0_3 = arith.constant 0 : index
    %3 = vector.load %arg3[%c0_2, %c0_3] : memref<128x256xbf16, #tpu.memory_space<vmem>>, vector<128x256xbf16>
    %cst = arith.constant dense<0.000000e+00> : vector<32x256xf32>
    %4 = tpu.matmul %2, %3, %cst {dimension_numbers = #tpu.dot_dimension_numbers<[1], [0], [0], [1], [0, 0, 1, 1], [], []>} : vector<32x128xbf16>, vector<128x256xbf16>, vector<32x256xf32> -> vector<32x256xf32>
    %c0_4 = arith.constant 0 : index
    %c0_5 = arith.constant 0 : index
    %5 = vector.load %arg4[%c0_4, %c0_5] : memref<1x256xf32, #tpu.memory_space<vmem>>, vector<1x256xf32>
    %6 = vector.broadcast %5 : vector<1x256xf32> to vector<32x256xf32>
    %7 = arith.addf %4, %6 : vector<32x256xf32>
    %8 = vector.extract_strided_slice %7 {offsets = [0, 0], sizes = [32, 128], strides = [1, 1]} : vector<32x256xf32> to vector<32x128xf32>
    %9 = math.tanh %8 : vector<32x128xf32>
    %10 = vector.extract_strided_slice %7 {offsets = [0, 128], sizes = [32, 128], strides = [1, 1]} : vector<32x256xf32> to vector<32x128xf32>
    %11 = arith.negf %10 : vector<32x128xf32>
    %12 = math.exp %11 : vector<32x128xf32>
    %cst_6 = arith.constant 1.000000e+00 : f32
    %13 = vector.broadcast %cst_6 : f32 to vector<32x128xf32>
    %14 = arith.addf %13, %12 : vector<32x128xf32>
    %15 = arith.divf %13, %14 : vector<32x128xf32>
    %16 = arith.mulf %9, %15 : vector<32x128xf32>
    %17 = arith.truncf %16 : vector<32x128xf32> to vector<32x128xbf16>
    %c0_7 = arith.constant 0 : index
    %c0_8 = arith.constant 0 : index
    %18 = vector.load %arg5[%c0_7, %c0_8] : memref<128x128xbf16, #tpu.memory_space<vmem>>, vector<128x128xbf16>
    %cst_9 = arith.constant dense<0.000000e+00> : vector<32x128xf32>
    %19 = tpu.matmul %17, %18, %cst_9 {dimension_numbers = #tpu.dot_dimension_numbers<[1], [0], [0], [1], [0, 0, 1, 1], [], []>} : vector<32x128xbf16>, vector<128x128xbf16>, vector<32x128xf32> -> vector<32x128xf32>
    %cst_10 = arith.constant 0.000000e+00 : f32
    %20 = vector.broadcast %cst_10 : f32 to vector<32x128xf32>
    %21 = arith.maximumf %19, %20 : vector<32x128xf32>
    %c0_11 = arith.constant 0 : index
    %c0_12 = arith.constant 0 : index
    %c0_13 = arith.constant 0 : index
    %22 = vector.load %arg6[%c0_11, %c0_12, %c0_13] : memref<1x32x128xf32, #tpu.memory_space<vmem>>, vector<1x32x128xf32>
    %23 = vector.shape_cast %22 : vector<1x32x128xf32> to vector<32x128xf32>
    %24 = vector.shape_cast %21 : vector<32x128xf32> to vector<1x32x128xf32>
    tpu.vector_store %arg6[%c0_11, %c0_12, %c0_13], %24 {strides = array<i32>} : memref<1x32x128xf32, #tpu.memory_space<vmem>>, vector<1x32x128xf32>,
    return
  }
  func.func @transform_0(%arg0: i32, %arg1: i32) -> (i32, i32, i32) {
    %c0_i32 = arith.constant 0 : i32
    %c0_i32_0 = arith.constant 0 : i32
    return %arg0, %arg1, %c0_i32 : i32, i32, i32
  }
  func.func @transform_1(%arg0: i32, %arg1: i32) -> (i32, i32) {
    %c0_i32 = arith.constant 0 : i32
    %c0_i32_0 = arith.constant 0 : i32
    %c0_i32_1 = arith.constant 0 : i32
    return %c0_i32, %c0_i32_0 : i32, i32
  }
  func.func @transform_2(%arg0: i32, %arg1: i32) -> (i32, i32) {
    %c0_i32 = arith.constant 0 : i32
    %c0_i32_0 = arith.constant 0 : i32
    %c0_i32_1 = arith.constant 0 : i32
    return %c0_i32, %c0_i32_0 : i32, i32
  }
  func.func @transform_3(%arg0: i32, %arg1: i32) -> (i32, i32) {
    %c0_i32 = arith.constant 0 : i32
    %c0_i32_0 = arith.constant 0 : i32
    %c0_i32_1 = arith.constant 0 : i32
    return %c0_i32, %c0_i32_0 : i32, i32
  }
  func.func @transform_4(%arg0: i32, %arg1: i32) -> (i32, i32, i32) {
    %c0_i32 = arith.constant 0 : i32
    %c0_i32_0 = arith.constant 0 : i32
    return %arg0, %arg1, %c0_i32 : i32, i32, i32
  }
}

</mosaic_0001>

<bundles_post_ra>
// kernel: dual_path_model_forward.8
= control target key start
LH: loop header
LB: loop body
LE: loop exit
PB: predicated region body
PF: predicated region fallthrough
CT: control target
= control target key end

     0   :  { %s376_s9 = smov 0   ;;  %s378_s10 = smov 0   ;;  %s422_s0 = inlined_call_operand.vmem [shape: f32[2,32,128], index: 0, kind: input, shape index: {}]   ;;  %s423_s1 = inlined_call_operand.vmem [shape: f32[2,1,128], index: 1, kind: output, shape index: {0}]   ;;  %s424_s2 = inlined_call_operand.vmem [shape: f32[2,1,128], index: 2, kind: output, shape index: {1}]  }
   0x1   :  { %s380_s11 = smov 0  }
   0x2 LB: > { %s25_s12 = sadd.s32 1, %s354_s10  ;;  %p305_p0 = scmp.ge.s32.totalorder %s358_s11, 1  ;;  %s358_s11 = sphi %s380_s11, %s13_s11   ;;  %s354_s10 = sphi %s378_s10, %s426_s10   ;;  %s350_s9 = sphi %s376_s9, %s425_s9  }
   0x3   : > { %p27_p1 = scmp.ge.s32.totalorder %s25_s12, 2  ;;  %p134_p2 = scmp.lt.s32.totalorder %s358_s11, 3 }
   0x5   : > { %s428_s12 = smov (%p27_p1, %s25_s12), 0  ;;  %p135_p3 = pnand %p305_p0, %p134_p2 }
   0x6   : > { %p162_p4 = scmp.lt.s32.totalorder (!%p135_p3), %s350_s9, 1 }
   0x7   : > { %138 = sbr.rel (%p135_p3) target bundleno = 39 (0x27), region = 24 }
   0xc   : > { %s430_s9 = smov (!%p162_p4, %s350_s9), 1  ;;  %v360_v0 = vmov 0.0  }
   0xd   : > { %s310_s13 = sshll.u32 %s430_s9, 5  ;;  %s397_s16 = scalar_lea.vmem %s423_s1, %s430_s9 }
   0xe   : > { %s169_s19 = scalar_lea.vmem %s422_s0, %s310_s13  ;;  %181 = vst [vmem:[%s397_s16] sm:$0x1] %v360_v0  ;;  %s406_s22 = scalar_lea.vmem %s424_s2, %s430_s9 }
   0xf   : > { %v183_v1 = vld [vmem:[%s169_s19] sm:$0xff]  ;;  %v184_v2 = vld [vmem:[%s169_s19 + $0x8] sm:$0xff]  ;;  %v185_v3 = vld [vmem:[%s169_s19 + $0x10] sm:$0xff]  ;;  %182 = vst [vmem:[%s406_s22] sm:$0x1] %v360_v0 }
  0x10   : > { %v188_v4 = vadd.f32 %v184_v2, %v183_v1  ;;  %v200_v5 = vmul.f32 %v183_v1, %v183_v1  ;;  %v201_v6 = vmul.f32 %v184_v2, %v184_v2  ;;  %v202_v7 = vmul.f32 %v185_v3, %v185_v3  ;;  %v186_v8 = vld [vmem:[%s169_s19 + $0x18] sm:$0xff] }
  0x11   : > { %v203_v10 = vmul.f32 %v186_v8, %v186_v8 }
  0x12   : > { %v189_v9 = vadd.f32 %v188_v4, %v185_v3  ;;  %v204_v11 = vadd.f32 %v201_v6, %v200_v5 }
  0x14   : > { %v190_v12 = vadd.f32 %v189_v9, %v186_v8  ;;  %v205_v13 = vadd.f32 %v204_v11, %v202_v7 }
  0x15   : > { %v187_v24 = vld [vmem:[%s397_s16] sm:$0x1] }
  0x16   : > { %v191_v14 = vrot.slane %v190_v12, 4  ;;  %v206_v15 = vadd.f32 %v205_v13, %v203_v10  ;;  %v199_v27 = vld [vmem:[%s406_s22] sm:$0x1] }
  0x18   : > { %v192_v16 = vadd.f32 %v191_v14, %v190_v12  ;;  %v207_v17 = vrot.slane %v206_v15, 4 }
  0x1a   : > { %v193_v18 = vrot.slane %v192_v16, 2  ;;  %v208_v19 = vadd.f32 %v207_v17, %v206_v15 }
  0x1c   : > { %v194_v20 = vadd.f32 %v193_v18, %v192_v16  ;;  %v209_v21 = vrot.slane %v208_v19, 2 }
  0x1e   : > { %v195_v22 = vrot.slane %v194_v20, 1  ;;  %v210_v23 = vadd.f32 %v209_v21, %v208_v19 }
  0x20   : > { %v196_v25 = vadd.f32 %v195_v22, %v194_v20  ;;  %v211_v26 = vrot.slane %v210_v23, 1 }
  0x22   : > { %v197_v28 = vadd.f32 %v196_v25, %v187_v24  ;;  %v212_v29 = vadd.f32 %v211_v26, %v210_v23 }
  0x24   : > { %198 = vst [vmem:[%s397_s16] sm:$0x1] %v197_v28  ;;  %v213_v30 = vadd.f32 %v212_v29, %v199_v27 }
  0x26   : > { %214 = vst [vmem:[%s406_s22] sm:$0x1] %v213_v30 }
  0x27 PF: > { %s13_s11 = sadd.s32 1, %s358_s11   ;;  %s425_s9 = smov %s354_s10 }
  0x28   : > { %p10_p5 = scmp.ge.s32.totalorder %s13_s11, 4   ;;  %s426_s10 = smov %s428_s12 }
  0x2a   :  { %12 = sbr.rel (!%p10_p5) target bundleno = 2 (0x2), region = 70 }

// kernel: dual_path_model_forward.9
= control target key start
LH: loop header
LB: loop body
LE: loop exit
PB: predicated region body
PF: predicated region fallthrough
CT: control target
= control target key end

     0   :  { %s755_s21 = smov 0   ;;  %s757_s22 = smov 0   ;;  %s834_s0 = inlined_call_operand.vmem [shape: f32[2,1,128], index: 0, kind: input, shape index: {}]   ;;  %s835_s1 = inlined_call_operand.vmem [shape: f32[2,1,128], index: 1, kind: input, shape index: {}]   ;;  %s836_s2 = inlined_call_operand.vmem [shape: f32[2,32,128], index: 2, kind: input, shape index: {}]   ;;  %s837_s3 = inlined_call_operand.vmem [shape: f32[1,128], index: 3, kind: input, shape index: {}]   ;;  %s838_s4 = inlined_call_operand.vmem [shape: f32[1,128], index: 4, kind: input, shape index: {}]   ;;  %s839_s5 = inlined_call_operand.vmem [shape: bf16[128,128], index: 5, kind: input, shape index: {}]   ;;  %s840_s6 = inlined_call_operand.vmem [shape: f32[2,32,128], index: 6, kind: output, shape index: {}]  }
   0x1   :  { %s759_s23 = smov 0  }
   0x2 LB: > { %s28_s24 = sadd.s32 1, %s712_s22  ;;  %p599_p0 = scmp.ge.s32.totalorder %s716_s23, 1  ;;  %s716_s23 = sphi %s759_s23, %s16_s23   ;;  %s712_s22 = sphi %s757_s22, %s842_s22   ;;  %s708_s21 = sphi %s755_s21, %s841_s21  }
   0x3   : > { %p30_p1 = scmp.ge.s32.totalorder %s28_s24, 2  ;;  %p249_p2 = scmp.lt.s32.totalorder %s716_s23, 3 }
   0x5   : > { %s844_s24 = smov (%p30_p1, %s28_s24), 0  ;;  %p250_p3 = pnand %p599_p0, %p249_p2 }
   0x6   : > { %p293_p4 = scmp.lt.s32.totalorder (!%p250_p3), %s708_s21, 1  ;;  %s719_s20 = smov (!%p250_p3), 0.0  }
   0x7   : > { %253 = sbr.rel (%p250_p3) target bundleno = 427 (0x1ab), region = 44 }
   0xc   : > { %s846_s21 = smov (!%p293_p4, %s708_s21), 1  ;;  %vm320_vm0 = vcmask 1040384   ;;  %v718_v4 = vmov 256.0   ;;  %v647_v25 = vld [vmem:[%s839_s5 + $0x38] sm:$0xff]  ;;  %v646_v26 = vld [vmem:[%s839_s5 + $0x30] sm:$0xff]  ;;  %v645_v27 = vld [vmem:[%s839_s5 + $0x28] sm:$0xff] }
   0xd   : > { %s295_s27 = scalar_lea.vmem %s834_s0, %s846_s21  ;;  %s298_s30 = scalar_lea.vmem %s835_s1, %s846_s21  ;;  %690 = vrcp.f32 %v718_v4  ;;  %467 = vmatpush.bf16.msra.mxu0 %v647_v25  ;;  %648 = vmatpush.bf16.msra.mxu1 %v647_v25  ;;  %v644_v28 = vld [vmem:[%s839_s5 + $0x20] sm:$0xff]  ;;  %v643_v30 = vld [vmem:[%s839_s5 + $0x18] sm:$0xff]  ;;  %v642_v38 = vld [vmem:[%s839_s5 + $0x10] sm:$0xff] }
   0xe   : > { %v319_v0 = vld [vmem:[%s295_s27] sm:$0x1]  ;;  %v641_v39 = vld [vmem:[%s839_s5 + $0x8] sm:$0xff] }
   0xf   : > { %v321_v1 = vsel %vm320_vm0, %v319_v0, 0.0  ;;  %v340_v2 = vld [vmem:[%s298_s30] sm:$0x1] }
  0x10   : > { %322 = vadd.xlane.f32.xlu0 %v321_v1  ;;  %v341_v3 = vsel %vm320_vm0, %v340_v2, 0.0  ;;  %v640_v40 = vld [vmem:[%s839_s5] sm:$0xff] }
  0x11   : > { %468 = vmatpush.bf16.msra.mxu0 %v646_v26  ;;  %649 = vmatpush.bf16.msra.mxu1 %v646_v26  ;;  %v376_v41 = vld [vmem:[%s837_s3] sm:$0x1] }
  0x12   : > { %v379_v44 = vld [vmem:[%s838_s4] sm:$0x1] }
  0x13   : > { %v691_v5 = vpop.eup %690 }
  0x14   : > { %v332_v6 = vmul.f32 256.0, %v691_v5  ;;  %vm336_vm1 = vweird.f32 %v691_v5 }
  0x15   : > { %469 = vmatpush.bf16.msra.mxu0 %v645_v27  ;;  %650 = vmatpush.bf16.msra.mxu1 %v645_v27 }
  0x16   : > { %v333_v7 = vsub.f32 1.0, %v332_v6 }
  0x18   : > { %342 = vadd.xlane.f32.xlu0 %v341_v3  ;;  %v334_v11 = vmul.f32 %v691_v5, %v333_v7 }
  0x19   : > { %470 = vmatpush.bf16.msra.mxu0 %v644_v28  ;;  %651 = vmatpush.bf16.msra.mxu1 %v644_v28 }
  0x1a   : > { %v335_v14 = vadd.f32 %v691_v5, %v334_v11 }
  0x1c   : > { %v337_v20 = vsel %vm336_vm1, %v691_v5, %v335_v14 }
  0x1d   : > { %471 = vmatpush.bf16.msra.mxu0 %v643_v30  ;;  %652 = vmatpush.bf16.msra.mxu1 %v643_v30 }
  0x21   : > { %472 = vmatpush.bf16.msra.mxu0 %v642_v38  ;;  %653 = vmatpush.bf16.msra.mxu1 %v642_v38 }
  0x25   : > { %473 = vmatpush.bf16.msra.mxu0 %v641_v39  ;;  %654 = vmatpush.bf16.msra.mxu1 %v641_v39 }
  0x29   : > { %474 = vmatpush.bf16.msra.mxu0 %v640_v40  ;;  %655 = vmatpush.bf16.msra.mxu1 %v640_v40 }
  0x83   : > { %v323_v8 = vpop.xlane.xlu0 %322 }
  0x84   : > { %v324_v9 = vrot.slane %v323_v8, 4 }
  0x86   : > { %v325_v10 = vadd.f32 %v324_v9, %v323_v8 }
  0x88   : > { %v326_v12 = vrot.slane %v325_v10, 2 }
  0x8a   : > { %v327_v13 = vadd.f32 %v326_v12, %v325_v10 }
  0x8b   : > { %v343_v15 = vpop.xlane.xlu0 %342 }
  0x8c   : > { %v344_v16 = vrot.slane %v343_v15, 4  ;;  %v328_v17 = vrot.slane %v327_v13, 1 }
  0x8e   : > { %v345_v18 = vadd.f32 %v344_v16, %v343_v15  ;;  %v329_v19 = vadd.f32 %v328_v17, %v327_v13 }
  0x90   : > { %v346_v21 = vrot.slane %v345_v18, 2  ;;  %656 = vpush %v329_v19 }
  0x91   : > { %658 = vpush %v337_v20 }
  0x92   : > { %v347_v22 = vadd.f32 %v346_v21, %v345_v18 }
  0x94   : > { %v348_v23 = vrot.slane %v347_v22, 1 }
  0x96   : > { %v349_v24 = vadd.f32 %v348_v23, %v347_v22 }
  0x98   : > { %660 = vpush %v349_v24 }
  0xc1   : > { %s657_s7 = spop %656 }
  0xc2   : > { %s659_s8 = spop %658 }
  0xc3   : > { %s786_s11 = smul.f32 %s659_s8, %s657_s7 }
  0xc5   : > { %s360_s14 = smul.f32 %s786_s11, %s786_s11  ;;  %v380_v45 = vstv %s786_s11 }
  0xc9   : > { %s661_s15 = spop %660 }
  0xca   : > { %s359_s16 = smul.f32 %s661_s15, %s659_s8 }
  0xcc   : > { %s361_s19 = ssub.f32 %s359_s16, %s360_s14  ;;  %s638_s14 = sshll.u32 %s846_s21, 5 }
  0xcd   : > { %s317_s27 = scalar_lea.vmem %s840_s6, %s638_s14 }
  0xce   : > { %s362_s25 = smax.f32 %s719_s20, %s361_s19  ;;  %s307_s20 = scalar_lea.vmem %s836_s2, %s638_s14 }
  0xcf   : > { %s363_s28 = sadd.f32 1e-08, %s362_s25  ;;  %v383_v48 = vld [vmem:[%s307_s20] sm:$0xff]  ;;  %v384_v49 = vld [vmem:[%s307_s20 + $0x8] sm:$0xff]  ;;  %v385_v50 = vld [vmem:[%s307_s20 + $0x10] sm:$0xff] }
  0xd0   : > { %v386_v51 = vld [vmem:[%s307_s20 + $0x18] sm:$0xff] }
  0xd1   : > { %v364_v29 = vstv %s363_s28 }
  0xd2   : > { %692 = vrsqrt.f32 %v364_v29  ;;  %vm371_vm3 = vweird.f32 %v364_v29 }
  0xd8   : > { %v693_v31 = vpop.eup %692 }
  0xd9   : > { %v366_v32 = vmul.f32 %v693_v31, %v364_v29  ;;  %vm372_vm2 = vweird.f32 %v693_v31 }
  0xda   : > { %vm373_vm4 = vmor %vm371_vm3, %vm372_vm2 }
  0xdb   : > { %v367_v33 = vmul.f32 %v693_v31, %v366_v32 }
  0xdd   : > { %v368_v34 = vmul.f32 0.5, %v367_v33 }
  0xdf   : > { %v369_v35 = vsub.f32 1.5, %v368_v34 }
  0xe1   : > { %v370_v36 = vmul.f32 %v693_v31, %v369_v35 }
  0xe3   : > { %v374_v37 = vsel %vm373_vm4, %v693_v31, %v370_v36 }
  0xe4   : > { %662 = vpush %v374_v37 }
 0x115   : > { %s663_s17 = spop %662 }
 0x116   : > { %v377_v42 = vstv %s663_s17 }
 0x117   : > { %v378_v43 = vmul.f32 %v377_v42, %v376_v41 }
 0x119   : > { %v381_v46 = vmul.f32 %v380_v45, %v378_v43  ;;  %v388_v47 = vperm.slane %v378_v43, 0 }
 0x11b   : > { %v382_v52 = vsub.f32 %v379_v44, %v381_v46  ;;  %v390_v53 = vmul.f32 %v388_v47, %v383_v48  ;;  %v391_v55 = vmul.f32 %v388_v47, %v384_v49  ;;  %v392_v56 = vmul.f32 %v388_v47, %v385_v50 }
 0x11c   : > { %v393_v57 = vmul.f32 %v388_v47, %v386_v51 }
 0x11d   : > { %v395_v54 = vperm.slane %v382_v52, 0 }
 0x11f   : > { %v397_v58 = vadd.f32 %v395_v54, %v390_v53  ;;  %v398_v59 = vadd.f32 %v395_v54, %v391_v55  ;;  %v399_v60 = vadd.f32 %v395_v54, %v392_v56  ;;  %v400_v61 = vadd.f32 %v395_v54, %v393_v57 }
 0x121   : > { %v401_v62 = vpack.c.bf16 %v398_v59, %v397_v58  ;;  %v402_v63 = vpack.c.bf16 %v400_v61, %v399_v60 }
 0x123   : > { %475 = vmatmul.bf16.vlgmr.msra.gmra.mxu0 %v401_v62  ;;  %480 = vmatmul.bf16.vlgmr.msra.gmra.mxu1 %v402_v63 }
 0x1a0   : > { %v476_v0 = vpop.f32.mrf.mxu0  ;;  %v481_v1 = vpop.f32.mrf.mxu1 }
 0x1a1   : > { %486 = vst [vmem:[%s317_s27] sm:$0xff] %v476_v0 }
 0x1a2   : > { %488 = vst [vmem:[%s317_s27 + $0x10] sm:$0xff] %v481_v1 }
 0x1a8   : > { %v478_v2 = vpop.f32.mrf.mxu0  ;;  %v483_v3 = vpop.f32.mrf.mxu1 }
 0x1a9   : > { %487 = vst [vmem:[%s317_s27 + $0x8] sm:$0xff] %v478_v2 }
 0x1aa   : > { %489 = vst [vmem:[%s317_s27 + $0x18] sm:$0xff] %v483_v3 }
 0x1ab PF: > { %s16_s23 = sadd.s32 1, %s716_s23   ;;  %s841_s21 = smov %s712_s22 }
 0x1ac   : > { %p13_p5 = scmp.ge.s32.totalorder %s16_s23, 4   ;;  %s842_s22 = smov %s844_s24 }
 0x1ae   :  { %15 = sbr.rel (!%p13_p5) target bundleno = 2 (0x2), region = 80 }

// kernel: dual_path_model_forward.10
= control target key start
LH: loop header
LB: loop body
LE: loop exit
PB: predicated region body
PF: predicated region fallthrough
CT: control target
= control target key end

     0   :  { %s966_s24 = smov 0   ;;  %s968_s25 = smov 0   ;;  %s1102_s0 = inlined_call_operand.vmem [shape: f32[2,80,128], index: 0, kind: input, shape index: {}]   ;;  %s1103_s1 = inlined_call_operand.vmem [shape: bf16[128,128], index: 1, kind: input, shape index: {}]   ;;  %s1104_s2 = inlined_call_operand.vmem [shape: f32[1,128], index: 2, kind: input, shape index: {}]   ;;  %s1105_s3 = inlined_call_operand.vmem [shape: bf16[128,128], index: 3, kind: input, shape index: {}]   ;;  %s1106_s4 = inlined_call_operand.vmem [shape: f32[1,128], index: 4, kind: input, shape index: {}]   ;;  %s1107_s5 = inlined_call_operand.vmem [shape: f32[2,80,128], index: 5, kind: output, shape index: {0}]   ;;  %s1108_s6 = inlined_call_operand.vmem [shape: f32[2,1,128], index: 6, kind: output, shape index: {1}]   ;;  %s1109_s7 = inlined_call_operand.vmem [shape: f32[2,1,128], index: 7, kind: output, shape index: {2}]  }
   0x1   :  { %s970_s26 = smov 0  }
   0x2 LB: > { %s30_s27 = sadd.s32 1, %s919_s25  ;;  %p772_p0 = scmp.ge.s32.totalorder %s923_s26, 1  ;;  %s923_s26 = sphi %s970_s26, %s18_s26   ;;  %s919_s25 = sphi %s968_s25, %s1111_s25   ;;  %s915_s24 = sphi %s966_s24, %s1110_s24  }
   0x3   : > { %p32_p1 = scmp.ge.s32.totalorder %s30_s27, 2  ;;  %p263_p2 = scmp.lt.s32.totalorder %s923_s26, 3 }
   0x5   : > { %s1113_s27 = smov (%p32_p1, %s30_s27), 0  ;;  %p264_p3 = pnand %p772_p0, %p263_p2 }
   0x6   : > { %p310_p4 = scmp.lt.s32.totalorder (!%p264_p3), %s915_s24, 1 }
   0x7   : > { %267 = sbr.rel (%p264_p3) target bundleno = 383 (0x17f), region = 40 }
   0xc   : > { %v848_v0 = vld [vmem:[%s1103_s1 + $0x38] sm:$0xff]  ;;  %v847_v1 = vld [vmem:[%s1103_s1 + $0x30] sm:$0xff]  ;;  %v846_v2 = vld [vmem:[%s1103_s1 + $0x28] sm:$0xff]  ;;  %s1115_s24 = smov (!%p310_p4, %s915_s24), 1 }
   0xd   : > { %424 = vmatpush.bf16.msra.mxu0 %v848_v0  ;;  %857 = vmatpush.bf16.msra.mxu2 %v848_v0  ;;  %v845_v3 = vld [vmem:[%s1103_s1 + $0x20] sm:$0xff]  ;;  %v844_v4 = vld [vmem:[%s1103_s1 + $0x18] sm:$0xff]  ;;  %v843_v5 = vld [vmem:[%s1103_s1 + $0x10] sm:$0xff]  ;;  %s873_s17 = smul.u32 80, %s1115_s24  ;;  %s1071_s13 = scalar_lea.vmem %s1108_s6, %s1115_s24 }
   0xe   : > { %v842_v6 = vld [vmem:[%s1103_s1 + $0x8] sm:$0xff]  ;;  %v841_v7 = vld [vmem:[%s1103_s1] sm:$0xff]  ;;  %v856_v14 = vld [vmem:[%s1105_s3 + $0x38] sm:$0xff]  ;;  %s1077_s15 = scalar_lea.vmem %s1109_s7, %s1115_s24 }
   0xf   : > { %s1013_s22 = scalar_lea.vmem %s1102_s0, %s873_s17  ;;  %541 = vmatpush.bf16.msra.mxu1 %v856_v14  ;;  %v855_v15 = vld [vmem:[%s1105_s3 + $0x30] sm:$0xff]  ;;  %865 = vmatpush.bf16.msra.mxu3 %v856_v14  ;;  %v854_v16 = vld [vmem:[%s1105_s3 + $0x28] sm:$0xff]  ;;  %v853_v21 = vld [vmem:[%s1105_s3 + $0x20] sm:$0xff]  ;;  %s1063_s10 = scalar_lea.vmem %s1107_s5, %s873_s17 }
  0x10   : > { %v341_v8 = vld [vmem:[%s1013_s22] sm:$0xff]  ;;  %v342_v9 = vld [vmem:[%s1013_s22 + $0x8] sm:$0xff]  ;;  %v343_v17 = vld [vmem:[%s1013_s22 + $0x10] sm:$0xff] }
  0x11   : > { %425 = vmatpush.bf16.msra.mxu0 %v847_v1  ;;  %858 = vmatpush.bf16.msra.mxu2 %v847_v1  ;;  %v345_v10 = vld [vmem:[%s1013_s22 + $0x20] sm:$0xff]  ;;  %v346_v11 = vld [vmem:[%s1013_s22 + $0x28] sm:$0xff]  ;;  %v351_v12 = vpack.c.bf16 %v342_v9, %v341_v8  ;;  %v344_v18 = vld [vmem:[%s1013_s22 + $0x18] sm:$0xff] }
  0x12   : > { %v353_v13 = vpack.c.bf16 %v346_v11, %v345_v10  ;;  %v347_v19 = vld [vmem:[%s1013_s22 + $0x30] sm:$0xff]  ;;  %v348_v20 = vld [vmem:[%s1013_s22 + $0x38] sm:$0xff]  ;;  %v352_v22 = vpack.c.bf16 %v344_v18, %v343_v17  ;;  %v349_v24 = vld [vmem:[%s1013_s22 + $0x40] sm:$0xff]  ;;  %v925_v10 = vmov 0.0  }
  0x13   : > { %542 = vmatpush.bf16.msra.mxu1 %v855_v15  ;;  %866 = vmatpush.bf16.msra.mxu3 %v855_v15  ;;  %v354_v23 = vpack.c.bf16 %v348_v20, %v347_v19  ;;  %v350_v25 = vld [vmem:[%s1013_s22 + $0x48] sm:$0xff]  ;;  %v852_v27 = vld [vmem:[%s1105_s3 + $0x18] sm:$0xff]  ;;  %v851_v28 = vld [vmem:[%s1105_s3 + $0x10] sm:$0xff]  ;;  %339 = vst [vmem:[%s1071_s13] sm:$0x1] %v925_v10 }
  0x14   : > { %v355_v26 = vpack.c.bf16 %v350_v25, %v349_v24  ;;  %v850_v29 = vld [vmem:[%s1105_s3 + $0x8] sm:$0xff]  ;;  %v849_v30 = vld [vmem:[%s1105_s3] sm:$0xff]  ;;  %340 = vst [vmem:[%s1077_s15] sm:$0x1] %v925_v10 }
  0x15   : > { %426 = vmatpush.bf16.msra.mxu0 %v846_v2  ;;  %859 = vmatpush.bf16.msra.mxu2 %v846_v2  ;;  %v899_v32 = vld [vmem:[%s1104_s2] ss:$0 sm:$0xff] }
  0x17   : > { %543 = vmatpush.bf16.msra.mxu1 %v854_v16  ;;  %867 = vmatpush.bf16.msra.mxu3 %v854_v16 }
  0x19   : > { %427 = vmatpush.bf16.msra.mxu0 %v845_v3  ;;  %860 = vmatpush.bf16.msra.mxu2 %v845_v3  ;;  %v900_v3 = vld [vmem:[%s1106_s4] ss:$0 sm:$0xff] }
  0x1b   : > { %544 = vmatpush.bf16.msra.mxu1 %v853_v21  ;;  %868 = vmatpush.bf16.msra.mxu3 %v853_v21 }
  0x1d   : > { %428 = vmatpush.bf16.msra.mxu0 %v844_v4  ;;  %861 = vmatpush.bf16.msra.mxu2 %v844_v4 }
  0x1f   : > { %545 = vmatpush.bf16.msra.mxu1 %v852_v27  ;;  %869 = vmatpush.bf16.msra.mxu3 %v852_v27 }
  0x21   : > { %429 = vmatpush.bf16.msra.mxu0 %v843_v5  ;;  %862 = vmatpush.bf16.msra.mxu2 %v843_v5 }
  0x23   : > { %546 = vmatpush.bf16.msra.mxu1 %v851_v28  ;;  %870 = vmatpush.bf16.msra.mxu3 %v851_v28 }
  0x25   : > { %430 = vmatpush.bf16.msra.mxu0 %v842_v6  ;;  %863 = vmatpush.bf16.msra.mxu2 %v842_v6 }
  0x27   : > { %547 = vmatpush.bf16.msra.mxu1 %v850_v29  ;;  %871 = vmatpush.bf16.msra.mxu3 %v850_v29 }
  0x29   : > { %431 = vmatpush.bf16.msra.mxu0 %v841_v7  ;;  %864 = vmatpush.bf16.msra.mxu2 %v841_v7 }
  0x2b   : > { %548 = vmatpush.bf16.msra.mxu1 %v849_v30  ;;  %872 = vmatpush.bf16.msra.mxu3 %v849_v30 }
  0x2c   : > { %432 = vmatmul.bf16.vlgmr.msra.gmra.mxu0 %v351_v12  ;;  %442 = vmatmul.bf16.vlgmr.msra.gmra.mxu2 %v353_v13 }
  0x3c   : > { %437 = vmatmul.bf16.gmra.mxu0 %v352_v22  ;;  %447 = vmatmul.bf16.gmra.mxu2 %v354_v23 }
  0x4c   : > { %452 = vmatmul.bf16.gmra.mxu2 %v355_v26 }
  0xa9   : > { %v433_v31 = vpop.f32.mrf.mxu0 }
  0xaa   : > { %v434_v34 = vadd.f32 %v899_v32, %v433_v31 }
  0xac   : > { %v458_v37 = vmax.f32 %v434_v34, 0.0 }
  0xaf   : > { %v443_v33 = vpop.f32.mrf.mxu2 }
  0xb0   : > { %v444_v57 = vadd.f32 %v899_v32, %v443_v33 }
  0xb1   : > { %v435_v35 = vpop.f32.mrf.mxu0 }
  0xb2   : > { %v436_v36 = vadd.f32 %v899_v32, %v435_v35  ;;  %v462_v59 = vmax.f32 %v444_v57, 0.0 }
  0xb4   : > { %v459_v38 = vmax.f32 %v436_v36, 0.0 }
  0xb6   : > { %v468_v39 = vpack.c.bf16 %v459_v38, %v458_v37 }
  0xb7   : > { %v445_v40 = vpop.f32.mrf.mxu2 }
  0xb8   : > { %549 = vmatmul.bf16.vlgmr.msra.gmra.mxu1 %v468_v39  ;;  %v446_v55 = vadd.f32 %v899_v32, %v445_v40 }
  0xb9   : > { %v438_v41 = vpop.f32.mrf.mxu0 }
  0xba   : > { %v439_v43 = vadd.f32 %v899_v32, %v438_v41  ;;  %v463_v58 = vmax.f32 %v446_v55, 0.0 }
  0xbc   : > { %v460_v46 = vmax.f32 %v439_v43, 0.0  ;;  %v470_v61 = vpack.c.bf16 %v463_v58, %v462_v59 }
  0xbf   : > { %v448_v42 = vpop.f32.mrf.mxu2 }
  0xc0   : > { %v449_v48 = vadd.f32 %v899_v32, %v448_v42 }
  0xc1   : > { %v440_v44 = vpop.f32.mrf.mxu0 }
  0xc2   : > { %v441_v45 = vadd.f32 %v899_v32, %v440_v44  ;;  %v464_v52 = vmax.f32 %v449_v48, 0.0 }
  0xc4   : > { %v461_v47 = vmax.f32 %v441_v45, 0.0 }
  0xc6   : > { %v469_v49 = vpack.c.bf16 %v461_v47, %v460_v46 }
  0xc7   : > { %v450_v50 = vpop.f32.mrf.mxu2 }
  0xc8   : > { %v451_v51 = vadd.f32 %v899_v32, %v450_v50  ;;  %554 = vmatmul.bf16.gmra.mxu1 %v469_v49 }
  0xca   : > { %v465_v53 = vmax.f32 %v451_v51, 0.0 }
  0xcc   : > { %v471_v54 = vpack.c.bf16 %v465_v53, %v464_v52 }
  0xce   : > { %564 = vmatmul.bf16.vlgmr.msra.gmra.mxu3 %v471_v54 }
  0xcf   : > { %v453_v56 = vpop.f32.mrf.mxu2 }
  0xd0   : > { %v454_v60 = vadd.f32 %v899_v32, %v453_v56 }
  0xd2   : > { %v466_v0 = vmax.f32 %v454_v60, 0.0 }
  0xd7   : > { %v455_v62 = vpop.f32.mrf.mxu2 }
  0xd8   : > { %v456_v63 = vadd.f32 %v899_v32, %v455_v62  ;;  %559 = vmatmul.bf16.gmra.mxu1 %v470_v61  ;;  %v585_v62 = vld [vmem:[%s1071_s13] sm:$0x1] }
  0xda   : > { %v467_v1 = vmax.f32 %v456_v63, 0.0 }
  0xdc   : > { %v472_v2 = vpack.c.bf16 %v467_v1, %v466_v0  ;;  %v603_v1 = vld [vmem:[%s1077_s15] sm:$0x1] }
  0xde   : > { %569 = vmatmul.bf16.gmra.mxu3 %v472_v2 }
 0x135   : > { %v550_v4 = vpop.f32.mrf.mxu1 }
 0x136   : > { %v551_v5 = vadd.f32 %v900_v3, %v550_v4 }
 0x138   : > { %575 = vst [vmem:[%s1063_s10] sm:$0xff] %v551_v5  ;;  %v604_v18 = vmul.f32 %v551_v5, %v551_v5 }
 0x13d   : > { %v552_v6 = vpop.f32.mrf.mxu1 }
 0x13e   : > { %v553_v7 = vadd.f32 %v900_v3, %v552_v6 }
 0x140   : > { %576 = vst [vmem:[%s1063_s10 + $0x8] sm:$0xff] %v553_v7  ;;  %v605_v16 = vmul.f32 %v553_v7, %v553_v7  ;;  %v586_v19 = vadd.f32 %v553_v7, %v551_v5 }
 0x142   : > { %v614_v22 = vadd.f32 %v605_v16, %v604_v18 }
 0x145   : > { %v555_v8 = vpop.f32.mrf.mxu1 }
 0x146   : > { %v556_v9 = vadd.f32 %v900_v3, %v555_v8 }
 0x148   : > { %577 = vst [vmem:[%s1063_s10 + $0x10] sm:$0xff] %v556_v9  ;;  %v606_v20 = vmul.f32 %v556_v9, %v556_v9  ;;  %v587_v23 = vadd.f32 %v586_v19, %v556_v9 }
 0x14a   : > { %v615_v26 = vadd.f32 %v614_v22, %v606_v20 }
 0x14d   : > { %v557_v11 = vpop.f32.mrf.mxu1 }
 0x14e   : > { %v558_v12 = vadd.f32 %v900_v3, %v557_v11 }
 0x150   : > { %578 = vst [vmem:[%s1063_s10 + $0x18] sm:$0xff] %v558_v12  ;;  %v607_v24 = vmul.f32 %v558_v12, %v558_v12  ;;  %v588_v27 = vadd.f32 %v587_v23, %v558_v12 }
 0x151   : > { %v565_v13 = vpop.f32.mrf.mxu3 }
 0x152   : > { %v566_v14 = vadd.f32 %v900_v3, %v565_v13  ;;  %v616_v30 = vadd.f32 %v615_v26, %v607_v24 }
 0x154   : > { %581 = vst [vmem:[%s1063_s10 + $0x30] sm:$0xff] %v566_v14  ;;  %v610_v37 = vmul.f32 %v566_v14, %v566_v14 }
 0x155   : > { %v560_v15 = vpop.f32.mrf.mxu1 }
 0x156   : > { %v561_v17 = vadd.f32 %v900_v3, %v560_v15 }
 0x158   : > { %579 = vst [vmem:[%s1063_s10 + $0x20] sm:$0xff] %v561_v17  ;;  %v608_v28 = vmul.f32 %v561_v17, %v561_v17  ;;  %v589_v31 = vadd.f32 %v588_v27, %v561_v17 }
 0x159   : > { %v567_v21 = vpop.f32.mrf.mxu3 }
 0x15a   : > { %v568_v25 = vadd.f32 %v900_v3, %v567_v21  ;;  %v617_v33 = vadd.f32 %v616_v30, %v608_v28 }
 0x15c   : > { %582 = vst [vmem:[%s1063_s10 + $0x38] sm:$0xff] %v568_v25  ;;  %v611_v42 = vmul.f32 %v568_v25, %v568_v25 }
 0x15d   : > { %v562_v29 = vpop.f32.mrf.mxu1 }
 0x15e   : > { %v563_v32 = vadd.f32 %v900_v3, %v562_v29 }
 0x160   : > { %580 = vst [vmem:[%s1063_s10 + $0x28] sm:$0xff] %v563_v32  ;;  %v590_v34 = vadd.f32 %v589_v31, %v563_v32  ;;  %v609_v35 = vmul.f32 %v563_v32, %v563_v32 }
 0x161   : > { %v570_v36 = vpop.f32.mrf.mxu3 }
 0x162   : > { %v591_v38 = vadd.f32 %v590_v34, %v566_v14  ;;  %v618_v39 = vadd.f32 %v617_v33, %v609_v35  ;;  %v571_v40 = vadd.f32 %v900_v3, %v570_v36 }
 0x164   : > { %v619_v41 = vadd.f32 %v618_v39, %v610_v37  ;;  %583 = vst [vmem:[%s1063_s10 + $0x40] sm:$0xff] %v571_v40  ;;  %v592_v43 = vadd.f32 %v591_v38, %v568_v25  ;;  %v612_v47 = vmul.f32 %v571_v40, %v571_v40 }
 0x166   : > { %v620_v44 = vadd.f32 %v619_v41, %v611_v42  ;;  %v593_v46 = vadd.f32 %v592_v43, %v571_v40 }
 0x168   : > { %v621_v49 = vadd.f32 %v620_v44, %v612_v47 }
 0x169   : > { %v572_v45 = vpop.f32.mrf.mxu3 }
 0x16a   : > { %v573_v48 = vadd.f32 %v900_v3, %v572_v45 }
 0x16c   : > { %584 = vst [vmem:[%s1063_s10 + $0x48] sm:$0xff] %v573_v48  ;;  %v594_v50 = vadd.f32 %v593_v46, %v573_v48  ;;  %v613_v51 = vmul.f32 %v573_v48, %v573_v48 }
 0x16e   : > { %v595_v52 = vrot.slane %v594_v50, 4  ;;  %v622_v53 = vadd.f32 %v621_v49, %v613_v51 }
 0x170   : > { %v596_v54 = vadd.f32 %v595_v52, %v594_v50  ;;  %v623_v55 = vrot.slane %v622_v53, 4 }
 0x172   : > { %v597_v56 = vrot.slane %v596_v54, 2  ;;  %v624_v57 = vadd.f32 %v623_v55, %v622_v53 }
 0x174   : > { %v598_v58 = vadd.f32 %v597_v56, %v596_v54  ;;  %v625_v59 = vrot.slane %v624_v57, 2 }
 0x176   : > { %v599_v60 = vrot.slane %v598_v58, 1  ;;  %v626_v61 = vadd.f32 %v625_v59, %v624_v57 }
 0x178   : > { %v600_v63 = vadd.f32 %v599_v60, %v598_v58  ;;  %v627_v0 = vrot.slane %v626_v61, 1 }
 0x17a   : > { %v601_v2 = vadd.f32 %v600_v63, %v585_v62  ;;  %v628_v3 = vadd.f32 %v627_v0, %v626_v61 }
 0x17c   : > { %602 = vst [vmem:[%s1071_s13] sm:$0x1] %v601_v2  ;;  %v629_v4 = vadd.f32 %v628_v3, %v603_v1 }
 0x17e   : > { %630 = vst [vmem:[%s1077_s15] sm:$0x1] %v629_v4 }
 0x17f PF: > { %s18_s26 = sadd.s32 1, %s923_s26   ;;  %s1110_s24 = smov %s919_s25 }
 0x180   : > { %p15_p5 = scmp.ge.s32.totalorder %s18_s26, 4   ;;  %s1111_s25 = smov %s1113_s27 }
 0x182   :  { %17 = sbr.rel (!%p15_p5) target bundleno = 2 (0x2), region = 98 }

// kernel: dual_path_model_forward.14
= control target key start
LH: loop header
LB: loop body
LE: loop exit
PB: predicated region body
PF: predicated region fallthrough
CT: control target
= control target key end

     0   :  { %s1142_s30 = smov 0   ;;  %s1144_s10 = smov 0   ;;  %s1366_s0 = inlined_call_operand.vmem [shape: f32[2,1,128], index: 0, kind: input, shape index: {}]   ;;  %s1367_s1 = inlined_call_operand.vmem [shape: f32[2,1,128], index: 1, kind: input, shape index: {}]   ;;  %s1368_s2 = inlined_call_operand.vmem [shape: f32[2,80,128], index: 2, kind: input, shape index: {}]   ;;  %s1369_s3 = inlined_call_operand.vmem [shape: f32[2,80,128], index: 3, kind: input, shape index: {}]   ;;  %s1370_s4 = inlined_call_operand.vmem [shape: f32[1,128], index: 4, kind: input, shape index: {}]   ;;  %s1371_s5 = inlined_call_operand.vmem [shape: f32[1,128], index: 5, kind: input, shape index: {}]   ;;  %s1372_s6 = inlined_call_operand.vmem [shape: f32[1,128], index: 6, kind: input, shape index: {}]   ;;  %s1373_s7 = inlined_call_operand.vmem [shape: bf16[128,256], index: 7, kind: input, shape index: {}]   ;;  %s1374_s8 = inlined_call_operand.vmem [shape: f32[1,256], index: 8, kind: input, shape index: {}]   ;;  %s1375_s9 = inlined_call_operand.vmem [shape: f32[2,2,80,128], index: 9, kind: output, shape index: {}]  }
   0x1   :  { %s1146_s11 = smov 0  }
   0x2 LB: > { %s31_s12 = sadd.s32 1, %s1084_s10  ;;  %p913_p0 = scmp.ge.s32.totalorder %s1088_s11, 1  ;;  %s1088_s11 = sphi %s1146_s11, %s19_s11   ;;  %s1084_s10 = sphi %s1144_s10, %s1377_s10   ;;  %s1080_s30 = sphi %s1142_s30, %s1376_s30  }
   0x3   : > { %p33_p1 = scmp.ge.s32.totalorder %s31_s12, 2  ;;  %p341_p2 = scmp.lt.s32.totalorder %s1088_s11, 3 }
   0x5   : > { %s1379_s12 = smov (%p33_p1, %s31_s12), 0  ;;  %p342_p3 = pnand %p913_p0, %p341_p2 }
   0x6   : > { %p400_p4 = scmp.lt.s32.totalorder (!%p342_p3), %s1080_s30, 1 }
   0x7   : > { %345 = sbr.rel (%p342_p3) target bundleno = 472 (0x1d8), region = 56 }
   0xc   : > { %s1381_s30 = smov (!%p400_p4, %s1080_s30), 1  ;;  %vm437_vm0 = vcmask 1040384   ;;  %v1090_v4 = vmov 1280.0   ;;  %v975_v25 = vld [vmem:[%s1373_s7 + $0x70] sm:$0xf] }
   0xd   : > { %s402_s15 = scalar_lea.vmem %s1366_s0, %s1381_s30  ;;  %s405_s18 = scalar_lea.vmem %s1367_s1, %s1381_s30  ;;  %1062 = vrcp.f32 %v1090_v4  ;;  %v1008_v26 = vld [vmem:[%s1373_s7 + $0x74] sm:$0xf0]  ;;  %v1007_v27 = vld [vmem:[%s1373_s7 + $0x74] sm:$0xf]  ;;  %v977_v29 = vld [vmem:[%s1373_s7 + $0x78] sm:$0xf0] }
   0xe   : > { %v436_v0 = vld [vmem:[%s402_s15] sm:$0x1]  ;;  %v976_v28 = vor.u32 %v1008_v26, %v975_v25  ;;  %v1006_v31 = vld [vmem:[%s1373_s7 + $0x64] sm:$0xf0]  ;;  %v980_v32 = vor.u32 %v1007_v27, %v977_v29  ;;  %v1005_v33 = vld [vmem:[%s1373_s7 + $0x64] sm:$0xf] }
   0xf   : > { %v438_v1 = vsel %vm437_vm0, %v436_v0, 0.0  ;;  %v457_v2 = vld [vmem:[%s405_s18] sm:$0x1]  ;;  %v969_v34 = vld [vmem:[%s1373_s7 + $0x68] sm:$0xf0]  ;;  %s1091_s18 = smov 0.0  }
  0x10   : > { %439 = vadd.xlane.f32.xlu0 %v438_v1  ;;  %v458_v3 = vsel %vm437_vm0, %v457_v2, 0.0  ;;  %v967_v30 = vld [vmem:[%s1373_s7 + $0x60] sm:$0xf]  ;;  %697 = vmatpush.bf16.msra.mxu0 %v976_v28  ;;  %v972_v36 = vor.u32 %v1005_v33, %v969_v34  ;;  %v959_v37 = vld [vmem:[%s1373_s7 + $0x50] sm:$0xf]  ;;  %s1025_s13 = smul.u32 80, %s1381_s30 }
  0x11   : > { %1009 = vmatpush.bf16.msra.mxu2 %v976_v28  ;;  %v968_v35 = vor.u32 %v1006_v31, %v967_v30  ;;  %731 = vmatpush.bf16.msra.mxu1 %v980_v32  ;;  %v1004_v38 = vld [vmem:[%s1373_s7 + $0x54] sm:$0xf0]  ;;  %v1003_v39 = vld [vmem:[%s1373_s7 + $0x54] sm:$0xf]  ;;  %v961_v40 = vld [vmem:[%s1373_s7 + $0x58] sm:$0xf0] }
  0x12   : > { %1017 = vmatpush.bf16.msra.mxu3 %v980_v32  ;;  %v960_v41 = vor.u32 %v1004_v38, %v959_v37  ;;  %v964_v42 = vor.u32 %v1003_v39, %v961_v40  ;;  %v951_v51 = vld [vmem:[%s1373_s7 + $0x40] sm:$0xf]  ;;  %v1002_v52 = vld [vmem:[%s1373_s7 + $0x44] sm:$0xf0]  ;;  %v1001_v53 = vld [vmem:[%s1373_s7 + $0x44] sm:$0xf]  ;;  %s1288_s24 = scalar_lea.vmem %s1369_s3, %s1025_s13 }
  0x13   : > { %v1063_v5 = vpop.eup %1062  ;;  %v952_v54 = vor.u32 %v1002_v52, %v951_v51  ;;  %v953_v55 = vld [vmem:[%s1373_s7 + $0x48] sm:$0xf0]  ;;  %v943_v57 = vld [vmem:[%s1373_s7 + $0x30] sm:$0xf]  ;;  %v1000_v58 = vld [vmem:[%s1373_s7 + $0x34] sm:$0xf0] }
  0x14   : > { %v449_v6 = vmul.f32 1280.0, %v1063_v5  ;;  %vm453_vm1 = vweird.f32 %v1063_v5  ;;  %698 = vmatpush.bf16.msra.mxu0 %v968_v35  ;;  %v956_v56 = vor.u32 %v1001_v53, %v953_v55  ;;  %v944_v59 = vor.u32 %v1000_v58, %v943_v57  ;;  %v999_v60 = vld [vmem:[%s1373_s7 + $0x34] sm:$0xf]  ;;  %v945_v61 = vld [vmem:[%s1373_s7 + $0x38] sm:$0xf0]  ;;  %v536_v39 = vld [vmem:[%s1288_s24] sm:$0xff] }
  0x15   : > { %1010 = vmatpush.bf16.msra.mxu2 %v968_v35  ;;  %732 = vmatpush.bf16.msra.mxu1 %v972_v36  ;;  %v948_v62 = vor.u32 %v999_v60, %v945_v61  ;;  %v935_v63 = vld [vmem:[%s1373_s7 + $0x20] sm:$0xf]  ;;  %v998_v0 = vld [vmem:[%s1373_s7 + $0x24] sm:$0xf0]  ;;  %v997_v1 = vld [vmem:[%s1373_s7 + $0x24] sm:$0xf] }
  0x16   : > { %v450_v7 = vsub.f32 1.0, %v449_v6  ;;  %1018 = vmatpush.bf16.msra.mxu3 %v972_v36  ;;  %v936_v2 = vor.u32 %v998_v0, %v935_v63  ;;  %v996_v6 = vld [vmem:[%s1373_s7 + $0x14] sm:$0xf0]  ;;  %v537_v40 = vld [vmem:[%s1288_s24 + $0x8] sm:$0xff]  ;;  %v538_v57 = vld [vmem:[%s1288_s24 + $0x10] sm:$0xff]  ;;  %s1026_s29 = smul.u32 160, %s1381_s30 }
  0x17   : > { %v539_v58 = vld [vmem:[%s1288_s24 + $0x18] sm:$0xff] }
  0x18   : > { %459 = vadd.xlane.f32.xlu0 %v458_v3  ;;  %v451_v11 = vmul.f32 %v1063_v5, %v450_v7  ;;  %699 = vmatpush.bf16.msra.mxu0 %v960_v41  ;;  %v937_v3 = vld [vmem:[%s1373_s7 + $0x28] sm:$0xf0]  ;;  %v995_v7 = vld [vmem:[%s1373_s7 + $0x14] sm:$0xf]  ;;  %s1335_s15 = scalar_lea.vmem %s1375_s9, %s1026_s29 }
  0x19   : > { %1011 = vmatpush.bf16.msra.mxu2 %v960_v41  ;;  %733 = vmatpush.bf16.msra.mxu1 %v964_v42  ;;  %v940_v4 = vor.u32 %v997_v1, %v937_v3 }
  0x1a   : > { %v452_v14 = vadd.f32 %v1063_v5, %v451_v11  ;;  %1019 = vmatpush.bf16.msra.mxu3 %v964_v42  ;;  %v919_v11 = vld [vmem:[%s1373_s7] sm:$0xf] }
  0x1b   : > { %v540_v42 = vld [vmem:[%s1288_s24 + $0x20] sm:$0xff] }
  0x1c   : > { %v454_v20 = vsel %vm453_vm1, %v1063_v5, %v452_v14  ;;  %700 = vmatpush.bf16.msra.mxu0 %v952_v54  ;;  %v927_v5 = vld [vmem:[%s1373_s7 + $0x10] sm:$0xf]  ;;  %v921_v14 = vld [vmem:[%s1373_s7 + $0x8] sm:$0xf0] }
  0x1d   : > { %1012 = vmatpush.bf16.msra.mxu2 %v952_v54  ;;  %734 = vmatpush.bf16.msra.mxu1 %v956_v56 }
  0x1e   : > { %1020 = vmatpush.bf16.msra.mxu3 %v956_v56  ;;  %v543_v56 = vld [vmem:[%s1288_s24 + $0x38] sm:$0xff] }
  0x20   : > { %701 = vmatpush.bf16.msra.mxu0 %v944_v59 }
  0x21   : > { %1013 = vmatpush.bf16.msra.mxu2 %v944_v59  ;;  %735 = vmatpush.bf16.msra.mxu1 %v948_v62 }
  0x22   : > { %1021 = vmatpush.bf16.msra.mxu3 %v948_v62 }
  0x24   : > { %702 = vmatpush.bf16.msra.mxu0 %v936_v2 }
  0x25   : > { %1014 = vmatpush.bf16.msra.mxu2 %v936_v2  ;;  %736 = vmatpush.bf16.msra.mxu1 %v940_v4 }
  0x26   : > { %1022 = vmatpush.bf16.msra.mxu3 %v940_v4 }
  0x83   : > { %v440_v8 = vpop.xlane.xlu0 %439 }
  0x84   : > { %v441_v9 = vrot.slane %v440_v8, 4 }
  0x86   : > { %v442_v10 = vadd.f32 %v441_v9, %v440_v8  ;;  %v928_v8 = vor.u32 %v996_v6, %v927_v5  ;;  %v929_v9 = vld [vmem:[%s1373_s7 + $0x18] sm:$0xf0] }
  0x88   : > { %v443_v12 = vrot.slane %v442_v10, 2  ;;  %703 = vmatpush.bf16.msra.mxu0 %v928_v8  ;;  %1015 = vmatpush.bf16.msra.mxu2 %v928_v8 }
  0x8a   : > { %v444_v13 = vadd.f32 %v443_v12, %v442_v10  ;;  %v932_v10 = vor.u32 %v995_v7, %v929_v9  ;;  %v994_v12 = vld [vmem:[%s1373_s7 + $0x4] sm:$0xf0] }
  0x8b   : > { %v460_v15 = vpop.xlane.xlu0 %459 }
  0x8c   : > { %v461_v16 = vrot.slane %v460_v15, 4  ;;  %v445_v17 = vrot.slane %v444_v13, 1  ;;  %737 = vmatpush.bf16.msra.mxu1 %v932_v10  ;;  %1023 = vmatpush.bf16.msra.mxu3 %v932_v10 }
  0x8e   : > { %v462_v18 = vadd.f32 %v461_v16, %v460_v15  ;;  %v446_v19 = vadd.f32 %v445_v17, %v444_v13  ;;  %v993_v13 = vld [vmem:[%s1373_s7 + $0x4] sm:$0xf]  ;;  %v920_v15 = vor.u32 %v994_v12, %v919_v11  ;;  %v493_v17 = vld [vmem:[%s1370_s4] sm:$0x1] }
  0x8f   : > { %v924_v16 = vor.u32 %v993_v13, %v921_v14 }
  0x90   : > { %v463_v21 = vrot.slane %v462_v18, 2  ;;  %1027 = vpush %v446_v19  ;;  %704 = vmatpush.bf16.msra.mxu0 %v920_v15  ;;  %1016 = vmatpush.bf16.msra.mxu2 %v920_v15 }
  0x91   : > { %1029 = vpush %v454_v20  ;;  %738 = vmatpush.bf16.msra.mxu1 %v924_v16  ;;  %1024 = vmatpush.bf16.msra.mxu3 %v924_v16  ;;  %v496_v20 = vld [vmem:[%s1371_s5] sm:$0x1] }
  0x92   : > { %v464_v22 = vadd.f32 %v463_v21, %v462_v18 }
  0x94   : > { %v465_v23 = vrot.slane %v464_v22, 1 }
  0x96   : > { %v466_v24 = vadd.f32 %v465_v23, %v464_v22 }
  0x98   : > { %1031 = vpush %v466_v24 }
  0xc1   : > { %s1028_s19 = spop %1027 }
  0xc2   : > { %s1170_s20 = spop %1029 }
  0xc3   : > { %s1182_s27 = smul.f32 %s1170_s20, %s1028_s19 }
  0xc5   : > { %s477_s26 = smul.f32 %s1182_s27, %s1182_s27  ;;  %v497_v21 = vstv %s1182_s27 }
  0xc9   : > { %s1032_s28 = spop %1031 }
  0xca   : > { %s476_s16 = smul.f32 %s1032_s28, %s1170_s20 }
  0xcc   : > { %s478_s17 = ssub.f32 %s476_s16, %s477_s26 }
  0xce   : > { %s479_s19 = smax.f32 %s1091_s18, %s478_s17  ;;  %s414_s18 = scalar_lea.vmem %s1368_s2, %s1025_s13 }
  0xcf   : > { %s480_s21 = sadd.f32 1e-08, %s479_s19  ;;  %v500_v22 = vld [vmem:[%s414_s18] sm:$0xff]  ;;  %v501_v25 = vld [vmem:[%s414_s18 + $0x8] sm:$0xff]  ;;  %v506_v28 = vld [vmem:[%s414_s18 + $0x30] sm:$0xff] }
  0xd0   : > { %v504_v26 = vld [vmem:[%s414_s18 + $0x20] sm:$0xff]  ;;  %v505_v27 = vld [vmem:[%s414_s18 + $0x28] sm:$0xff]  ;;  %v507_v29 = vld [vmem:[%s414_s18 + $0x38] sm:$0xff] }
  0xd1   : > { %v481_v43 = vstv %s480_s21  ;;  %v502_v30 = vld [vmem:[%s414_s18 + $0x10] sm:$0xff]  ;;  %v503_v32 = vld [vmem:[%s414_s18 + $0x18] sm:$0xff]  ;;  %v508_v33 = vld [vmem:[%s414_s18 + $0x40] sm:$0xff] }
  0xd2   : > { %1064 = vrsqrt.f32 %v481_v43  ;;  %vm488_vm3 = vweird.f32 %v481_v43  ;;  %v509_v34 = vld [vmem:[%s414_s18 + $0x48] sm:$0xff] }
  0xd8   : > { %v1065_v44 = vpop.eup %1064 }
  0xd9   : > { %v483_v45 = vmul.f32 %v1065_v44, %v481_v43  ;;  %vm489_vm2 = vweird.f32 %v1065_v44 }
  0xda   : > { %vm490_vm4 = vmor %vm488_vm3, %vm489_vm2 }
  0xdb   : > { %v484_v46 = vmul.f32 %v1065_v44, %v483_v45  ;;  %v1298_v45 = vld [vmem:[%s1372_s6] ss:$0 sm:$0xff] }
  0xdd   : > { %v485_v47 = vmul.f32 0.5, %v484_v46  ;;  %v541_v46 = vld [vmem:[%s1288_s24 + $0x28] sm:$0xff] }
  0xdf   : > { %v486_v48 = vsub.f32 1.5, %v485_v47  ;;  %v542_v47 = vld [vmem:[%s1288_s24 + $0x30] sm:$0xff] }
  0xe1   : > { %v487_v49 = vmul.f32 %v1065_v44, %v486_v48 }
  0xe3   : > { %v491_v50 = vsel %vm490_vm4, %v1065_v44, %v487_v49 }
  0xe4   : > { %1033 = vpush %v491_v50 }
 0x115   : > { %s1034_s19 = spop %1033 }
 0x116   : > { %v494_v18 = vstv %s1034_s19 }
 0x117   : > { %v495_v19 = vmul.f32 %v494_v18, %v493_v17 }
 0x119   : > { %v498_v23 = vmul.f32 %v497_v21, %v495_v19  ;;  %v511_v24 = vperm.slane %v495_v19, 0 }
 0x11b   : > { %v499_v31 = vsub.f32 %v496_v20, %v498_v23  ;;  %v513_v35 = vmul.f32 %v511_v24, %v500_v22  ;;  %v514_v36 = vmul.f32 %v511_v24, %v501_v25  ;;  %v517_v37 = vmul.f32 %v511_v24, %v504_v26  ;;  %v544_v22 = vld [vmem:[%s1288_s24 + $0x40] sm:$0xff]  ;;  %v545_v23 = vld [vmem:[%s1288_s24 + $0x48] sm:$0xff] }
 0x11c   : > { %v518_v41 = vmul.f32 %v511_v24, %v505_v27  ;;  %v519_v43 = vmul.f32 %v511_v24, %v506_v28  ;;  %v520_v44 = vmul.f32 %v511_v24, %v507_v29  ;;  %v515_v48 = vmul.f32 %v511_v24, %v502_v30 }
 0x11d   : > { %v1290_v38 = vperm.slane %v499_v31, 0  ;;  %v516_v49 = vmul.f32 %v511_v24, %v503_v32  ;;  %v521_v50 = vmul.f32 %v511_v24, %v508_v33  ;;  %v522_v51 = vmul.f32 %v511_v24, %v509_v34 }
 0x11f   : > { %v526_v52 = vadd.f32 %v1290_v38, %v513_v35  ;;  %v527_v53 = vadd.f32 %v1290_v38, %v514_v36  ;;  %v530_v54 = vadd.f32 %v1290_v38, %v517_v37  ;;  %v531_v55 = vadd.f32 %v1290_v38, %v518_v41 }
 0x120   : > { %v532_v59 = vadd.f32 %v1290_v38, %v519_v43  ;;  %v533_v60 = vadd.f32 %v1290_v38, %v520_v44  ;;  %v528_v61 = vadd.f32 %v1290_v38, %v515_v48  ;;  %v529_v62 = vadd.f32 %v1290_v38, %v516_v49 }
 0x121   : > { %v546_v63 = vadd.f32 %v536_v39, %v526_v52  ;;  %v547_v0 = vadd.f32 %v537_v40, %v527_v53  ;;  %v550_v1 = vadd.f32 %v540_v42, %v530_v54  ;;  %v551_v2 = vadd.f32 %v541_v46, %v531_v55 }
 0x122   : > { %v552_v3 = vadd.f32 %v542_v47, %v532_v59  ;;  %v553_v4 = vadd.f32 %v543_v56, %v533_v60  ;;  %v548_v5 = vadd.f32 %v538_v57, %v528_v61  ;;  %v549_v6 = vadd.f32 %v539_v58, %v529_v62 }
 0x123   : > { %vm556_vm5 = vcmp.ge.f32.partialorder %v546_v63, 0.0  ;;  %vm557_vm6 = vcmp.ge.f32.partialorder %v547_v0, 0.0  ;;  %v570_v7 = vmul.f32 %v1298_v45, %v546_v63  ;;  %v571_v8 = vmul.f32 %v1298_v45, %v547_v0 }
 0x124   : > { %vm560_vm7 = vcmp.ge.f32.partialorder %v550_v1, 0.0  ;;  %vm561_vm8 = vcmp.ge.f32.partialorder %v551_v2, 0.0  ;;  %v574_v9 = vmul.f32 %v1298_v45, %v550_v1  ;;  %v575_v10 = vmul.f32 %v1298_v45, %v551_v2 }
 0x125   : > { %v580_v11 = vsel %vm556_vm5, %v546_v63, %v570_v7  ;;  %v581_v12 = vsel %vm557_vm6, %v547_v0, %v571_v8  ;;  %vm562_vm9 = vcmp.ge.f32.partialorder %v552_v3, 0.0  ;;  %vm563_vm10 = vcmp.ge.f32.partialorder %v553_v4, 0.0 }
 0x126   : > { %v590_v13 = vpack.c.bf16 %v581_v12, %v580_v11  ;;  %v584_v14 = vsel %vm560_vm7, %v550_v1, %v574_v9  ;;  %v585_v15 = vsel %vm561_vm8, %v551_v2, %v575_v10  ;;  %v576_v16 = vmul.f32 %v1298_v45, %v552_v3 }
 0x127   : > { %v592_v17 = vpack.c.bf16 %v585_v15, %v584_v14  ;;  %v577_v18 = vmul.f32 %v1298_v45, %v553_v4  ;;  %vm558_vm11 = vcmp.ge.f32.partialorder %v548_v5, 0.0  ;;  %vm559_vm12 = vcmp.ge.f32.partialorder %v549_v6, 0.0 }
 0x128   : > { %705 = vmatmul.bf16.vlgmr.msra.gmra.mxu0 %v590_v13  ;;  %739 = vmatmul.bf16.vlgmr.msra.gmra.mxu1 %v590_v13  ;;  %v586_v19 = vsel %vm562_vm9, %v552_v3, %v576_v16  ;;  %v572_v20 = vmul.f32 %v1298_v45, %v548_v5  ;;  %v573_v21 = vmul.f32 %v1298_v45, %v549_v6 }
 0x129   : > { %715 = vmatmul.bf16.vlgmr.msra.gmra.mxu2 %v592_v17  ;;  %v587_v24 = vsel %vm563_vm10, %v553_v4, %v577_v18  ;;  %v534_v25 = vadd.f32 %v1290_v38, %v521_v50  ;;  %v535_v26 = vadd.f32 %v1290_v38, %v522_v51  ;;  %v611_v38 = vld [vmem:[%s1374_s8] sm:$0x3] }
 0x12a   : > { %v593_v27 = vpack.c.bf16 %v587_v24, %v586_v19  ;;  %v582_v28 = vsel %vm558_vm11, %v548_v5, %v572_v20  ;;  %v583_v29 = vsel %vm559_vm12, %v549_v6, %v573_v21  ;;  %v613_v39 = vperm.slane %v611_v38, 0 }
 0x12b   : > { %v591_v30 = vpack.c.bf16 %v583_v29, %v582_v28  ;;  %v554_v31 = vadd.f32 %v544_v22, %v534_v25  ;;  %v555_v32 = vadd.f32 %v545_v23, %v535_v26  ;;  %v614_v40 = vperm.slane %v611_v38, 1 }
 0x12c   : > { %754 = vmatmul.bf16.vlgmr.msra.gmra.mxu3 %v593_v27 }
 0x12d   : > { %vm564_vm13 = vcmp.ge.f32.partialorder %v554_v31, 0.0  ;;  %vm565_vm14 = vcmp.ge.f32.partialorder %v555_v32, 0.0  ;;  %v578_v33 = vmul.f32 %v1298_v45, %v554_v31  ;;  %v579_v34 = vmul.f32 %v1298_v45, %v555_v32 }
 0x12f   : > { %v588_v35 = vsel %vm564_vm13, %v554_v31, %v578_v33  ;;  %v589_v36 = vsel %vm565_vm14, %v555_v32, %v579_v34 }
 0x130   : > { %v594_v37 = vpack.c.bf16 %v589_v36, %v588_v35 }
 0x138   : > { %710 = vmatmul.bf16.gmra.mxu0 %v591_v30  ;;  %744 = vmatmul.bf16.gmra.mxu1 %v591_v30 }
 0x139   : > { %720 = vmatmul.bf16.gmra.mxu2 %v593_v27 }
 0x13c   : > { %759 = vmatmul.bf16.gmra.mxu3 %v594_v37 }
 0x148   : > { %749 = vmatmul.bf16.gmra.mxu1 %v592_v17 }
 0x149   : > { %725 = vmatmul.bf16.gmra.mxu2 %v594_v37 }
 0x1a5   : > { %v706_v41 = vpop.f32.mrf.mxu0  ;;  %v740_v42 = vpop.f32.mrf.mxu1 }
 0x1a6   : > { %v707_v43 = vadd.f32 %v706_v41, %v613_v39  ;;  %v741_v44 = vadd.f32 %v740_v42, %v614_v40 }
 0x1a8   : > { %765 = vst [vmem:[%s1335_s15] sm:$0xff] %v707_v43 }
 0x1a9   : > { %981 = vst [vmem:[%s1335_s15 + $0x50] sm:$0xff] %v741_v44 }
 0x1ac   : > { %v716_v45 = vpop.f32.mrf.mxu2 }
 0x1ad   : > { %v717_v46 = vadd.f32 %v716_v45, %v613_v39  ;;  %v708_v47 = vpop.f32.mrf.mxu0  ;;  %v742_v48 = vpop.f32.mrf.mxu1 }
 0x1ae   : > { %v709_v49 = vadd.f32 %v708_v47, %v613_v39  ;;  %v743_v50 = vadd.f32 %v742_v48, %v614_v40 }
 0x1af   : > { %769 = vst [vmem:[%s1335_s15 + $0x20] sm:$0xff] %v717_v46  ;;  %v755_v51 = vpop.f32.mrf.mxu3 }
 0x1b0   : > { %v756_v52 = vadd.f32 %v755_v51, %v614_v40  ;;  %766 = vst [vmem:[%s1335_s15 + $0x8] sm:$0xff] %v709_v49 }
 0x1b1   : > { %982 = vst [vmem:[%s1335_s15 + $0x58] sm:$0xff] %v743_v50 }
 0x1b2   : > { %987 = vst [vmem:[%s1335_s15 + $0x80] sm:$0xff] %v756_v52 }
 0x1b4   : > { %v718_v53 = vpop.f32.mrf.mxu2 }
 0x1b5   : > { %v719_v54 = vadd.f32 %v718_v53, %v613_v39  ;;  %v711_v55 = vpop.f32.mrf.mxu0  ;;  %v745_v56 = vpop.f32.mrf.mxu1 }
 0x1b6   : > { %v712_v57 = vadd.f32 %v711_v55, %v613_v39  ;;  %v746_v58 = vadd.f32 %v745_v56, %v614_v40 }
 0x1b7   : > { %770 = vst [vmem:[%s1335_s15 + $0x28] sm:$0xff] %v719_v54  ;;  %v757_v59 = vpop.f32.mrf.mxu3 }
 0x1b8   : > { %v758_v60 = vadd.f32 %v757_v59, %v614_v40  ;;  %767 = vst [vmem:[%s1335_s15 + $0x10] sm:$0xff] %v712_v57 }
 0x1b9   : > { %983 = vst [vmem:[%s1335_s15 + $0x60] sm:$0xff] %v746_v58 }
 0x1ba   : > { %988 = vst [vmem:[%s1335_s15 + $0x88] sm:$0xff] %v758_v60 }
 0x1bc   : > { %v721_v61 = vpop.f32.mrf.mxu2 }
 0x1bd   : > { %v722_v62 = vadd.f32 %v721_v61, %v613_v39  ;;  %v713_v63 = vpop.f32.mrf.mxu0  ;;  %v747_v0 = vpop.f32.mrf.mxu1 }
 0x1be   : > { %v714_v1 = vadd.f32 %v713_v63, %v613_v39  ;;  %v748_v2 = vadd.f32 %v747_v0, %v614_v40 }
 0x1bf   : > { %771 = vst [vmem:[%s1335_s15 + $0x30] sm:$0xff] %v722_v62  ;;  %v760_v3 = vpop.f32.mrf.mxu3 }
 0x1c0   : > { %v761_v4 = vadd.f32 %v760_v3, %v614_v40  ;;  %768 = vst [vmem:[%s1335_s15 + $0x18] sm:$0xff] %v714_v1 }
 0x1c1   : > { %984 = vst [vmem:[%s1335_s15 + $0x68] sm:$0xff] %v748_v2 }
 0x1c2   : > { %989 = vst [vmem:[%s1335_s15 + $0x90] sm:$0xff] %v761_v4 }
 0x1c4   : > { %v723_v5 = vpop.f32.mrf.mxu2 }
 0x1c5   : > { %v724_v6 = vadd.f32 %v723_v5, %v613_v39  ;;  %v750_v7 = vpop.f32.mrf.mxu1 }
 0x1c6   : > { %v751_v8 = vadd.f32 %v750_v7, %v614_v40 }
 0x1c7   : > { %772 = vst [vmem:[%s1335_s15 + $0x38] sm:$0xff] %v724_v6  ;;  %v762_v9 = vpop.f32.mrf.mxu3 }
 0x1c8   : > { %v763_v10 = vadd.f32 %v762_v9, %v614_v40  ;;  %985 = vst [vmem:[%s1335_s15 + $0x70] sm:$0xff] %v751_v8 }
 0x1ca   : > { %990 = vst [vmem:[%s1335_s15 + $0x98] sm:$0xff] %v763_v10 }
 0x1cc   : > { %v726_v11 = vpop.f32.mrf.mxu2 }
 0x1cd   : > { %v727_v12 = vadd.f32 %v726_v11, %v613_v39  ;;  %v752_v13 = vpop.f32.mrf.mxu1 }
 0x1ce   : > { %v753_v14 = vadd.f32 %v752_v13, %v614_v40 }
 0x1cf   : > { %773 = vst [vmem:[%s1335_s15 + $0x40] sm:$0xff] %v727_v12 }
 0x1d0   : > { %986 = vst [vmem:[%s1335_s15 + $0x78] sm:$0xff] %v753_v14 }
 0x1d4   : > { %v728_v15 = vpop.f32.mrf.mxu2 }
 0x1d5   : > { %v729_v16 = vadd.f32 %v728_v15, %v613_v39 }
 0x1d7   : > { %774 = vst [vmem:[%s1335_s15 + $0x48] sm:$0xff] %v729_v16 }
 0x1d8 PF: > { %s19_s11 = sadd.s32 1, %s1088_s11   ;;  %s1376_s30 = smov %s1084_s10 }
 0x1d9   : > { %p16_p5 = scmp.ge.s32.totalorder %s19_s11, 4   ;;  %s1377_s10 = smov %s1379_s12 }
 0x1db   :  { %18 = sbr.rel (!%p16_p5) target bundleno = 2 (0x2), region = 96 }

// kernel: dual_path_model_forward.15
= control target key start
LH: loop header
LB: loop body
LE: loop exit
PB: predicated region body
PF: predicated region fallthrough
CT: control target
= control target key end

     0   :  { %s889_s15 = smov 0   ;;  %s891_s16 = smov 0   ;;  %s1056_s0 = inlined_call_operand.vmem [shape: f32[4,32,128], index: 0, kind: input, shape index: {}]   ;;  %s1057_s1 = inlined_call_operand.vmem [shape: bf16[128,256], index: 1, kind: input, shape index: {}]   ;;  %s1058_s2 = inlined_call_operand.vmem [shape: f32[1,256], index: 2, kind: input, shape index: {}]   ;;  %s1059_s3 = inlined_call_operand.vmem [shape: bf16[128,128], index: 3, kind: input, shape index: {}]   ;;  %s1060_s4 = inlined_call_operand.vmem [shape: f32[4,32,128], index: 4, kind: output, shape index: {}]  }
   0x1   :  { %s893_s17 = smov 0  }
   0x2 LB: > { %s26_s18 = sadd.s32 1, %s858_s16  ;;  %p651_p0 = scmp.ge.s32.totalorder %s862_s17, 1  ;;  %s862_s17 = sphi %s893_s17, %s14_s17   ;;  %s858_s16 = sphi %s891_s16, %s1062_s16   ;;  %s854_s15 = sphi %s889_s15, %s1061_s15  }
   0x3   : > { %p28_p1 = scmp.ge.s32.totalorder %s26_s18, 4  ;;  %p183_p2 = scmp.lt.s32.totalorder %s862_s17, 5 }
   0x5   : > { %s1064_s18 = smov (%p28_p1, %s26_s18), 0  ;;  %p184_p3 = pnand %p651_p0, %p183_p2 }
   0x6   : > { %p218_p4 = scmp.lt.s32.totalorder (!%p184_p3), %s854_s15, 3 }
   0x7   : > { %187 = sbr.rel (%p184_p3) target bundleno = 373 (0x175), region = 36 }
   0xc   : > { %v774_v0 = vld [vmem:[%s1057_s1 + $0x74] sm:$0xf]  ;;  %v716_v1 = vld [vmem:[%s1057_s1 + $0x78] sm:$0xf0]  ;;  %v772_v2 = vld [vmem:[%s1057_s1 + $0x64] sm:$0xf] }
   0xd   : > { %v719_v3 = vor.u32 %v774_v0, %v716_v1  ;;  %v708_v4 = vld [vmem:[%s1057_s1 + $0x68] sm:$0xf0]  ;;  %v714_v5 = vld [vmem:[%s1057_s1 + $0x70] sm:$0xf]  ;;  %v770_v7 = vld [vmem:[%s1057_s1 + $0x54] sm:$0xf] }
   0xe   : > { %v711_v6 = vor.u32 %v772_v2, %v708_v4  ;;  %v775_v8 = vld [vmem:[%s1057_s1 + $0x74] sm:$0xf0]  ;;  %v700_v9 = vld [vmem:[%s1057_s1 + $0x58] sm:$0xf0]  ;;  %v706_v11 = vld [vmem:[%s1057_s1 + $0x60] sm:$0xf] }
   0xf   : > { %364 = vmatpush.bf16.msra.mxu1 %v719_v3  ;;  %v715_v10 = vor.u32 %v775_v8, %v714_v5  ;;  %v773_v12 = vld [vmem:[%s1057_s1 + $0x64] sm:$0xf0]  ;;  %v703_v14 = vor.u32 %v770_v7, %v700_v9  ;;  %v698_v15 = vld [vmem:[%s1057_s1 + $0x50] sm:$0xf]  ;;  %v771_v16 = vld [vmem:[%s1057_s1 + $0x54] sm:$0xf0] }
  0x10   : > { %v707_v13 = vor.u32 %v773_v12, %v706_v11  ;;  %v768_v17 = vld [vmem:[%s1057_s1 + $0x44] sm:$0xf]  ;;  %v692_v18 = vld [vmem:[%s1057_s1 + $0x48] sm:$0xf0]  ;;  %v699_v19 = vor.u32 %v771_v16, %v698_v15  ;;  %v690_v21 = vld [vmem:[%s1057_s1 + $0x40] sm:$0xf] }
  0x11   : > { %345 = vmatpush.bf16.msra.mxu0 %v715_v10  ;;  %784 = vmatpush.bf16.msra.mxu3 %v715_v10  ;;  %v695_v20 = vor.u32 %v768_v17, %v692_v18  ;;  %v769_v22 = vld [vmem:[%s1057_s1 + $0x44] sm:$0xf0]  ;;  %v766_v23 = vld [vmem:[%s1057_s1 + $0x34] sm:$0xf]  ;;  %v684_v24 = vld [vmem:[%s1057_s1 + $0x38] sm:$0xf0] }
  0x12   : > { %v691_v25 = vor.u32 %v769_v22, %v690_v21  ;;  %v687_v26 = vor.u32 %v766_v23, %v684_v24  ;;  %v682_v27 = vld [vmem:[%s1057_s1 + $0x30] sm:$0xf]  ;;  %v767_v28 = vld [vmem:[%s1057_s1 + $0x34] sm:$0xf0]  ;;  %v764_v29 = vld [vmem:[%s1057_s1 + $0x24] sm:$0xf] }
  0x13   : > { %365 = vmatpush.bf16.msra.mxu1 %v711_v6  ;;  %v676_v30 = vld [vmem:[%s1057_s1 + $0x28] sm:$0xf0]  ;;  %s1066_s15 = smov (!%p218_p4, %s854_s15), 3  ;;  %v683_v31 = vor.u32 %v767_v28, %v682_v27  ;;  %v674_v33 = vld [vmem:[%s1057_s1 + $0x20] sm:$0xf]  ;;  %v783_v54 = vld [vmem:[%s1059_s3 + $0x38] sm:$0xff] }
  0x14   : > { %v679_v32 = vor.u32 %v764_v29, %v676_v30  ;;  %v765_v34 = vld [vmem:[%s1057_s1 + $0x24] sm:$0xf0]  ;;  %v762_v35 = vld [vmem:[%s1057_s1 + $0x14] sm:$0xf]  ;;  %v668_v36 = vld [vmem:[%s1057_s1 + $0x18] sm:$0xf0]  ;;  %533 = vmatpush.bf16.msra.mxu2 %v783_v54 }
  0x15   : > { %346 = vmatpush.bf16.msra.mxu0 %v707_v13  ;;  %785 = vmatpush.bf16.msra.mxu3 %v707_v13  ;;  %s758_s27 = sshll.u32 %s1066_s15, 5  ;;  %v675_v37 = vor.u32 %v765_v34, %v674_v33  ;;  %v671_v38 = vor.u32 %v762_v35, %v668_v36  ;;  %v666_v39 = vld [vmem:[%s1057_s1 + $0x10] sm:$0xf]  ;;  %v763_v40 = vld [vmem:[%s1057_s1 + $0x14] sm:$0xf0]  ;;  %v781_v56 = vld [vmem:[%s1059_s3 + $0x28] sm:$0xff] }
  0x16   : > { %v760_v41 = vld [vmem:[%s1057_s1 + $0x4] sm:$0xf]  ;;  %v660_v42 = vld [vmem:[%s1057_s1 + $0x8] sm:$0xf0]  ;;  %s225_s12 = scalar_lea.vmem %s1056_s0, %s758_s27  ;;  %v667_v43 = vor.u32 %v763_v40, %v666_v39  ;;  %v658_v44 = vld [vmem:[%s1057_s1] sm:$0xf]  ;;  %s235_s20 = scalar_lea.vmem %s1060_s4, %s758_s27 }
  0x17   : > { %366 = vmatpush.bf16.msra.mxu1 %v703_v14  ;;  %v663_v45 = vor.u32 %v760_v41, %v660_v42  ;;  %v237_v46 = vld [vmem:[%s225_s12] sm:$0xff]  ;;  %v238_v47 = vld [vmem:[%s225_s12 + $0x8] sm:$0xff]  ;;  %v239_v51 = vld [vmem:[%s225_s12 + $0x10] sm:$0xff] }
  0x18   : > { %v761_v48 = vld [vmem:[%s1057_s1 + $0x4] sm:$0xf0]  ;;  %v241_v49 = vpack.c.bf16 %v238_v47, %v237_v46  ;;  %v240_v52 = vld [vmem:[%s225_s12 + $0x18] sm:$0xff]  ;;  %v782_v55 = vld [vmem:[%s1059_s3 + $0x30] sm:$0xff] }
  0x19   : > { %347 = vmatpush.bf16.msra.mxu0 %v699_v19  ;;  %786 = vmatpush.bf16.msra.mxu3 %v699_v19  ;;  %v659_v50 = vor.u32 %v761_v48, %v658_v44  ;;  %v242_v53 = vpack.c.bf16 %v240_v52, %v239_v51  ;;  %v780_v57 = vld [vmem:[%s1059_s3 + $0x20] sm:$0xff]  ;;  %v779_v59 = vld [vmem:[%s1059_s3 + $0x18] sm:$0xff]  ;;  %v778_v61 = vld [vmem:[%s1059_s3 + $0x10] sm:$0xff] }
  0x1a   : > { %534 = vmatpush.bf16.msra.mxu2 %v782_v55  ;;  %v259_v58 = vld [vmem:[%s1058_s2] sm:$0x3]  ;;  %v777_v0 = vld [vmem:[%s1059_s3 + $0x8] sm:$0xff] }
  0x1b   : > { %367 = vmatpush.bf16.msra.mxu1 %v695_v20  ;;  %v262_v60 = vperm.slane %v259_v58, 1  ;;  %v776_v2 = vld [vmem:[%s1059_s3] sm:$0xff]  ;;  %v261_v15 = vperm.slane %v259_v58, 0 }
  0x1d   : > { %348 = vmatpush.bf16.msra.mxu0 %v691_v25  ;;  %787 = vmatpush.bf16.msra.mxu3 %v691_v25 }
  0x1e   : > { %535 = vmatpush.bf16.msra.mxu2 %v781_v56 }
  0x1f   : > { %368 = vmatpush.bf16.msra.mxu1 %v687_v26 }
  0x21   : > { %349 = vmatpush.bf16.msra.mxu0 %v683_v31  ;;  %788 = vmatpush.bf16.msra.mxu3 %v683_v31 }
  0x22   : > { %536 = vmatpush.bf16.msra.mxu2 %v780_v57 }
  0x23   : > { %369 = vmatpush.bf16.msra.mxu1 %v679_v32 }
  0x25   : > { %350 = vmatpush.bf16.msra.mxu0 %v675_v37  ;;  %789 = vmatpush.bf16.msra.mxu3 %v675_v37 }
  0x26   : > { %537 = vmatpush.bf16.msra.mxu2 %v779_v59 }
  0x27   : > { %370 = vmatpush.bf16.msra.mxu1 %v671_v38 }
  0x29   : > { %351 = vmatpush.bf16.msra.mxu0 %v667_v43  ;;  %790 = vmatpush.bf16.msra.mxu3 %v667_v43 }
  0x2a   : > { %538 = vmatpush.bf16.msra.mxu2 %v778_v61 }
  0x2b   : > { %371 = vmatpush.bf16.msra.mxu1 %v663_v45 }
  0x2d   : > { %352 = vmatpush.bf16.msra.mxu0 %v659_v50  ;;  %791 = vmatpush.bf16.msra.mxu3 %v659_v50 }
  0x2e   : > { %372 = vmatmul.bf16.vlgmr.msra.gmra.mxu1 %v241_v49  ;;  %539 = vmatpush.bf16.msra.mxu2 %v777_v0 }
  0x30   : > { %353 = vmatmul.bf16.vlgmr.msra.gmra.mxu0 %v241_v49  ;;  %358 = vmatmul.bf16.vlgmr.msra.gmra.mxu3 %v242_v53 }
  0x32   : > { %540 = vmatpush.bf16.msra.mxu2 %v776_v2 }
  0x3e   : > { %377 = vmatmul.bf16.gmra.mxu1 %v242_v53 }
  0xab   : > { %v373_v62 = vpop.f32.mrf.mxu1 }
  0xac   : > { %v374_v63 = vadd.f32 %v373_v62, %v262_v60 }
  0xad   : > { %v354_v8 = vpop.f32.mrf.mxu0 }
  0xae   : > { %v720_v1 = vmul.f32 -1.442695, %v374_v63  ;;  %v355_v18 = vadd.f32 %v354_v8, %v261_v15 }
  0xb0   : > { %816 = vpow2.f32 %v720_v1 }
  0xb3   : > { %v375_v3 = vpop.f32.mrf.mxu1  ;;  %v359_v31 = vpop.f32.mrf.mxu3 }
  0xb4   : > { %v376_v4 = vadd.f32 %v375_v3, %v262_v60  ;;  %v360_v56 = vadd.f32 %v359_v31, %v261_v15 }
  0xb5   : > { %v356_v20 = vpop.f32.mrf.mxu0 }
  0xb6   : > { %v817_v5 = vpop.eup %816  ;;  %v721_v6 = vmul.f32 -1.442695, %v376_v4  ;;  %v357_v27 = vadd.f32 %v356_v20, %v261_v15 }
  0xb7   : > { %v399_v7 = vadd.f32 1.0, %v817_v5 }
  0xb8   : > { %818 = vpow2.f32 %v721_v6 }
  0xb9   : > { %820 = vrcp.f32 %v399_v7  ;;  %v414_v30 = vand.u32 2147483648, %v399_v7  ;;  %vm408_vm1 = vweird.f32 %v399_v7  ;;  %v412_v32 = vand.u32 2147483647, %v399_v7 }
  0xbb   : > { %v378_v9 = vpop.f32.mrf.mxu1  ;;  %v415_v39 = vor.u32 1.1754944e-38, %v414_v30  ;;  %vm413_vm4 = vcmp.eq.f32.partialorder %v412_v32, 8.507059e+37  ;;  %v361_v53 = vpop.f32.mrf.mxu3 }
  0xbc   : > { %v379_v10 = vadd.f32 %v378_v9, %v262_v60  ;;  %v362_v58 = vadd.f32 %v361_v53, %v261_v15 }
  0xbe   : > { %v819_v11 = vpop.eup %818  ;;  %v722_v12 = vmul.f32 -1.442695, %v379_v10 }
  0xbf   : > { %v821_v13 = vpop.eup %820  ;;  %v400_v14 = vadd.f32 1.0, %v819_v11 }
  0xc0   : > { %822 = vpow2.f32 %v722_v12  ;;  %v404_v16 = vmul.f32 %v821_v13, %v399_v7  ;;  %vm409_vm0 = vweird.f32 %v821_v13 }
  0xc1   : > { %824 = vrcp.f32 %v400_v14  ;;  %vm410_vm2 = vmor %vm408_vm1, %vm409_vm0  ;;  %v429_v34 = vand.u32 2147483648, %v400_v14  ;;  %v427_v37 = vand.u32 2147483647, %v400_v14  ;;  %vm423_vm5 = vweird.f32 %v400_v14 }
  0xc2   : > { %v405_v17 = vsub.f32 1.0, %v404_v16  ;;  %826 = vtanh.f32 %v355_v18 }
  0xc3   : > { %v380_v19 = vpop.f32.mrf.mxu1  ;;  %v430_v45 = vor.u32 1.1754944e-38, %v429_v34  ;;  %vm428_vm7 = vcmp.eq.f32.partialorder %v427_v37, 8.507059e+37 }
  0xc4   : > { %v381_v21 = vadd.f32 %v380_v19, %v262_v60  ;;  %v406_v22 = vmul.f32 %v821_v13, %v405_v17 }
  0xc6   : > { %v823_v23 = vpop.eup %822  ;;  %v723_v24 = vmul.f32 -1.442695, %v381_v21  ;;  %v407_v28 = vadd.f32 %v821_v13, %v406_v22 }
  0xc7   : > { %v825_v25 = vpop.eup %824  ;;  %v401_v26 = vadd.f32 1.0, %v823_v23 }
  0xc8   : > { %828 = vpow2.f32 %v723_v24  ;;  %v419_v29 = vmul.f32 %v825_v25, %v400_v14  ;;  %v411_v35 = vsel %vm410_vm2, %v821_v13, %v407_v28  ;;  %vm424_vm3 = vweird.f32 %v825_v25  ;;  %v827_v38 = vpop.eup %826 }
  0xc9   : > { %830 = vrcp.f32 %v401_v26  ;;  %v416_v44 = vsel %vm413_vm4, %v415_v39, %v411_v35  ;;  %vm425_vm6 = vmor %vm423_vm5, %vm424_vm3  ;;  %v444_v61 = vand.u32 2147483648, %v401_v26  ;;  %vm438_vm9 = vweird.f32 %v401_v26 }
  0xca   : > { %v420_v33 = vsub.f32 1.0, %v419_v29  ;;  %832 = vtanh.f32 %v357_v27  ;;  %v463_v50 = vmul.f32 %v827_v38, %v416_v44  ;;  %v442_v62 = vand.u32 2147483647, %v401_v26 }
  0xcb   : > { %v445_v4 = vor.u32 1.1754944e-38, %v444_v61 }
  0xcc   : > { %v421_v36 = vmul.f32 %v825_v25, %v420_v33  ;;  %vm443_vm12 = vcmp.eq.f32.partialorder %v442_v62, 8.507059e+37 }
  0xce   : > { %v829_v40 = vpop.eup %828  ;;  %v422_v41 = vadd.f32 %v825_v25, %v421_v36 }
  0xcf   : > { %v831_v42 = vpop.eup %830  ;;  %v402_v43 = vadd.f32 1.0, %v829_v40 }
  0xd0   : > { %v426_v46 = vsel %vm425_vm6, %v825_v25, %v422_v41  ;;  %v434_v47 = vmul.f32 %v831_v42, %v401_v26  ;;  %v833_v48 = vpop.eup %832  ;;  %vm439_vm8 = vweird.f32 %v831_v42 }
  0xd1   : > { %834 = vrcp.f32 %v402_v43  ;;  %v431_v49 = vsel %vm428_vm7, %v430_v45, %v426_v46  ;;  %vm440_vm10 = vmor %vm438_vm9, %vm439_vm8  ;;  %v459_v0 = vand.u32 2147483648, %v402_v43  ;;  %v457_v3 = vand.u32 2147483647, %v402_v43 }
  0xd2   : > { %v464_v51 = vmul.f32 %v833_v48, %v431_v49  ;;  %v435_v52 = vsub.f32 1.0, %v434_v47  ;;  %836 = vtanh.f32 %v360_v56  ;;  %vm453_vm13 = vweird.f32 %v402_v43 }
  0xd3   : > { %838 = vtanh.f32 %v362_v58  ;;  %v460_v8 = vor.u32 1.1754944e-38, %v459_v0  ;;  %vm458_vm15 = vcmp.eq.f32.partialorder %v457_v3, 8.507059e+37 }
  0xd4   : > { %v467_v54 = vpack.c.bf16 %v464_v51, %v463_v50  ;;  %v436_v55 = vmul.f32 %v831_v42, %v435_v52 }
  0xd6   : > { %541 = vmatmul.bf16.vlgmr.msra.gmra.mxu2 %v467_v54  ;;  %v437_v59 = vadd.f32 %v831_v42, %v436_v55 }
  0xd7   : > { %v835_v57 = vpop.eup %834 }
  0xd8   : > { %v449_v60 = vmul.f32 %v835_v57, %v402_v43  ;;  %v441_v1 = vsel %vm440_vm10, %v831_v42, %v437_v59  ;;  %vm454_vm11 = vweird.f32 %v835_v57  ;;  %v837_v6 = vpop.eup %836 }
  0xd9   : > { %v446_v7 = vsel %vm443_vm12, %v445_v4, %v441_v1  ;;  %vm455_vm14 = vmor %vm453_vm13, %vm454_vm11  ;;  %v839_v10 = vpop.eup %838 }
  0xda   : > { %v450_v63 = vsub.f32 1.0, %v449_v60  ;;  %v465_v12 = vmul.f32 %v837_v6, %v446_v7 }
  0xdc   : > { %v451_v2 = vmul.f32 %v835_v57, %v450_v63 }
  0xde   : > { %v452_v5 = vadd.f32 %v835_v57, %v451_v2 }
  0xe0   : > { %v456_v9 = vsel %vm455_vm14, %v835_v57, %v452_v5 }
  0xe1   : > { %v461_v11 = vsel %vm458_vm15, %v460_v8, %v456_v9 }
  0xe2   : > { %v466_v13 = vmul.f32 %v839_v10, %v461_v11 }
  0xe4   : > { %v468_v14 = vpack.c.bf16 %v466_v13, %v465_v12 }
  0xe6   : > { %546 = vmatmul.bf16.gmra.mxu2 %v468_v14 }
 0x159   : > { %v542_v15 = vpop.f32.mrf.mxu2 }
 0x15a   : > { %v552_v16 = vmax.f32 %v542_v15, 0.0 }
 0x15c   : > { %556 = vst [vmem:[%s235_s20] sm:$0xff] %v552_v16 }
 0x161   : > { %v544_v17 = vpop.f32.mrf.mxu2 }
 0x162   : > { %v553_v18 = vmax.f32 %v544_v17, 0.0 }
 0x164   : > { %557 = vst [vmem:[%s235_s20 + $0x8] sm:$0xff] %v553_v18 }
 0x169   : > { %v547_v19 = vpop.f32.mrf.mxu2 }
 0x16a   : > { %v554_v20 = vmax.f32 %v547_v19, 0.0 }
 0x16c   : > { %558 = vst [vmem:[%s235_s20 + $0x10] sm:$0xff] %v554_v20 }
 0x171   : > { %v549_v21 = vpop.f32.mrf.mxu2 }
 0x172   : > { %v555_v22 = vmax.f32 %v549_v21, 0.0 }
 0x174   : > { %559 = vst [vmem:[%s235_s20 + $0x18] sm:$0xff] %v555_v22 }
 0x175 PF: > { %s14_s17 = sadd.s32 1, %s862_s17   ;;  %s1061_s15 = smov %s858_s16 }
 0x176   : > { %p11_p5 = scmp.ge.s32.totalorder %s14_s17, 6   ;;  %s1062_s16 = smov %s1064_s18 }
 0x178   :  { %13 = sbr.rel (!%p11_p5) target bundleno = 2 (0x2), region = 66 }

// kernel: dual_path_model_forward.11
= control target key start
LH: loop header
LB: loop body
LE: loop exit
PB: predicated region body
PF: predicated region fallthrough
CT: control target
= control target key end

     0   :  { %s1469_s25 = smov 0   ;;  %s1471_s26 = smov 0   ;;  %s1656_s0 = inlined_call_operand.vmem [shape: f32[2,1,128], index: 0, kind: input, shape index: {}]   ;;  %s1657_s1 = inlined_call_operand.vmem [shape: f32[2,1,128], index: 1, kind: input, shape index: {}]   ;;  %s1658_s2 = inlined_call_operand.vmem [shape: f32[2,80,128], index: 2, kind: input, shape index: {}]   ;;  %s1659_s3 = inlined_call_operand.vmem [shape: f32[2,80,128], index: 3, kind: input, shape index: {}]   ;;  %s1660_s4 = inlined_call_operand.vmem [shape: f32[1,128], index: 4, kind: input, shape index: {}]   ;;  %s1661_s5 = inlined_call_operand.vmem [shape: f32[1,128], index: 5, kind: input, shape index: {}]   ;;  %s1662_s6 = inlined_call_operand.vmem [shape: bf16[128,128], index: 6, kind: input, shape index: {}]   ;;  %s1663_s7 = inlined_call_operand.vmem [shape: f32[1,128], index: 7, kind: input, shape index: {}]   ;;  %s1664_s8 = inlined_call_operand.vmem [shape: bf16[128,128], index: 8, kind: input, shape index: {}]   ;;  %s1665_s9 = inlined_call_operand.vmem [shape: f32[1,128], index: 9, kind: input, shape index: {}]   ;;  %s1666_s10 = inlined_call_operand.vmem [shape: f32[2,80,128], index: 10, kind: output, shape index: {0}]   ;;  %s1667_s11 = inlined_call_operand.vmem [shape: f32[2,80,128], index: 11, kind: output, shape index: {1}]   ;;  %s1668_s12 = inlined_call_operand.vmem [shape: f32[2,1,128], index: 12, kind: output, shape index: {2}]   ;;  %s1669_s13 = inlined_call_operand.vmem [shape: f32[2,1,128], index: 13, kind: output, shape index: {3}]  }
   0x1   :  { %1670 = sst [smem:[#allocation2_spill]] %s1656_s0  ;;  %s1473_s27 = smov 0  }
   0x2 LB: > { %s36_s28 = sadd.s32 1, %s1390_s26  ;;  %p1227_p0 = scmp.ge.s32.totalorder %s1394_s27, 1  ;;  %s1394_s27 = sphi %s1473_s27, %s24_s27   ;;  %s1390_s26 = sphi %s1471_s26, %s1673_s26   ;;  %s1386_s25 = sphi %s1469_s25, %s1672_s25  }
   0x3   : > { %p38_p1 = scmp.ge.s32.totalorder %s36_s28, 2  ;;  %p450_p2 = scmp.lt.s32.totalorder %s1394_s27, 3 }
   0x5   : > { %s1675_s28 = smov (%p38_p1, %s36_s28), 0  ;;  %p451_p3 = pnand %p1227_p0, %p450_p2 }
   0x6   : > { %p532_p4 = scmp.lt.s32.totalorder (!%p451_p3), %s1386_s25, 1  ;;  %s1671_s0 = sld [smem:[#allocation2_spill]] (!%p451_p3) }
   0x7   : > { %454 = sbr.rel (%p451_p3) target bundleno = 632 (0x278), region = 60 }
   0xc   : > { %s1677_s25 = smov (!%p532_p4, %s1386_s25), 1  ;;  %vm591_vm0 = vcmask 1040384   ;;  %v1396_v4 = vmov 1280.0   ;;  %v1305_v25 = vld [vmem:[%s1662_s6 + $0x38] sm:$0xff]  ;;  %v1304_v26 = vld [vmem:[%s1662_s6 + $0x30] sm:$0xff]  ;;  %v1303_v27 = vld [vmem:[%s1662_s6 + $0x28] sm:$0xff] }
   0xd   : > { %s534_s14 = scalar_lea.vmem %s1671_s0, %s1677_s25  ;;  %s537_s17 = scalar_lea.vmem %s1657_s1, %s1677_s25  ;;  %1368 = vrcp.f32 %v1396_v4  ;;  %793 = vmatpush.bf16.msra.mxu0 %v1305_v25  ;;  %1314 = vmatpush.bf16.msra.mxu2 %v1305_v25  ;;  %v1302_v28 = vld [vmem:[%s1662_s6 + $0x20] sm:$0xff]  ;;  %v1301_v37 = vld [vmem:[%s1662_s6 + $0x18] sm:$0xff]  ;;  %v1300_v38 = vld [vmem:[%s1662_s6 + $0x10] sm:$0xff] }
   0xe   : > { %v590_v0 = vld [vmem:[%s534_s14] sm:$0x1]  ;;  %v1299_v39 = vld [vmem:[%s1662_s6 + $0x8] sm:$0xff] }
   0xf   : > { %v592_v1 = vsel %vm591_vm0, %v590_v0, 0.0  ;;  %v611_v2 = vld [vmem:[%s537_s17] sm:$0x1] }
  0x10   : > { %593 = vadd.xlane.f32.xlu0 %v592_v1  ;;  %v612_v3 = vsel %vm591_vm0, %v611_v2, 0.0  ;;  %v1298_v40 = vld [vmem:[%s1662_s6] sm:$0xff] }
  0x11   : > { %794 = vmatpush.bf16.msra.mxu0 %v1304_v26  ;;  %1315 = vmatpush.bf16.msra.mxu2 %v1304_v26  ;;  %v647_v41 = vld [vmem:[%s1660_s4] sm:$0x1] }
  0x12   : > { %v650_v44 = vld [vmem:[%s1661_s5] sm:$0x1] }
  0x13   : > { %v1369_v5 = vpop.eup %1368 }
  0x14   : > { %v603_v6 = vmul.f32 1280.0, %v1369_v5  ;;  %vm607_vm1 = vweird.f32 %v1369_v5 }
  0x15   : > { %795 = vmatpush.bf16.msra.mxu0 %v1303_v27  ;;  %1316 = vmatpush.bf16.msra.mxu2 %v1303_v27 }
  0x16   : > { %v604_v7 = vsub.f32 1.0, %v603_v6 }
  0x18   : > { %613 = vadd.xlane.f32.xlu0 %v612_v3  ;;  %v605_v11 = vmul.f32 %v1369_v5, %v604_v7 }
  0x19   : > { %796 = vmatpush.bf16.msra.mxu0 %v1302_v28  ;;  %1317 = vmatpush.bf16.msra.mxu2 %v1302_v28 }
  0x1a   : > { %v606_v14 = vadd.f32 %v1369_v5, %v605_v11 }
  0x1c   : > { %v608_v20 = vsel %vm607_vm1, %v1369_v5, %v606_v14 }
  0x1d   : > { %797 = vmatpush.bf16.msra.mxu0 %v1301_v37  ;;  %1318 = vmatpush.bf16.msra.mxu2 %v1301_v37 }
  0x21   : > { %798 = vmatpush.bf16.msra.mxu0 %v1300_v38  ;;  %1319 = vmatpush.bf16.msra.mxu2 %v1300_v38  ;;  %v1312_v38 = vld [vmem:[%s1664_s8 + $0x30] sm:$0xff] }
  0x25   : > { %799 = vmatpush.bf16.msra.mxu0 %v1299_v39  ;;  %1320 = vmatpush.bf16.msra.mxu2 %v1299_v39 }
  0x29   : > { %800 = vmatpush.bf16.msra.mxu0 %v1298_v40  ;;  %1321 = vmatpush.bf16.msra.mxu2 %v1298_v40  ;;  %v1311_v40 = vld [vmem:[%s1664_s8 + $0x28] sm:$0xff] }
  0x83   : > { %v594_v8 = vpop.xlane.xlu0 %593 }
  0x84   : > { %v595_v9 = vrot.slane %v594_v8, 4 }
  0x86   : > { %v596_v10 = vadd.f32 %v595_v9, %v594_v8 }
  0x88   : > { %v597_v12 = vrot.slane %v596_v10, 2 }
  0x8a   : > { %v598_v13 = vadd.f32 %v597_v12, %v596_v10 }
  0x8b   : > { %v614_v15 = vpop.xlane.xlu0 %613 }
  0x8c   : > { %v615_v16 = vrot.slane %v614_v15, 4  ;;  %v599_v17 = vrot.slane %v598_v13, 1 }
  0x8e   : > { %v616_v18 = vadd.f32 %v615_v16, %v614_v15  ;;  %v600_v19 = vadd.f32 %v599_v17, %v598_v13 }
  0x90   : > { %v617_v21 = vrot.slane %v616_v18, 2  ;;  %1331 = vpush %v600_v19 }
  0x91   : > { %1333 = vpush %v608_v20 }
  0x92   : > { %v618_v22 = vadd.f32 %v617_v21, %v616_v18 }
  0x94   : > { %v619_v23 = vrot.slane %v618_v22, 1 }
  0x96   : > { %v620_v24 = vadd.f32 %v619_v23, %v618_v22 }
  0x98   : > { %1335 = vpush %v620_v24 }
  0xc1   : > { %s1332_s18 = spop %1331 }
  0xc2   : > { %s1334_s19 = spop %1333 }
  0xc3   : > { %s1500_s22 = smul.f32 %s1334_s19, %s1332_s18  ;;  %s1397_s18 = smov 0.0  }
  0xc5   : > { %s631_s29 = smul.f32 %s1500_s22, %s1500_s22  ;;  %v651_v45 = vstv %s1500_s22 }
  0xc9   : > { %s1336_s30 = spop %1335 }
  0xca   : > { %s630_s14 = smul.f32 %s1336_s30, %s1334_s19 }
  0xcc   : > { %s632_s17 = ssub.f32 %s630_s14, %s631_s29 }
  0xce   : > { %s633_s20 = smax.f32 %s1397_s18, %s632_s17  ;;  %s1526_s17 = smul.u32 80, %s1677_s25 }
  0xcf   : > { %s634_s23 = sadd.f32 1e-08, %s633_s20 }
  0xd0   : > { %s1535_s0 = scalar_lea.vmem %s1658_s2, %s1526_s17  ;;  %s1547_s15 = scalar_lea.vmem %s1659_s3, %s1526_s17 }
  0xd1   : > { %v635_v29 = vstv %s634_s23  ;;  %v654_v48 = vld [vmem:[%s1535_s0] sm:$0xff]  ;;  %v655_v49 = vld [vmem:[%s1535_s0 + $0x8] sm:$0xff]  ;;  %v656_v52 = vld [vmem:[%s1535_s0 + $0x10] sm:$0xff]  ;;  %s1565_s18 = scalar_lea.vmem %s1666_s10, %s1526_s17 }
  0xd2   : > { %1370 = vrsqrt.f32 %v635_v29  ;;  %vm642_vm3 = vweird.f32 %v635_v29  ;;  %v658_v50 = vld [vmem:[%s1535_s0 + $0x20] sm:$0xff]  ;;  %v659_v51 = vld [vmem:[%s1535_s0 + $0x28] sm:$0xff]  ;;  %v657_v54 = vld [vmem:[%s1535_s0 + $0x18] sm:$0xff] }
  0xd3   : > { %v660_v55 = vld [vmem:[%s1535_s0 + $0x30] sm:$0xff]  ;;  %v661_v56 = vld [vmem:[%s1535_s0 + $0x38] sm:$0xff]  ;;  %v690_v60 = vld [vmem:[%s1547_s15] sm:$0xff] }
  0xd4   : > { %v662_v63 = vld [vmem:[%s1535_s0 + $0x40] sm:$0xff]  ;;  %v691_v0 = vld [vmem:[%s1547_s15 + $0x8] sm:$0xff]  ;;  %v692_v14 = vld [vmem:[%s1547_s15 + $0x10] sm:$0xff] }
  0xd5   : > { %v694_v1 = vld [vmem:[%s1547_s15 + $0x20] sm:$0xff]  ;;  %v695_v2 = vld [vmem:[%s1547_s15 + $0x28] sm:$0xff]  ;;  %v693_v21 = vld [vmem:[%s1547_s15 + $0x18] sm:$0xff] }
  0xd6   : > { %v663_v11 = vld [vmem:[%s1535_s0 + $0x48] sm:$0xff]  ;;  %v696_v23 = vld [vmem:[%s1547_s15 + $0x30] sm:$0xff]  ;;  %v697_v28 = vld [vmem:[%s1547_s15 + $0x38] sm:$0xff] }
  0xd8   : > { %v1371_v30 = vpop.eup %1370 }
  0xd9   : > { %v637_v31 = vmul.f32 %v1371_v30, %v635_v29  ;;  %vm643_vm2 = vweird.f32 %v1371_v30 }
  0xda   : > { %vm644_vm4 = vmor %vm642_vm3, %vm643_vm2 }
  0xdb   : > { %v638_v32 = vmul.f32 %v1371_v30, %v637_v31 }
  0xdd   : > { %v639_v33 = vmul.f32 0.5, %v638_v32  ;;  %v698_v32 = vld [vmem:[%s1547_s15 + $0x40] sm:$0xff] }
  0xdf   : > { %v640_v34 = vsub.f32 1.5, %v639_v33 }
  0xe1   : > { %v641_v35 = vmul.f32 %v1371_v30, %v640_v34  ;;  %v699_v34 = vld [vmem:[%s1547_s15 + $0x48] sm:$0xff]  ;;  %s1617_s15 = scalar_lea.vmem %s1667_s11, %s1526_s17 }
  0xe3   : > { %v645_v36 = vsel %vm644_vm4, %v1371_v30, %v641_v35  ;;  %v1313_v35 = vld [vmem:[%s1664_s8 + $0x38] sm:$0xff] }
  0xe4   : > { %1337 = vpush %v645_v36  ;;  %910 = vmatpush.bf16.msra.mxu1 %v1313_v35  ;;  %1322 = vmatpush.bf16.msra.mxu3 %v1313_v35 }
  0xe8   : > { %911 = vmatpush.bf16.msra.mxu1 %v1312_v38  ;;  %1323 = vmatpush.bf16.msra.mxu3 %v1312_v38 }
  0xec   : > { %912 = vmatpush.bf16.msra.mxu1 %v1311_v40  ;;  %1324 = vmatpush.bf16.msra.mxu3 %v1311_v40 }
 0x115   : > { %s1338_s21 = spop %1337 }
 0x116   : > { %v648_v42 = vstv %s1338_s21  ;;  %s1631_s21 = scalar_lea.vmem %s1669_s13, %s1677_s25 }
 0x117   : > { %v649_v43 = vmul.f32 %v648_v42, %v647_v41  ;;  %v1310_v41 = vld [vmem:[%s1664_s8 + $0x20] sm:$0xff] }
 0x118   : > { %913 = vmatpush.bf16.msra.mxu1 %v1310_v41  ;;  %1325 = vmatpush.bf16.msra.mxu3 %v1310_v41 }
 0x119   : > { %v652_v46 = vmul.f32 %v651_v45, %v649_v43  ;;  %v665_v47 = vperm.slane %v649_v43, 0  ;;  %v1309_v45 = vld [vmem:[%s1664_s8 + $0x18] sm:$0xff] }
 0x11b   : > { %v653_v53 = vsub.f32 %v650_v44, %v652_v46  ;;  %v667_v57 = vmul.f32 %v665_v47, %v654_v48  ;;  %v668_v59 = vmul.f32 %v665_v47, %v655_v49  ;;  %v671_v61 = vmul.f32 %v665_v47, %v658_v50  ;;  %v1308_v46 = vld [vmem:[%s1664_s8 + $0x10] sm:$0xff]  ;;  %v1306_v48 = vld [vmem:[%s1664_s8] sm:$0xff] }
 0x11c   : > { %v672_v62 = vmul.f32 %v665_v47, %v659_v51  ;;  %v669_v3 = vmul.f32 %v665_v47, %v656_v52  ;;  %v670_v4 = vmul.f32 %v665_v47, %v657_v54  ;;  %v673_v5 = vmul.f32 %v665_v47, %v660_v55  ;;  %914 = vmatpush.bf16.msra.mxu1 %v1309_v45  ;;  %v1366_v50 = vld [vmem:[%s1663_s7] ss:$0 sm:$0xff] }
 0x11d   : > { %v678_v58 = vperm.slane %v653_v53, 0  ;;  %v674_v6 = vmul.f32 %v665_v47, %v661_v56  ;;  %v675_v16 = vmul.f32 %v665_v47, %v662_v63  ;;  %v676_v24 = vmul.f32 %v665_v47, %v663_v11  ;;  %1326 = vmatpush.bf16.msra.mxu3 %v1309_v45  ;;  %v1307_v47 = vld [vmem:[%s1664_s8 + $0x8] sm:$0xff] }
 0x11f   : > { %v680_v7 = vadd.f32 %v678_v58, %v667_v57  ;;  %v681_v8 = vadd.f32 %v678_v58, %v668_v59  ;;  %v684_v9 = vadd.f32 %v678_v58, %v671_v61  ;;  %v685_v10 = vadd.f32 %v678_v58, %v672_v62 }
 0x120   : > { %v682_v12 = vadd.f32 %v678_v58, %v669_v3  ;;  %v683_v13 = vadd.f32 %v678_v58, %v670_v4  ;;  %v686_v15 = vadd.f32 %v678_v58, %v673_v5  ;;  %v687_v22 = vadd.f32 %v678_v58, %v674_v6  ;;  %915 = vmatpush.bf16.msra.mxu1 %v1308_v46 }
 0x121   : > { %v700_v17 = vadd.f32 %v690_v60, %v680_v7  ;;  %v701_v18 = vadd.f32 %v691_v0, %v681_v8  ;;  %v704_v19 = vadd.f32 %v694_v1, %v684_v9  ;;  %v705_v20 = vadd.f32 %v695_v2, %v685_v10  ;;  %1327 = vmatpush.bf16.msra.mxu3 %v1308_v46 }
 0x122   : > { %v702_v27 = vadd.f32 %v692_v14, %v682_v12  ;;  %v688_v29 = vadd.f32 %v678_v58, %v675_v16  ;;  %v703_v30 = vadd.f32 %v693_v21, %v683_v13  ;;  %v689_v31 = vadd.f32 %v678_v58, %v676_v24  ;;  %v1367_v21 = vld [vmem:[%s1665_s9] ss:$0 sm:$0xff] }
 0x123   : > { %710 = vst [vmem:[%s1565_s18] sm:$0xff] %v700_v17  ;;  %v720_v25 = vpack.c.bf16 %v701_v18, %v700_v17  ;;  %v722_v26 = vpack.c.bf16 %v705_v20, %v704_v19  ;;  %v706_v33 = vadd.f32 %v696_v23, %v686_v15  ;;  %v707_v36 = vadd.f32 %v697_v28, %v687_v22 }
 0x124   : > { %711 = vst [vmem:[%s1565_s18 + $0x8] sm:$0xff] %v701_v18  ;;  %v708_v37 = vadd.f32 %v698_v32, %v688_v29  ;;  %v709_v39 = vadd.f32 %v699_v34, %v689_v31  ;;  %v721_v42 = vpack.c.bf16 %v703_v30, %v702_v27  ;;  %916 = vmatpush.bf16.msra.mxu1 %v1307_v47  ;;  %v1398_v28 = vmov 0.0  }
 0x125   : > { %801 = vmatmul.bf16.vlgmr.msra.gmra.mxu0 %v720_v25  ;;  %714 = vst [vmem:[%s1565_s18 + $0x20] sm:$0xff] %v704_v19  ;;  %811 = vmatmul.bf16.vlgmr.msra.gmra.mxu2 %v722_v26  ;;  %v723_v43 = vpack.c.bf16 %v707_v36, %v706_v33 }
 0x126   : > { %715 = vst [vmem:[%s1565_s18 + $0x28] sm:$0xff] %v705_v20  ;;  %v724_v44 = vpack.c.bf16 %v709_v39, %v708_v37  ;;  %1328 = vmatpush.bf16.msra.mxu3 %v1307_v47 }
 0x127   : > { %712 = vst [vmem:[%s1565_s18 + $0x10] sm:$0xff] %v702_v27 }
 0x128   : > { %713 = vst [vmem:[%s1565_s18 + $0x18] sm:$0xff] %v703_v30  ;;  %917 = vmatpush.bf16.msra.mxu1 %v1306_v48 }
 0x129   : > { %716 = vst [vmem:[%s1565_s18 + $0x30] sm:$0xff] %v706_v33 }
 0x12a   : > { %717 = vst [vmem:[%s1565_s18 + $0x38] sm:$0xff] %v707_v36  ;;  %1329 = vmatpush.bf16.msra.mxu3 %v1306_v48 }
 0x12b   : > { %718 = vst [vmem:[%s1565_s18 + $0x40] sm:$0xff] %v708_v37 }
 0x12c   : > { %719 = vst [vmem:[%s1565_s18 + $0x48] sm:$0xff] %v709_v39  ;;  %s1625_s18 = scalar_lea.vmem %s1668_s12, %s1677_s25 }
 0x12d   : > { %588 = vst [vmem:[%s1625_s18] sm:$0x1] %v1398_v28 }
 0x12e   : > { %589 = vst [vmem:[%s1631_s21] sm:$0x1] %v1398_v28 }
 0x135   : > { %806 = vmatmul.bf16.gmra.mxu0 %v721_v42  ;;  %816 = vmatmul.bf16.gmra.mxu2 %v723_v43 }
 0x145   : > { %821 = vmatmul.bf16.gmra.mxu2 %v724_v44 }
 0x1a2   : > { %v802_v49 = vpop.f32.mrf.mxu0 }
 0x1a3   : > { %v803_v52 = vadd.f32 %v1366_v50, %v802_v49 }
 0x1a5   : > { %v827_v55 = vmax.f32 %v803_v52, 0.0 }
 0x1a8   : > { %v812_v51 = vpop.f32.mrf.mxu2 }
 0x1a9   : > { %v813_v11 = vadd.f32 %v1366_v50, %v812_v51 }
 0x1aa   : > { %v804_v53 = vpop.f32.mrf.mxu0 }
 0x1ab   : > { %v805_v54 = vadd.f32 %v1366_v50, %v804_v53  ;;  %v831_v13 = vmax.f32 %v813_v11, 0.0 }
 0x1ad   : > { %v828_v56 = vmax.f32 %v805_v54, 0.0 }
 0x1af   : > { %v837_v57 = vpack.c.bf16 %v828_v56, %v827_v55 }
 0x1b0   : > { %v814_v58 = vpop.f32.mrf.mxu2 }
 0x1b1   : > { %918 = vmatmul.bf16.vlgmr.msra.gmra.mxu1 %v837_v57  ;;  %v815_v9 = vadd.f32 %v1366_v50, %v814_v58 }
 0x1b2   : > { %v807_v59 = vpop.f32.mrf.mxu0 }
 0x1b3   : > { %v808_v61 = vadd.f32 %v1366_v50, %v807_v59  ;;  %v832_v12 = vmax.f32 %v815_v9, 0.0 }
 0x1b5   : > { %v829_v0 = vmax.f32 %v808_v61, 0.0  ;;  %v839_v15 = vpack.c.bf16 %v832_v12, %v831_v13 }
 0x1b8   : > { %v817_v60 = vpop.f32.mrf.mxu2 }
 0x1b9   : > { %v818_v2 = vadd.f32 %v1366_v50, %v817_v60 }
 0x1ba   : > { %v809_v62 = vpop.f32.mrf.mxu0 }
 0x1bb   : > { %v810_v63 = vadd.f32 %v1366_v50, %v809_v62  ;;  %v833_v6 = vmax.f32 %v818_v2, 0.0 }
 0x1bd   : > { %v830_v1 = vmax.f32 %v810_v63, 0.0 }
 0x1bf   : > { %v838_v3 = vpack.c.bf16 %v830_v1, %v829_v0 }
 0x1c0   : > { %v819_v4 = vpop.f32.mrf.mxu2 }
 0x1c1   : > { %v820_v5 = vadd.f32 %v1366_v50, %v819_v4  ;;  %923 = vmatmul.bf16.gmra.mxu1 %v838_v3 }
 0x1c3   : > { %v834_v7 = vmax.f32 %v820_v5, 0.0 }
 0x1c5   : > { %v840_v8 = vpack.c.bf16 %v834_v7, %v833_v6 }
 0x1c7   : > { %933 = vmatmul.bf16.vlgmr.msra.gmra.mxu3 %v840_v8 }
 0x1c8   : > { %v822_v10 = vpop.f32.mrf.mxu2 }
 0x1c9   : > { %v823_v14 = vadd.f32 %v1366_v50, %v822_v10 }
 0x1cb   : > { %v835_v18 = vmax.f32 %v823_v14, 0.0 }
 0x1d0   : > { %v824_v16 = vpop.f32.mrf.mxu2 }
 0x1d1   : > { %v825_v17 = vadd.f32 %v1366_v50, %v824_v16  ;;  %928 = vmatmul.bf16.gmra.mxu1 %v839_v15  ;;  %v954_v16 = vld [vmem:[%s1625_s18] sm:$0x1] }
 0x1d3   : > { %v836_v19 = vmax.f32 %v825_v17, 0.0 }
 0x1d5   : > { %v841_v20 = vpack.c.bf16 %v836_v19, %v835_v18  ;;  %v972_v19 = vld [vmem:[%s1631_s21] sm:$0x1] }
 0x1d7   : > { %938 = vmatmul.bf16.gmra.mxu3 %v841_v20 }
 0x22e   : > { %v919_v22 = vpop.f32.mrf.mxu1 }
 0x22f   : > { %v920_v23 = vadd.f32 %v1367_v21, %v919_v22 }
 0x231   : > { %944 = vst [vmem:[%s1617_s15] sm:$0xff] %v920_v23  ;;  %v973_v36 = vmul.f32 %v920_v23, %v920_v23 }
 0x236   : > { %v921_v24 = vpop.f32.mrf.mxu1 }
 0x237   : > { %v922_v25 = vadd.f32 %v1367_v21, %v921_v24 }
 0x239   : > { %945 = vst [vmem:[%s1617_s15 + $0x8] sm:$0xff] %v922_v25  ;;  %v974_v34 = vmul.f32 %v922_v25, %v922_v25  ;;  %v955_v37 = vadd.f32 %v922_v25, %v920_v23 }
 0x23b   : > { %v983_v40 = vadd.f32 %v974_v34, %v973_v36 }
 0x23e   : > { %v924_v26 = vpop.f32.mrf.mxu1 }
 0x23f   : > { %v925_v27 = vadd.f32 %v1367_v21, %v924_v26 }
 0x241   : > { %946 = vst [vmem:[%s1617_s15 + $0x10] sm:$0xff] %v925_v27  ;;  %v975_v38 = vmul.f32 %v925_v27, %v925_v27  ;;  %v956_v41 = vadd.f32 %v955_v37, %v925_v27 }
 0x243   : > { %v984_v44 = vadd.f32 %v983_v40, %v975_v38 }
 0x246   : > { %v926_v29 = vpop.f32.mrf.mxu1 }
 0x247   : > { %v927_v30 = vadd.f32 %v1367_v21, %v926_v29 }
 0x249   : > { %947 = vst [vmem:[%s1617_s15 + $0x18] sm:$0xff] %v927_v30  ;;  %v976_v42 = vmul.f32 %v927_v30, %v927_v30  ;;  %v957_v45 = vadd.f32 %v956_v41, %v927_v30 }
 0x24a   : > { %v934_v31 = vpop.f32.mrf.mxu3 }
 0x24b   : > { %v935_v32 = vadd.f32 %v1367_v21, %v934_v31  ;;  %v985_v48 = vadd.f32 %v984_v44, %v976_v42 }
 0x24d   : > { %950 = vst [vmem:[%s1617_s15 + $0x30] sm:$0xff] %v935_v32  ;;  %v979_v55 = vmul.f32 %v935_v32, %v935_v32 }
 0x24e   : > { %v929_v33 = vpop.f32.mrf.mxu1 }
 0x24f   : > { %v930_v35 = vadd.f32 %v1367_v21, %v929_v33 }
 0x251   : > { %948 = vst [vmem:[%s1617_s15 + $0x20] sm:$0xff] %v930_v35  ;;  %v977_v46 = vmul.f32 %v930_v35, %v930_v35  ;;  %v958_v49 = vadd.f32 %v957_v45, %v930_v35 }
 0x252   : > { %v936_v39 = vpop.f32.mrf.mxu3 }
 0x253   : > { %v937_v43 = vadd.f32 %v1367_v21, %v936_v39  ;;  %v986_v51 = vadd.f32 %v985_v48, %v977_v46 }
 0x255   : > { %951 = vst [vmem:[%s1617_s15 + $0x38] sm:$0xff] %v937_v43  ;;  %v980_v60 = vmul.f32 %v937_v43, %v937_v43 }
 0x256   : > { %v931_v47 = vpop.f32.mrf.mxu1 }
 0x257   : > { %v932_v50 = vadd.f32 %v1367_v21, %v931_v47 }
 0x259   : > { %949 = vst [vmem:[%s1617_s15 + $0x28] sm:$0xff] %v932_v50  ;;  %v959_v52 = vadd.f32 %v958_v49, %v932_v50  ;;  %v978_v53 = vmul.f32 %v932_v50, %v932_v50 }
 0x25a   : > { %v939_v54 = vpop.f32.mrf.mxu3 }
 0x25b   : > { %v960_v56 = vadd.f32 %v959_v52, %v935_v32  ;;  %v987_v57 = vadd.f32 %v986_v51, %v978_v53  ;;  %v940_v58 = vadd.f32 %v1367_v21, %v939_v54 }
 0x25d   : > { %v988_v59 = vadd.f32 %v987_v57, %v979_v55  ;;  %952 = vst [vmem:[%s1617_s15 + $0x40] sm:$0xff] %v940_v58  ;;  %v961_v61 = vadd.f32 %v960_v56, %v937_v43  ;;  %v981_v1 = vmul.f32 %v940_v58, %v940_v58 }
 0x25f   : > { %v989_v62 = vadd.f32 %v988_v59, %v980_v60  ;;  %v962_v0 = vadd.f32 %v961_v61, %v940_v58 }
 0x261   : > { %v990_v3 = vadd.f32 %v989_v62, %v981_v1 }
 0x262   : > { %v941_v63 = vpop.f32.mrf.mxu3 }
 0x263   : > { %v942_v2 = vadd.f32 %v1367_v21, %v941_v63 }
 0x265   : > { %953 = vst [vmem:[%s1617_s15 + $0x48] sm:$0xff] %v942_v2  ;;  %v963_v4 = vadd.f32 %v962_v0, %v942_v2  ;;  %v982_v5 = vmul.f32 %v942_v2, %v942_v2 }
 0x267   : > { %v964_v6 = vrot.slane %v963_v4, 4  ;;  %v991_v7 = vadd.f32 %v990_v3, %v982_v5 }
 0x269   : > { %v965_v8 = vadd.f32 %v964_v6, %v963_v4  ;;  %v992_v9 = vrot.slane %v991_v7, 4 }
 0x26b   : > { %v966_v10 = vrot.slane %v965_v8, 2  ;;  %v993_v11 = vadd.f32 %v992_v9, %v991_v7 }
 0x26d   : > { %v967_v12 = vadd.f32 %v966_v10, %v965_v8  ;;  %v994_v13 = vrot.slane %v993_v11, 2 }
 0x26f   : > { %v968_v14 = vrot.slane %v967_v12, 1  ;;  %v995_v15 = vadd.f32 %v994_v13, %v993_v11 }
 0x271   : > { %v969_v17 = vadd.f32 %v968_v14, %v967_v12  ;;  %v996_v18 = vrot.slane %v995_v15, 1 }
 0x273   : > { %v970_v20 = vadd.f32 %v969_v17, %v954_v16  ;;  %v997_v21 = vadd.f32 %v996_v18, %v995_v15 }
 0x275   : > { %971 = vst [vmem:[%s1625_s18] sm:$0x1] %v970_v20  ;;  %v998_v22 = vadd.f32 %v997_v21, %v972_v19 }
 0x277   : > { %999 = vst [vmem:[%s1631_s21] sm:$0x1] %v998_v22 }
 0x278 PF: > { %s24_s27 = sadd.s32 1, %s1394_s27   ;;  %s1672_s25 = smov %s1390_s26 }
 0x279   : > { %p21_p5 = scmp.ge.s32.totalorder %s24_s27, 4   ;;  %s1673_s26 = smov %s1675_s28 }
 0x27b   :  { %23 = sbr.rel (!%p21_p5) target bundleno = 2 (0x2), region = 139 }

</bundles_post_ra>
